<compile_context>
chip_gen: v6e
topology: v6e:2x2x1
jax: 0.10.0
libtpu: 0.0.40
codegen_flags: <defaults>
</compile_context>

<pallas_src>
import functools

import jax
import jax.numpy as jnp
from jax.experimental import pallas as pl
from jax.experimental.pallas import tpu as pltpu


def _round_up(x, m):
    return ((x + m - 1) // m) * m


# ----------------------------- Pallas kernel ----------------------------------

def _make_kernel(kh_sz, kw_sz, bh, wop, two_cin):
    """Builds the per-grid-step kernel body (closes over static tile geometry)."""

    def kernel(x_ref, w_ref, b_ref, out_ref):
        # x_ref  : (1, Hp, Wp, 2*Cin) bf16  -- whole padded image, resident across h-tiles
        # w_ref  : (KH*KW, 2*Cin, 2*Cp) bf16 -- fused complex weights, resident
        # b_ref  : (1, 2*Cp) f32             -- fused complex bias [br - bi | br + bi]
        # out_ref: (BH*WOP, 2*Cp) f32        -- rows = (h_local, w), cols = [real | imag]
        h0 = pl.program_id(1) * bh

        # Accumulator is the output block itself; init with the fused bias.
        out_ref[...] = jnp.broadcast_to(b_ref[...], out_ref.shape)

        # One MXU matmul per (kh, kw) tap.  The input rows are loaded once per kh and the
        # kw shift is a static in-VMEM slice -- no HBM re-reads (im2col eliminated).
        for kh in range(kh_sz):
            rows = x_ref[0, pl.ds(h0 + kh, bh), :, :]            # (BH, Wp, 2*Cin)
            for kw in range(kw_sz):
                lhs = rows[:, kw:kw + wop, :].reshape(bh * wop, two_cin)
                out_ref[...] += jnp.dot(
                    lhs, w_ref[kh * kw_sz + kw],
                    preferred_element_type=jnp.float32)

    return kernel


# ----------------------------- JAX wrapper -------------------------------------

@functools.partial(jax.jit, static_argnames=("rows_per_step",))
def complex_conv2d(real_nchw, imag_nchw, wr_oihw, wi_oihw, br, bi, *, rows_per_step=512):
    """Pallas implementation of ComplexConv2d.forward.

    Implements exactly the module's configuration: stride=1, padding=0, dilation=1, groups=1.
    real_nchw, imag_nchw : (N, Cin, H, W)       (PyTorch layout)
    wr_oihw,  wi_oihw    : (Cout, Cin, KH, KW)  (PyTorch Conv2d weight layout)
    br, bi               : (Cout,)
    Returns (out_real, out_imag), each (N, Cout, Ho, Wo) float32.
    """
    cout, cin, kh_sz, kw_sz = wr_oihw.shape
    n, cin_x, h, w = real_nchw.shape
    assert cin_x == cin and imag_nchw.shape == real_nchw.shape
    assert h >= kh_sz and w >= kw_sz, "valid (no-padding) conv requires H,W >= kernel_size"

    ho, wo = h - kh_sz + 1, w - kw_sz + 1

    # --- tile geometry ----------------------------------------------------------
    wop = _round_up(wo, 16)                      # bf16-sublane-aligned output width
    bh = max(1, min(ho, rows_per_step // wop))   # output rows per grid step
    hop = _round_up(ho, bh)
    hb = hop // bh                               # h-tiles per image
    hp = hop + kh_sz - 1                         # padded input height
    wp = wop + kw_sz - 1                         # padded input width

    cp = _round_up(cout, 64)                     # 2*cp multiple of 128 -> lane-dense stores
    two_cin = 2 * cin
    two_cp = 2 * cp
    mrows = bh * wop                             # GEMM rows per grid step

    # --- input: stack real/imag on channels, NCHW -> NHWC, cast bf16, zero-pad ---
    # (padded rows/cols are never read by valid output positions; padded outputs are
    #  sliced off at the end)
    x = jnp.concatenate([real_nchw, imag_nchw], axis=1)            # (N, 2*Cin, H, W)
    x = jnp.transpose(x, (0, 2, 3, 1)).astype(jnp.bfloat16)        # (N, H, W, 2*Cin)
    x = jnp.pad(x, ((0, 0), (0, hp - h), (0, wp - w), (0, 0)))

    # --- fused complex weights / bias --------------------------------------------
    #   real_out = conv(x_r, Wr) - conv(x_i, Wi) + (br - bi)
    #   imag_out = conv(x_i, Wr) + conv(x_r, Wi) + (br + bi)
    wr = jnp.transpose(wr_oihw, (2, 3, 1, 0))                      # (KH, KW, Cin, Cout)
    wi = jnp.transpose(wi_oihw, (2, 3, 1, 0))
    wr_p = jnp.pad(wr, ((0, 0), (0, 0), (0, 0), (0, cp - cout)))
    wi_p = jnp.pad(wi, ((0, 0), (0, 0), (0, 0), (0, cp - cout)))
    w_real_rows = jnp.concatenate([wr_p, wi_p], axis=-1)           # rows fed by real channels
    w_imag_rows = jnp.concatenate([-wi_p, wr_p], axis=-1)          # rows fed by imag channels
    w_full = jnp.concatenate([w_real_rows, w_imag_rows], axis=2)   # (KH, KW, 2*Cin, 2*Cp)
    w_full = w_full.reshape(kh_sz * kw_sz, two_cin, two_cp).astype(jnp.bfloat16)

    br_p = jnp.pad(br, (0, cp - cout))
    bi_p = jnp.pad(bi, (0, cp - cout))
    bias = jnp.concatenate([br_p - bi_p, br_p + bi_p]).reshape(1, two_cp).astype(jnp.float32)

    # --- Pallas call --------------------------------------------------------------
    kernel = _make_kernel(kh_sz, kw_sz, bh, wop, two_cin)

    x_spec = pl.BlockSpec((1, hp, wp, two_cin), lambda i, j: (i, 0, 0, 0))  # per-image, resident over j
    w_spec = pl.BlockSpec((kh_sz * kw_sz, two_cin, two_cp), lambda i, j: (0, 0, 0))
    b_spec = pl.BlockSpec((1, two_cp), lambda i, j: (0, 0))
    out_spec = pl.BlockSpec((mrows, two_cp), lambda i, j: (i * hb + j, 0))  # lane-dense

    # VMEM budget from the actual block sizes (inputs/outputs double-buffered by the pipeline).
    bytes_x = hp * wp * two_cin * 2
    bytes_w = kh_sz * kw_sz * two_cin * two_cp * 2
    bytes_b = two_cp * 4
    bytes_o = mrows * two_cp * 4
    vmem_need = 2 * (bytes_x + bytes_w + bytes_b + bytes_o)
    vmem_limit = int(min(max(3 * vmem_need // 2 + (2 << 20), 16 << 20), 100 << 20))

    out2d = pl.pallas_call(
        kernel,
        out_shape=jax.ShapeDtypeStruct((n * hop * wop, two_cp), jnp.float32),
        grid_spec=pltpu.PrefetchScalarGridSpec(
            num_scalar_prefetch=0,
            grid=(n, hb),                       # image axis outer so the image block stays resident
            in_specs=[x_spec, w_spec, b_spec],
            out_specs=out_spec,
        ),
        compiler_params=pltpu.CompilerParams(
            dimension_semantics=("parallel", "parallel"),   # shards across v7x's 2 TensorCores
            vmem_limit_bytes=vmem_limit,
        ),
    )(x, w_full, bias)

    out = out2d.reshape(n, hop, wop, two_cp)
    out_r = out[:, :ho, :wo, :cout]
    out_i = out[:, :ho, :wo, cp:cp + cout]
    # NHWC -> NCHW to match the PyTorch module's output convention.
    return (jnp.transpose(out_r, (0, 3, 1, 2)),
            jnp.transpose(out_i, (0, 3, 1, 2)))


# ----------------------------- reference (plain JAX) ----------------------------

def _conv2d_ref(x_nchw, w_oihw, b):
    out = jax.lax.conv_general_dilated(
        x_nchw, w_oihw, window_strides=(1, 1), padding="VALID",
        dimension_numbers=("NCHW", "OIHW", "NCHW"))
    return out + b[None, :, None, None]


def complex_conv2d_ref(real, imag, wr, wi, br, bi):
    return (_conv2d_ref(real, wr, br) - _conv2d_ref(imag, wi, bi),
            _conv2d_ref(imag, wr, br) + _conv2d_ref(real, wi, bi))


# ----------------------------- main ---------------------------------------------

if __name__ == "__main__":
    N, Cin, H, W = 2, 4, 16, 16
    Cout, Ksz = 8, 3

    key = jax.random.PRNGKey(0)
    k_real, k_imag, k_wr, k_wi, k_br, k_bi = jax.random.split(key, 6)

    real = jax.random.normal(k_real, (N, Cin, H, W), jnp.float32)
    imag = jax.random.normal(k_imag, (N, Cin, H, W), jnp.float32)

    # Deterministic "PyTorch-style" init: uniform(-1/sqrt(fan_in), 1/sqrt(fan_in)).
    fan_in = Cin * Ksz * Ksz
    bound = 1.0 / (fan_in ** 0.5)
    wr = jax.random.uniform(k_wr, (Cout, Cin, Ksz, Ksz), jnp.float32, -bound, bound)
    wi = jax.random.uniform(k_wi, (Cout, Cin, Ksz, Ksz), jnp.float32, -bound, bound)
    br = jax.random.uniform(k_br, (Cout,), jnp.float32, -bound, bound)
    bi = jax.random.uniform(k_bi, (Cout,), jnp.float32, -bound, bound)

    out_r, out_i = complex_conv2d(real, imag, wr, wi, br, bi)
    jax.block_until_ready((out_r, out_i))

    ref_r, ref_i = complex_conv2d_ref(real, imag, wr, wi, br, bi)
    assert out_r.shape == (N, Cout, H - Ksz + 1, W - Ksz + 1)
    assert out_i.shape == (N, Cout, H - Ksz + 1, W - Ksz + 1)
    # bf16 operands with f32 accumulation: slightly relaxed tolerance vs the f32 reference.
    assert jnp.allclose(out_r, ref_r, rtol=2e-2, atol=2e-2)
    assert jnp.allclose(out_i, ref_i, rtol=2e-2, atol=2e-2)

    print("KERNEL_OK")
</pallas_src>

<mosaic_0001>
module attributes {stable_mosaic.version = 11 : i64} {
  func.func @kernel(%arg0: i32, %arg1: i32, %arg2: memref<1x16x18x8xbf16, #tpu.memory_space<vmem>>, %arg3: memref<9x8x128xbf16, #tpu.memory_space<vmem>>, %arg4: memref<1x128xf32, #tpu.memory_space<vmem>>, %arg5: memref<224x128xf32, #tpu.memory_space<vmem>>) attributes {dimension_semantics = [#tpu.dimension_semantics<parallel>, #tpu.dimension_semantics<parallel>], iteration_bounds = array<i64: 2, 1>, scalar_prefetch = 0 : i64, scratch_operands = 0 : i64, tpu.core_type = #tpu.core_type<tc>, window_params = [{transform_indices = @transform_0, window_bounds = array<i64: 1, 16, 18, 8>}, {pipeline_mode = #tpu.pipeline_mode<synchronous>, transform_indices = @transform_1, window_bounds = array<i64: 9, 8, 128>}, {pipeline_mode = #tpu.pipeline_mode<synchronous>, transform_indices = @transform_2, window_bounds = array<i64: 1, 128>}, {transform_indices = @transform_3, window_bounds = array<i64: 224, 128>}]} {
    %c14_i32 = arith.constant 14 : i32
    %0 = arith.muli %arg1, %c14_i32 : i32
    %c0 = arith.constant 0 : index
    %c0_0 = arith.constant 0 : index
    %1 = vector.load %arg4[%c0, %c0_0] : memref<1x128xf32, #tpu.memory_space<vmem>>, vector<1x128xf32>
    %2 = vector.shape_cast %1 : vector<1x128xf32> to vector<1x128xf32>
    %3 = vector.broadcast %2 : vector<1x128xf32> to vector<224x128xf32>
    %c0_1 = arith.constant 0 : index
    %c0_2 = arith.constant 0 : index
    %4 = vector.load %arg5[%c0_1, %c0_2] : memref<224x128xf32, #tpu.memory_space<vmem>>, vector<224x128xf32>
    tpu.vector_store %arg5[%c0_1, %c0_2], %3 {strides = array<i32>} : memref<224x128xf32, #tpu.memory_space<vmem>>, vector<224x128xf32>,
    %c0_i32 = arith.constant 0 : i32
    %5 = arith.addi %0, %c0_i32 : i32
    %c0_3 = arith.constant 0 : index
    %6 = arith.index_cast %5 : i32 to index
    %c0_4 = arith.constant 0 : index
    %c0_5 = arith.constant 0 : index
    %7 = vector.load %arg2[%c0_3, %6, %c0_4, %c0_5] : memref<1x16x18x8xbf16, #tpu.memory_space<vmem>>, vector<1x14x18x8xbf16>
    %8 = vector.shape_cast %7 : vector<1x14x18x8xbf16> to vector<14x18x8xbf16>
    %9 = vector.extract_strided_slice %8 {offsets = [0, 0, 0], sizes = [14, 16, 8], strides = [1, 1, 1]} : vector<14x18x8xbf16> to vector<14x16x8xbf16>
    %10 = vector.shape_cast %9 : vector<14x16x8xbf16> to vector<224x8xbf16>
    %c0_6 = arith.constant 0 : index
    %c0_7 = arith.constant 0 : index
    %11 = vector.load %arg5[%c0_6, %c0_7] : memref<224x128xf32, #tpu.memory_space<vmem>>, vector<224x128xf32>
    %c0_8 = arith.constant 0 : index
    %c0_9 = arith.constant 0 : index
    %c0_10 = arith.constant 0 : index
    %12 = vector.load %arg3[%c0_8, %c0_9, %c0_10] : memref<9x8x128xbf16, #tpu.memory_space<vmem>>, vector<1x8x128xbf16>
    %13 = vector.shape_cast %12 : vector<1x8x128xbf16> to vector<8x128xbf16>
    %cst = arith.constant dense<0.000000e+00> : vector<224x128xf32>
    %14 = tpu.matmul %10, %13, %cst {dimension_numbers = #tpu.dot_dimension_numbers<[1], [0], [0], [1], [0, 0, 1, 1], [], []>} : vector<224x8xbf16>, vector<8x128xbf16>, vector<224x128xf32> -> vector<224x128xf32>
    %15 = arith.addf %11, %14 : vector<224x128xf32>
    %c0_11 = arith.constant 0 : index
    %c0_12 = arith.constant 0 : index
    %16 = vector.load %arg5[%c0_11, %c0_12] : memref<224x128xf32, #tpu.memory_space<vmem>>, vector<224x128xf32>
    tpu.vector_store %arg5[%c0_11, %c0_12], %15 {strides = array<i32>} : memref<224x128xf32, #tpu.memory_space<vmem>>, vector<224x128xf32>,
    %17 = vector.extract_strided_slice %8 {offsets = [0, 1, 0], sizes = [14, 16, 8], strides = [1, 1, 1]} : vector<14x18x8xbf16> to vector<14x16x8xbf16>
    %18 = vector.shape_cast %17 : vector<14x16x8xbf16> to vector<224x8xbf16>
    %c0_13 = arith.constant 0 : index
    %c0_14 = arith.constant 0 : index
    %19 = vector.load %arg5[%c0_13, %c0_14] : memref<224x128xf32, #tpu.memory_space<vmem>>, vector<224x128xf32>
    %c1 = arith.constant 1 : index
    %c0_15 = arith.constant 0 : index
    %c0_16 = arith.constant 0 : index
    %20 = vector.load %arg3[%c1, %c0_15, %c0_16] : memref<9x8x128xbf16, #tpu.memory_space<vmem>>, vector<1x8x128xbf16>
    %21 = vector.shape_cast %20 : vector<1x8x128xbf16> to vector<8x128xbf16>
    %cst_17 = arith.constant dense<0.000000e+00> : vector<224x128xf32>
    %22 = tpu.matmul %18, %21, %cst_17 {dimension_numbers = #tpu.dot_dimension_numbers<[1], [0], [0], [1], [0, 0, 1, 1], [], []>} : vector<224x8xbf16>, vector<8x128xbf16>, vector<224x128xf32> -> vector<224x128xf32>
    %23 = arith.addf %19, %22 : vector<224x128xf32>
    %c0_18 = arith.constant 0 : index
    %c0_19 = arith.constant 0 : index
    %24 = vector.load %arg5[%c0_18, %c0_19] : memref<224x128xf32, #tpu.memory_space<vmem>>, vector<224x128xf32>
    tpu.vector_store %arg5[%c0_18, %c0_19], %23 {strides = array<i32>} : memref<224x128xf32, #tpu.memory_space<vmem>>, vector<224x128xf32>,
    %25 = vector.extract_strided_slice %8 {offsets = [0, 2, 0], sizes = [14, 16, 8], strides = [1, 1, 1]} : vector<14x18x8xbf16> to vector<14x16x8xbf16>
    %26 = vector.shape_cast %25 : vector<14x16x8xbf16> to vector<224x8xbf16>
    %c0_20 = arith.constant 0 : index
    %c0_21 = arith.constant 0 : index
    %27 = vector.load %arg5[%c0_20, %c0_21] : memref<224x128xf32, #tpu.memory_space<vmem>>, vector<224x128xf32>
    %c2 = arith.constant 2 : index
    %c0_22 = arith.constant 0 : index
    %c0_23 = arith.constant 0 : index
    %28 = vector.load %arg3[%c2, %c0_22, %c0_23] : memref<9x8x128xbf16, #tpu.memory_space<vmem>>, vector<1x8x128xbf16>
    %29 = vector.shape_cast %28 : vector<1x8x128xbf16> to vector<8x128xbf16>
    %cst_24 = arith.constant dense<0.000000e+00> : vector<224x128xf32>
    %30 = tpu.matmul %26, %29, %cst_24 {dimension_numbers = #tpu.dot_dimension_numbers<[1], [0], [0], [1], [0, 0, 1, 1], [], []>} : vector<224x8xbf16>, vector<8x128xbf16>, vector<224x128xf32> -> vector<224x128xf32>
    %31 = arith.addf %27, %30 : vector<224x128xf32>
    %c0_25 = arith.constant 0 : index
    %c0_26 = arith.constant 0 : index
    %32 = vector.load %arg5[%c0_25, %c0_26] : memref<224x128xf32, #tpu.memory_space<vmem>>, vector<224x128xf32>
    tpu.vector_store %arg5[%c0_25, %c0_26], %31 {strides = array<i32>} : memref<224x128xf32, #tpu.memory_space<vmem>>, vector<224x128xf32>,
    %c1_i32 = arith.constant 1 : i32
    %33 = arith.addi %0, %c1_i32 : i32
    %c0_27 = arith.constant 0 : index
    %34 = arith.index_cast %33 : i32 to index
    %c0_28 = arith.constant 0 : index
    %c0_29 = arith.constant 0 : index
    %35 = vector.load %arg2[%c0_27, %34, %c0_28, %c0_29] : memref<1x16x18x8xbf16, #tpu.memory_space<vmem>>, vector<1x14x18x8xbf16>
    %36 = vector.shape_cast %35 : vector<1x14x18x8xbf16> to vector<14x18x8xbf16>
    %37 = vector.extract_strided_slice %36 {offsets = [0, 0, 0], sizes = [14, 16, 8], strides = [1, 1, 1]} : vector<14x18x8xbf16> to vector<14x16x8xbf16>
    %38 = vector.shape_cast %37 : vector<14x16x8xbf16> to vector<224x8xbf16>
    %c0_30 = arith.constant 0 : index
    %c0_31 = arith.constant 0 : index
    %39 = vector.load %arg5[%c0_30, %c0_31] : memref<224x128xf32, #tpu.memory_space<vmem>>, vector<224x128xf32>
    %c3 = arith.constant 3 : index
    %c0_32 = arith.constant 0 : index
    %c0_33 = arith.constant 0 : index
    %40 = vector.load %arg3[%c3, %c0_32, %c0_33] : memref<9x8x128xbf16, #tpu.memory_space<vmem>>, vector<1x8x128xbf16>
    %41 = vector.shape_cast %40 : vector<1x8x128xbf16> to vector<8x128xbf16>
    %cst_34 = arith.constant dense<0.000000e+00> : vector<224x128xf32>
    %42 = tpu.matmul %38, %41, %cst_34 {dimension_numbers = #tpu.dot_dimension_numbers<[1], [0], [0], [1], [0, 0, 1, 1], [], []>} : vector<224x8xbf16>, vector<8x128xbf16>, vector<224x128xf32> -> vector<224x128xf32>
    %43 = arith.addf %39, %42 : vector<224x128xf32>
    %c0_35 = arith.constant 0 : index
    %c0_36 = arith.constant 0 : index
    %44 = vector.load %arg5[%c0_35, %c0_36] : memref<224x128xf32, #tpu.memory_space<vmem>>, vector<224x128xf32>
    tpu.vector_store %arg5[%c0_35, %c0_36], %43 {strides = array<i32>} : memref<224x128xf32, #tpu.memory_space<vmem>>, vector<224x128xf32>,
    %45 = vector.extract_strided_slice %36 {offsets = [0, 1, 0], sizes = [14, 16, 8], strides = [1, 1, 1]} : vector<14x18x8xbf16> to vector<14x16x8xbf16>
    %46 = vector.shape_cast %45 : vector<14x16x8xbf16> to vector<224x8xbf16>
    %c0_37 = arith.constant 0 : index
    %c0_38 = arith.constant 0 : index
    %47 = vector.load %arg5[%c0_37, %c0_38] : memref<224x128xf32, #tpu.memory_space<vmem>>, vector<224x128xf32>
    %c4 = arith.constant 4 : index
    %c0_39 = arith.constant 0 : index
    %c0_40 = arith.constant 0 : index
    %48 = vector.load %arg3[%c4, %c0_39, %c0_40] : memref<9x8x128xbf16, #tpu.memory_space<vmem>>, vector<1x8x128xbf16>
    %49 = vector.shape_cast %48 : vector<1x8x128xbf16> to vector<8x128xbf16>
    %cst_41 = arith.constant dense<0.000000e+00> : vector<224x128xf32>
    %50 = tpu.matmul %46, %49, %cst_41 {dimension_numbers = #tpu.dot_dimension_numbers<[1], [0], [0], [1], [0, 0, 1, 1], [], []>} : vector<224x8xbf16>, vector<8x128xbf16>, vector<224x128xf32> -> vector<224x128xf32>
    %51 = arith.addf %47, %50 : vector<224x128xf32>
    %c0_42 = arith.constant 0 : index
    %c0_43 = arith.constant 0 : index
    %52 = vector.load %arg5[%c0_42, %c0_43] : memref<224x128xf32, #tpu.memory_space<vmem>>, vector<224x128xf32>
    tpu.vector_store %arg5[%c0_42, %c0_43], %51 {strides = array<i32>} : memref<224x128xf32, #tpu.memory_space<vmem>>, vector<224x128xf32>,
    %53 = vector.extract_strided_slice %36 {offsets = [0, 2, 0], sizes = [14, 16, 8], strides = [1, 1, 1]} : vector<14x18x8xbf16> to vector<14x16x8xbf16>
    %54 = vector.shape_cast %53 : vector<14x16x8xbf16> to vector<224x8xbf16>
    %c0_44 = arith.constant 0 : index
    %c0_45 = arith.constant 0 : index
    %55 = vector.load %arg5[%c0_44, %c0_45] : memref<224x128xf32, #tpu.memory_space<vmem>>, vector<224x128xf32>
    %c5 = arith.constant 5 : index
    %c0_46 = arith.constant 0 : index
    %c0_47 = arith.constant 0 : index
    %56 = vector.load %arg3[%c5, %c0_46, %c0_47] : memref<9x8x128xbf16, #tpu.memory_space<vmem>>, vector<1x8x128xbf16>
    %57 = vector.shape_cast %56 : vector<1x8x128xbf16> to vector<8x128xbf16>
    %cst_48 = arith.constant dense<0.000000e+00> : vector<224x128xf32>
    %58 = tpu.matmul %54, %57, %cst_48 {dimension_numbers = #tpu.dot_dimension_numbers<[1], [0], [0], [1], [0, 0, 1, 1], [], []>} : vector<224x8xbf16>, vector<8x128xbf16>, vector<224x128xf32> -> vector<224x128xf32>
    %59 = arith.addf %55, %58 : vector<224x128xf32>
    %c0_49 = arith.constant 0 : index
    %c0_50 = arith.constant 0 : index
    %60 = vector.load %arg5[%c0_49, %c0_50] : memref<224x128xf32, #tpu.memory_space<vmem>>, vector<224x128xf32>
    tpu.vector_store %arg5[%c0_49, %c0_50], %59 {strides = array<i32>} : memref<224x128xf32, #tpu.memory_space<vmem>>, vector<224x128xf32>,
    %c2_i32 = arith.constant 2 : i32
    %61 = arith.addi %0, %c2_i32 : i32
    %c0_51 = arith.constant 0 : index
    %62 = arith.index_cast %61 : i32 to index
    %c0_52 = arith.constant 0 : index
    %c0_53 = arith.constant 0 : index
    %63 = vector.load %arg2[%c0_51, %62, %c0_52, %c0_53] : memref<1x16x18x8xbf16, #tpu.memory_space<vmem>>, vector<1x14x18x8xbf16>
    %64 = vector.shape_cast %63 : vector<1x14x18x8xbf16> to vector<14x18x8xbf16>
    %65 = vector.extract_strided_slice %64 {offsets = [0, 0, 0], sizes = [14, 16, 8], strides = [1, 1, 1]} : vector<14x18x8xbf16> to vector<14x16x8xbf16>
    %66 = vector.shape_cast %65 : vector<14x16x8xbf16> to vector<224x8xbf16>
    %c0_54 = arith.constant 0 : index
    %c0_55 = arith.constant 0 : index
    %67 = vector.load %arg5[%c0_54, %c0_55] : memref<224x128xf32, #tpu.memory_space<vmem>>, vector<224x128xf32>
    %c6 = arith.constant 6 : index
    %c0_56 = arith.constant 0 : index
    %c0_57 = arith.constant 0 : index
    %68 = vector.load %arg3[%c6, %c0_56, %c0_57] : memref<9x8x128xbf16, #tpu.memory_space<vmem>>, vector<1x8x128xbf16>
    %69 = vector.shape_cast %68 : vector<1x8x128xbf16> to vector<8x128xbf16>
    %cst_58 = arith.constant dense<0.000000e+00> : vector<224x128xf32>
    %70 = tpu.matmul %66, %69, %cst_58 {dimension_numbers = #tpu.dot_dimension_numbers<[1], [0], [0], [1], [0, 0, 1, 1], [], []>} : vector<224x8xbf16>, vector<8x128xbf16>, vector<224x128xf32> -> vector<224x128xf32>
    %71 = arith.addf %67, %70 : vector<224x128xf32>
    %c0_59 = arith.constant 0 : index
    %c0_60 = arith.constant 0 : index
    %72 = vector.load %arg5[%c0_59, %c0_60] : memref<224x128xf32, #tpu.memory_space<vmem>>, vector<224x128xf32>
    tpu.vector_store %arg5[%c0_59, %c0_60], %71 {strides = array<i32>} : memref<224x128xf32, #tpu.memory_space<vmem>>, vector<224x128xf32>,
    %73 = vector.extract_strided_slice %64 {offsets = [0, 1, 0], sizes = [14, 16, 8], strides = [1, 1, 1]} : vector<14x18x8xbf16> to vector<14x16x8xbf16>
    %74 = vector.shape_cast %73 : vector<14x16x8xbf16> to vector<224x8xbf16>
    %c0_61 = arith.constant 0 : index
    %c0_62 = arith.constant 0 : index
    %75 = vector.load %arg5[%c0_61, %c0_62] : memref<224x128xf32, #tpu.memory_space<vmem>>, vector<224x128xf32>
    %c7 = arith.constant 7 : index
    %c0_63 = arith.constant 0 : index
    %c0_64 = arith.constant 0 : index
    %76 = vector.load %arg3[%c7, %c0_63, %c0_64] : memref<9x8x128xbf16, #tpu.memory_space<vmem>>, vector<1x8x128xbf16>
    %77 = vector.shape_cast %76 : vector<1x8x128xbf16> to vector<8x128xbf16>
    %cst_65 = arith.constant dense<0.000000e+00> : vector<224x128xf32>
    %78 = tpu.matmul %74, %77, %cst_65 {dimension_numbers = #tpu.dot_dimension_numbers<[1], [0], [0], [1], [0, 0, 1, 1], [], []>} : vector<224x8xbf16>, vector<8x128xbf16>, vector<224x128xf32> -> vector<224x128xf32>
    %79 = arith.addf %75, %78 : vector<224x128xf32>
    %c0_66 = arith.constant 0 : index
    %c0_67 = arith.constant 0 : index
    %80 = vector.load %arg5[%c0_66, %c0_67] : memref<224x128xf32, #tpu.memory_space<vmem>>, vector<224x128xf32>
    tpu.vector_store %arg5[%c0_66, %c0_67], %79 {strides = array<i32>} : memref<224x128xf32, #tpu.memory_space<vmem>>, vector<224x128xf32>,
    %81 = vector.extract_strided_slice %64 {offsets = [0, 2, 0], sizes = [14, 16, 8], strides = [1, 1, 1]} : vector<14x18x8xbf16> to vector<14x16x8xbf16>
    %82 = vector.shape_cast %81 : vector<14x16x8xbf16> to vector<224x8xbf16>
    %c0_68 = arith.constant 0 : index
    %c0_69 = arith.constant 0 : index
    %83 = vector.load %arg5[%c0_68, %c0_69] : memref<224x128xf32, #tpu.memory_space<vmem>>, vector<224x128xf32>
    %c8 = arith.constant 8 : index
    %c0_70 = arith.constant 0 : index
    %c0_71 = arith.constant 0 : index
    %84 = vector.load %arg3[%c8, %c0_70, %c0_71] : memref<9x8x128xbf16, #tpu.memory_space<vmem>>, vector<1x8x128xbf16>
    %85 = vector.shape_cast %84 : vector<1x8x128xbf16> to vector<8x128xbf16>
    %cst_72 = arith.constant dense<0.000000e+00> : vector<224x128xf32>
    %86 = tpu.matmul %82, %85, %cst_72 {dimension_numbers = #tpu.dot_dimension_numbers<[1], [0], [0], [1], [0, 0, 1, 1], [], []>} : vector<224x8xbf16>, vector<8x128xbf16>, vector<224x128xf32> -> vector<224x128xf32>
    %87 = arith.addf %83, %86 : vector<224x128xf32>
    %c0_73 = arith.constant 0 : index
    %c0_74 = arith.constant 0 : index
    %88 = vector.load %arg5[%c0_73, %c0_74] : memref<224x128xf32, #tpu.memory_space<vmem>>, vector<224x128xf32>
    tpu.vector_store %arg5[%c0_73, %c0_74], %87 {strides = array<i32>} : memref<224x128xf32, #tpu.memory_space<vmem>>, vector<224x128xf32>,
    return
  }
  func.func @transform_0(%arg0: i32, %arg1: i32) -> (i32, i32, i32, i32) {
    %c0_i32 = arith.constant 0 : i32
    %c0_i32_0 = arith.constant 0 : i32
    %c0_i32_1 = arith.constant 0 : i32
    %c0_i32_2 = arith.constant 0 : i32
    return %arg0, %c0_i32, %c0_i32_0, %c0_i32_1 : i32, i32, i32, i32
  }
  func.func @transform_1(%arg0: i32, %arg1: i32) -> (i32, i32, i32) {
    %c0_i32 = arith.constant 0 : i32
    %c0_i32_0 = arith.constant 0 : i32
    %c0_i32_1 = arith.constant 0 : i32
    %c0_i32_2 = arith.constant 0 : i32
    return %c0_i32, %c0_i32_0, %c0_i32_1 : i32, i32, i32
  }
  func.func @transform_2(%arg0: i32, %arg1: i32) -> (i32, i32) {
    %c0_i32 = arith.constant 0 : i32
    %c0_i32_0 = arith.constant 0 : i32
    %c0_i32_1 = arith.constant 0 : i32
    return %c0_i32, %c0_i32_0 : i32, i32
  }
  func.func @transform_3(%arg0: i32, %arg1: i32) -> (i32, i32) {
    %c1_i32 = arith.constant 1 : i32
    %0 = arith.muli %arg0, %c1_i32 : i32
    %1 = arith.addi %0, %arg1 : i32
    %c0_i32 = arith.constant 0 : i32
    %c0_i32_0 = arith.constant 0 : i32
    return %1, %c0_i32 : i32, i32
  }
}

</mosaic_0001>

<bundles_post_ra>
// kernel: complex_conv2d.1
= control target key start
LH: loop header
LB: loop body
LE: loop exit
PB: predicated region body
PF: predicated region fallthrough
CT: control target
= control target key end

     0   :  { %s5662_s12 = smov 0   ;;  %s5664_s13 = smov 0   ;;  %s7894_s0 = inlined_call_operand.vmem [shape: bf16[2,16,18,8], index: 0, kind: input, shape index: {}]   ;;  %s7895_s1 = inlined_call_operand.vmem [shape: bf16[9,8,128], index: 1, kind: input, shape index: {}]   ;;  %s7896_s2 = inlined_call_operand.vmem [shape: f32[1,128], index: 2, kind: input, shape index: {}]   ;;  %s7897_s3 = inlined_call_operand.vmem [shape: f32[448,128], index: 3, kind: output, shape index: {}]  }
   0x1   :  { %s5666_s14 = smov 0  }
   0x2 LB: > { %s25_s15 = sadd.s32 1, %s5636_s13  ;;  %p4742_p0 = scmp.ge.s32.totalorder %s5640_s14, 1  ;;  %s5640_s14 = sphi %s5666_s14, %s13_s14   ;;  %s5636_s13 = sphi %s5664_s13, %s8135_s13   ;;  %s5632_s12 = sphi %s5662_s12, %s8134_s12  }
   0x3   : > { %p27_p1 = scmp.ge.s32.totalorder %s25_s15, 2  ;;  %p151_p2 = scmp.lt.s32.totalorder %s5640_s14, 3 }
   0x5   : > { %s8137_s15 = smov (%p27_p1, %s25_s15), 0  ;;  %p152_p3 = pnand %p4742_p0, %p151_p2 }
   0x7   : > { %155 = sbr.rel (%p152_p3) target bundleno = 515 (0x203), region = 32 }
   0xc   : > { %v299_v0 = vld [vmem:[%s7895_s1] sm:$0xf]  ;;  %vm413_vm0 = vcmask 1043456   ;;  %p176_p4 = scmp.lt.s32.totalorder %s5632_s12, 1  ;;  %v4774_v2 = vld [vmem:[%s7895_s1 + $0x4] sm:$0xf] }
   0xd   : > { %5542 = vmatprep.subr.msk.bf16.mxu1 %vm413_vm0, %v299_v0  ;;  %5541 = vmatprep.subr.msk.bf16.mxu0 %vm413_vm0, %v299_v0  ;;  %v415_v1 = vsel %vm413_vm0, %v299_v0, 0  ;;  %v4817_v3 = vld [vmem:[%s7895_s1 + $0x8] sm:$0xf]  ;;  %v5701_v4 = vld [vmem:[%s7895_s1 + $0xc] sm:$0xf]  ;;  %vm370_vm1 = vcmask 64512  }
   0xe   : > { %5540 = vmatpush3.bf16.msra.mxu1 %v415_v1  ;;  %5270 = vmatpush3.bf16.msra.mxu0 %v415_v1  ;;  %s177_s22 = scalar_select %p176_p4, %s5632_s12, 1  ;;  %v5706_v5 = vld [vmem:[%s7895_s1 + $0x10] sm:$0xf]  ;;  %v5711_v6 = vld [vmem:[%s7895_s1 + $0x14] sm:$0xf]  ;;  %v5714_v7 = vsel %vm413_vm0, %v4774_v2, 0 }
   0xf   : > { %5543 = vmatprep.subr.msk.bf16.mxu1 %vm413_vm0, %v4774_v2  ;;  %5544 = vmatprep.subr.msk.bf16.mxu0 %vm413_vm0, %v4817_v3  ;;  %v5717_v8 = vsel %vm413_vm0, %v4817_v3, 0  ;;  %v5722_v9 = vld [vmem:[%s7895_s1 + $0x18] sm:$0xf]  ;;  %v5731_v10 = vsel %vm413_vm0, %v5701_v4, 0  ;;  %v5735_v11 = vsel %vm413_vm0, %v5706_v5, 0  ;;  %v5739_v12 = vsel %vm413_vm0, %v5711_v6, 0 }
  0x10   : > { %s5551_s27 = smul.u32 192, %s177_s22  ;;  %7927 = vst [vmem:[#allocation2_spill] sm:$0xff] %v5739_v12  ;;  %v5743_v13 = vsel %vm413_vm0, %v5722_v9, 0  ;;  %vm618_vm2 = vsmask.f32 3328  ;;  %vm1289_vm4 = vcmask 1042432  }
  0x11   : > { %7928 = vst [vmem:[#allocation3_spill] sm:$0xff] %v5743_v13  ;;  %vm619_vm3 = vsmask.f32 7440  ;;  %vm1290_vm5 = vcmask 1046532   ;;  %s182_s16 = smul.u32 28, %s5632_s12 }
  0x12   : > { %s5727_s7 = scalar_lea.vmem %s7894_s0, %s5551_s27  ;;  %vm5921_vm6 = vmor %vm618_vm2, %vm619_vm3 }
  0x13   : > { %v5746_v14 = vld [vmem:[%s5727_s7] sm:$0xf]  ;;  %v5749_v15 = vld [vmem:[%s5727_s7 + $0x4] sm:$0xf]  ;;  %v5772_v30 = vld [vmem:[%s5727_s7 + $0xc] sm:$0xf] }
  0x14   : > { %v5752_v16 = vld [vmem:[%s5727_s7 + $0x60] sm:$0xf]  ;;  %v4746_v17 = vcombine.low %v5746_v14, %v5749_v15  ;;  %v622_v18 = vshrl.u32 %v5746_v14, 16  ;;  %v625_v19 = vshll.u32 %v5746_v14, 16  ;;  %v631_v20 = vshll.u32 %v5749_v15, 16  ;;  %vm5936_vm7 = vmor %vm1289_vm4, %vm1290_vm5  ;;  %p6972_p5 = scmp.lt.s32.totalorder %s182_s16, 55 }
  0x15   : > { %v5760_v21 = vld [vmem:[%s5727_s7 + $0x64] sm:$0xf]  ;;  %v635_v22 = vshrl.u32 %v5749_v15, 16  ;;  %v4803_v23 = vrot.slane %v5746_v14, 9  ;;  %v1294_v24 = vrot.slane %v5749_v15, 5  ;;  %v814_v29 = vshrl.u32 %v5752_v16, 16 }
  0x16   : > { %v4754_v25 = vcombine.low %v5752_v16, %v5760_v21  ;;  %5271 = vmatprep.mubr.msk.bf16.mxu0 %vm370_vm1, %v4746_v17  ;;  %v624_v26 = vrot.slane %v622_v18, 4  ;;  %v627_v27 = vrot.slane %v625_v19, 5  ;;  %v5768_v28 = vrot.slane %v631_v20, 5  ;;  %v5782_v35 = vld [vmem:[%s5727_s7 + $0x10] sm:$0xf]  ;;  %s8139_s16 = smov (!%p6972_p5, %s182_s16), 55 }
  0x17   : > { %v637_v31 = vrot.slane %v635_v22, 4  ;;  %v5776_v32 = vrot.slane %v1294_v24, 4  ;;  %v817_v33 = vshll.u32 %v5752_v16, 16  ;;  %v823_v34 = vshll.u32 %v5760_v21, 16  ;;  %v5791_v44 = vld [vmem:[%s5727_s7 + $0x6c] sm:$0xf] }
  0x18   : > { %5287 = vmatprep.mubr.msk.bf16.mxu1 %vm370_vm1, %v4754_v25  ;;  %v628_v36 = vor.u32 %v627_v27, %v624_v26  ;;  %v816_v37 = vrot.slane %v814_v29, 4  ;;  %v827_v38 = vshrl.u32 %v5760_v21, 16  ;;  %v7898_v43 = vrot.slane %v5760_v21, 5  ;;  %v5799_v49 = vld [vmem:[%s5727_s7 + $0x70] sm:$0xf]  ;;  %s4744_s19 = sshll.u32 %s8139_s16, 3 }
  0x19   : > { %v638_v40 = vor.u32 %v637_v31, %v5768_v28  ;;  %v819_v41 = vrot.slane %v817_v33, 5  ;;  %v5787_v42 = vrot.slane %v823_v34, 5  ;;  %v4747_v47 = vcombine.low %v5772_v30, %v5782_v35  ;;  %v5809_v54 = vld [vmem:[%s5727_s7 + $0x18] sm:$0xf]  ;;  %v5812_v55 = vld [vmem:[%s5727_s7 + $0x1c] sm:$0xf]  ;;  %s7053_s22 = scalar_lea.vmem %s7897_s3, %s4744_s19 }
  0x1a   : > { %v5793_v45 = vrot.slane %v628_v36, 4  ;;  %v829_v46 = vrot.slane %v827_v38, 4  ;;  %v646_v48 = vshrl.u32 %v5772_v30, 16  ;;  %v5805_v52 = vrot.slane %v7898_v43, 4  ;;  %v5819_v60 = vld [vmem:[%s5727_s7 + $0x78] sm:$0xf] }
  0x1b   : > { %v5801_v50 = vrot.slane %v638_v40, 4  ;;  %v820_v51 = vor.u32 %v819_v41, %v816_v37  ;;  %v649_v53 = vshll.u32 %v5772_v30, 16  ;;  %5272 = vmatmul.mubr.msk.bf16.vlgmr.msra.gmra.mxu0 %vm370_vm1, %v4747_v47  ;;  %v655_v58 = vshll.u32 %v5782_v35, 16  ;;  %v5827_v1 = vld [vmem:[%s5727_s7 + $0x7c] sm:$0xf] }
  0x1c   : > { %v830_v56 = vor.u32 %v829_v46, %v5787_v42  ;;  %v648_v57 = vrot.slane %v646_v48, 4  ;;  %v659_v59 = vshrl.u32 %v5782_v35, 16  ;;  %v7899_v0 = vrot.slane %v5782_v35, 5  ;;  %5330 = vmatpush3.bf16.msra.mxu0 %v5717_v8  ;;  %v5836_v19 = vld [vmem:[%s5727_s7 + $0x24] sm:$0xf] }
  0x1d   : > { %v5821_v61 = vrot.slane %v820_v51, 4  ;;  %v651_v62 = vrot.slane %v649_v53, 5  ;;  %v5831_v3 = vrot.slane %v655_v58, 5  ;;  %v4755_v18 = vcombine.low %v5791_v44, %v5799_v49  ;;  %v5839_v20 = vld [vmem:[%s5727_s7 + $0x28] sm:$0xf]  ;;  %5546 = vmatprep.subr.msk.bf16.mxu0 %vm413_vm0, %v5706_v5 }
  0x1e   : > { %v5829_v2 = vrot.slane %v830_v56, 4  ;;  %v661_v17 = vrot.slane %v659_v59, 4  ;;  %v5845_v22 = vrot.slane %v7899_v0, 4  ;;  %v5850_v27 = vld [vmem:[%s5727_s7 + $0x84] sm:$0xf]  ;;  %v4748_v5 = vcombine.low %v5809_v54, %v5812_v55 }
  0x1f   : > { %v652_v8 = vor.u32 %v651_v62, %v648_v57  ;;  %5288 = vmatmul.mubr.msk.bf16.vlgmr.msra.gmra.mxu1 %vm370_vm1, %v4755_v18  ;;  %v670_v33 = vshrl.u32 %v5809_v54, 16  ;;  %v5859_v34 = vld [vmem:[%s5727_s7 + $0x88] sm:$0xf]  ;;  %v5862_v36 = vld [vmem:[%s5727_s7 + $0x30] sm:$0xf]  ;;  %v673_v38 = vshll.u32 %v5809_v54, 16  ;;  %v4756_v41 = vcombine.low %v5819_v60, %v5827_v1 }
  0x20   : > { %v662_v29 = vor.u32 %v661_v17, %v5831_v3  ;;  %5300 = vmatpush3.bf16.msra.mxu1 %v5714_v7  ;;  %v5872_v46 = vld [vmem:[%s5727_s7 + $0x34] sm:$0xf]  ;;  %5275 = vmatprep.mubr.msk.bf16.mxu0 %vm370_vm1, %v4748_v5  ;;  %v5881_v53 = vld [vmem:[%s5727_s7 + $0x90] sm:$0xf]  ;;  %v4749_v56 = vcombine.low %v5836_v19, %v5839_v20  ;;  %v4757_v17 = vcombine.low %v5850_v27, %v5859_v34  ;;  %v5909_v7 = vld [vmem:[%s5727_s7 + $0x40] sm:$0xf] }
  0x21   : > { %v5864_v37 = vrot.slane %v652_v8, 4  ;;  %5545 = vmatprep.subr.msk.bf16.mxu1 %vm413_vm0, %v5701_v4  ;;  %5291 = vmatprep.mubr.msk.bf16.mxu1 %vm370_vm1, %v4756_v41  ;;  %v5892_v62 = vld [vmem:[%s5727_s7 + $0x94] sm:$0xf]  ;;  %v4750_v5 = vcombine.low %v5862_v36, %v5872_v46  ;;  %v5917_v51 = vld [vmem:[%s5727_s7 + $0x9c] sm:$0xf]  ;;  %v634_v8 = vsel %vm5921_vm6, %v5793_v45, %v5768_v28  ;;  %v1295_v28 = vsel %vm5936_vm7, %v4803_v23, %v1294_v24 }
  0x22   : > { %v5874_v47 = vrot.slane %v662_v29, 4  ;;  %7929 = vst [vmem:[#allocation4_spill] sm:$0xff] %v5892_v62  ;;  %v5900_v29 = vld [vmem:[%s5727_s7 + $0x3c] sm:$0xf]  ;;  %v4758_v18 = vcombine.low %v5881_v53, %v5892_v62  ;;  %7930 = vst [vmem:[#allocation5_spill] sm:$0xff] %v5917_v51  ;;  %v672_v14 = vrot.slane %v670_v33, 4 }
  0x23   : > { %5276 = vmatmul.mubr.msk.bf16.gmra.mxu0 %vm370_vm1, %v4749_v56  ;;  %v4751_v31 = vcombine.low %v5900_v29, %v5909_v7  ;;  %v5932_v26 = vld [vmem:[%s5727_s7 + $0xa0] sm:$0xf]  ;;  %v5947_v43 = vld [vmem:[%s5727_s7 + $0x48] sm:$0xf]  ;;  %v5951_v39 = vld [vmem:[%s5727_s7 + $0x4c] sm:$0xf]  ;;  %v658_v56 = vsel %vm5921_vm6, %v5864_v37, %v5831_v3 }
  0x24   : > { %5279 = vmatprep.mubr.msk.bf16.mxu0 %vm370_vm1, %v4750_v5  ;;  %7933 = vst [vmem:[#allocation6_spill] sm:$0xff] %v5932_v26  ;;  %v4759_v5 = vcombine.low %v5917_v51, %v5932_v26  ;;  %v231_v63 = vld [vmem:[%s5727_s7 + $0x8] sm:$0x1]  ;;  %v5968_v0 = vld [vmem:[%s5727_s7 + $0x54] sm:$0xf]  ;;  %v675_v15 = vrot.slane %v673_v38, 5 }
  0x25   : > { %v5971_v41 = vld [vmem:[%s5727_s7 + $0x58] sm:$0xf]  ;;  %v234_v59 = vld [vmem:[%s5727_s7 + $0x14] sm:$0x1]  ;;  %v5986_v40 = vld [vmem:[%s5727_s7 + $0x20] sm:$0x1] }
  0x26   : > { %v4753_v45 = vcombine.low %v5968_v0, %v5971_v41  ;;  %v665_v57 = vshll.u32 %v234_v59, 16  ;;  %v679_v23 = vshll.u32 %v5812_v55, 16  ;;  %v7936_v24 = vshrl.u32 %v5812_v55, 16  ;;  %v6007_v62 = vld [vmem:[%s5727_s7 + $0x2c] sm:$0x1] }
  0x27   : > { %5292 = vmatmul.mubr.msk.bf16.gmra.mxu1 %vm370_vm1, %v4757_v17  ;;  %v641_v17 = vshll.u32 %v231_v63, 16  ;;  %v689_v4 = vshll.u32 %v5986_v40, 16  ;;  %v676_v13 = vor.u32 %v675_v15, %v672_v14  ;;  %v7937_v38 = vshrl.u32 %v5836_v19, 16 }
  0x28   : > { %5295 = vmatprep.mubr.msk.bf16.mxu1 %vm370_vm1, %v4758_v18  ;;  %v4752_v18 = vcombine.low %v5947_v43, %v5951_v39  ;;  %v685_v37 = vrot.slane %v7936_v24, 4  ;;  %v667_v3 = vrot.slane %v665_v57, 5  ;;  %v681_v26 = vrot.slane %v679_v23, 5 }
  0x29   : > { %v643_v58 = vrot.slane %v641_v17, 5  ;;  %v1297_v17 = vrot.slane %v231_v63, 5  ;;  %v696_v12 = vrot.slane %v7937_v38, 4  ;;  %v691_v51 = vrot.slane %v689_v4, 5 }
  0x2a   : > { %v677_v63 = vrot.slane %v676_v13, 4  ;;  %v7939_v14 = vshrl.u32 %v5839_v20, 16  ;;  %v713_v13 = vshll.u32 %v6007_v62, 16 }
  0x2b   : > { %5280 = vmatmul.mubr.msk.bf16.gmra.mxu0 %vm370_vm1, %v4751_v31  ;;  %v644_v33 = vsel %vm5921_vm6, %v5801_v50, %v643_v58  ;;  %v1298_v24 = vsel %vm5936_vm7, %v5776_v32, %v1297_v17  ;;  %v668_v50 = vsel %vm5921_vm6, %v5874_v47, %v667_v3  ;;  %v7938_v58 = vshll.u32 %v5836_v19, 16 }
  0x2c   : > { %5283 = vmatprep.mubr.msk.bf16.mxu0 %vm370_vm1, %v4752_v18  ;;  %v4775_v31 = vcombine.low %v634_v8, %v644_v33  ;;  %v4818_v57 = vcombine.low %v1295_v28, %v1298_v24  ;;  %v4776_v4 = vcombine.low %v658_v56, %v668_v50  ;;  %v686_v8 = vor.u32 %v685_v37, %v681_v26  ;;  %v6031_v50 = vld [vmem:[%s5727_s7 + $0x38] sm:$0x1] }
  0x2d   : > { %v699_v18 = vrot.slane %v7938_v58, 5  ;;  %v703_v32 = vshll.u32 %v5839_v20, 16  ;;  %v709_v15 = vrot.slane %v7939_v14, 4  ;;  %v7940_v47 = vrot.slane %v5782_v35, 5 }
  0x2e   : > { %v7941_v28 = vrot.slane %v5772_v30, 9  ;;  %v687_v56 = vrot.slane %v686_v8, 4  ;;  %v1304_v17 = vrot.slane %v234_v59, 5  ;;  %v7942_v33 = vshrl.u32 %v5862_v36, 16 }
  0x2f   : > { %5296 = vmatmul.mubr.msk.bf16.gmra.mxu1 %vm370_vm1, %v4759_v5  ;;  %v682_v5 = vsel %vm5921_vm6, %v677_v63, %v681_v26  ;;  %v700_v23 = vor.u32 %v699_v18, %v696_v12  ;;  %v705_v37 = vrot.slane %v703_v32, 5  ;;  %v715_v24 = vrot.slane %v713_v13, 5 }
  0x30   : > { %5301 = vmatprep.mubr.msk.bf16.mxu1 %vm370_vm1, %v4775_v31  ;;  %v1302_v3 = vsel %vm5936_vm7, %v7941_v28, %v7940_v47  ;;  %v720_v38 = vrot.slane %v7942_v33, 4  ;;  %v7943_v12 = vshll.u32 %v5862_v36, 16  ;;  %v727_v35 = vshll.u32 %v5872_v46, 16 }
  0x31   : > { %v701_v31 = vrot.slane %v700_v23, 4  ;;  %v692_v30 = vsel %vm5921_vm6, %v687_v56, %v691_v51  ;;  %v710_v63 = vor.u32 %v709_v15, %v705_v37  ;;  %v1305_v59 = vsel %vm5936_vm7, %v5845_v22, %v1304_v17 }
  0x32   : > { %v723_v26 = vrot.slane %v7943_v12, 5  ;;  %v7944_v58 = vshrl.u32 %v5872_v46, 16  ;;  %v4777_v8 = vcombine.low %v682_v5, %v692_v30  ;;  %v4819_v14 = vcombine.low %v1302_v3, %v1305_v59 }
  0x33   : > { %5284 = vmatmul.mubr.msk.bf16.gmra.mxu0 %vm370_vm1, %v4753_v45  ;;  %v706_v32 = vsel %vm5921_vm6, %v701_v31, %v705_v37  ;;  %v711_v23 = vrot.slane %v710_v63, 4  ;;  %v729_v13 = vrot.slane %v727_v35, 5  ;;  %v737_v51 = vshll.u32 %v6031_v50, 16 }
  0x34   : > { %v733_v18 = vrot.slane %v7944_v58, 4  ;;  %5331 = vmatprep.mubr.msk.bf16.mxu0 %vm370_vm1, %v4818_v57  ;;  %v724_v45 = vor.u32 %v723_v26, %v720_v38  ;;  %v4805_v15 = vrot.slane %v5809_v54, 9  ;;  %v1308_v47 = vrot.slane %v5812_v55, 5  ;;  %v6059_v54 = vld [vmem:[%s5727_s7 + $0x44] sm:$0x1] }
  0x35   : > { %v1311_v5 = vrot.slane %v5986_v40, 5  ;;  %v7945_v57 = vshrl.u32 %v5900_v29, 16  ;;  %v716_v3 = vsel %vm5921_vm6, %v711_v23, %v715_v24  ;;  %v739_v37 = vrot.slane %v737_v51, 5 }
  0x36   : > { %v725_v22 = vrot.slane %v724_v45, 4  ;;  %v734_v56 = vor.u32 %v733_v18, %v729_v13  ;;  %v4778_v55 = vcombine.low %v706_v32, %v716_v3  ;;  %v1309_v33 = vsel %vm5936_vm7, %v4805_v15, %v1308_v47  ;;  %v6081_v32 = vld [vmem:[%s5727_s7 + $0x50] sm:$0x1] }
  0x37   : > { %5302 = vmatmul.mubr.msk.bf16.vlgmr.msra.gmra.mxu1 %vm370_vm1, %v4776_v4  ;;  %v744_v28 = vrot.slane %v7945_v57, 4  ;;  %v7946_v4 = vshll.u32 %v5900_v29, 16  ;;  %v751_v24 = vshll.u32 %v5909_v7, 16  ;;  %v7947_v12 = vshrl.u32 %v5909_v7, 16 }
  0x38   : > { %5360 = vmatpush3.bf16.msra.mxu1 %v5731_v10  ;;  %5305 = vmatprep.mubr.msk.bf16.mxu1 %vm370_vm1, %v4777_v8  ;;  %v730_v40 = vsel %vm5921_vm6, %v725_v22, %v729_v13  ;;  %v1310_v10 = vrot.slane %v1308_v47, 4  ;;  %v735_v38 = vrot.slane %v734_v56, 4  ;;  %v761_v30 = vshll.u32 %v6059_v54, 16 }
  0x39   : > { %v747_v17 = vrot.slane %v7946_v4, 5  ;;  %5547 = vmatprep.subr.msk.bf16.mxu1 %vm413_vm0, %v5711_v6  ;;  %v757_v26 = vrot.slane %v7947_v12, 4  ;;  %v4806_v63 = vrot.slane %v5836_v19, 9  ;;  %v1315_v59 = vrot.slane %v5839_v20, 5 }
  0x3a   : > { %v1312_v35 = vsel %vm5936_vm7, %v1310_v10, %v1311_v5  ;;  %v740_v6 = vsel %vm5921_vm6, %v735_v38, %v739_v37  ;;  %v753_v8 = vrot.slane %v751_v24, 5  ;;  %v763_v23 = vrot.slane %v761_v30, 5  ;;  %v6112_v24 = vld [vmem:[%s5727_s7 + $0x5c] sm:$0x1] }
  0x3b   : > { %v748_v31 = vor.u32 %v747_v17, %v744_v28  ;;  %5332 = vmatmul.mubr.msk.bf16.vlgmr.msra.gmra.mxu0 %vm370_vm1, %v4819_v14  ;;  %v4820_v58 = vcombine.low %v1309_v33, %v1312_v35  ;;  %v4779_v45 = vcombine.low %v730_v40, %v740_v6  ;;  %v1316_v13 = vsel %vm5936_vm7, %v4806_v63, %v1315_v59 }
  0x3c   : > { %5390 = vmatpush3.bf16.msra.mxu0 %v5735_v11  ;;  %v1317_v19 = vrot.slane %v1315_v59, 4  ;;  %v758_v14 = vor.u32 %v757_v26, %v753_v8  ;;  %v1318_v51 = vrot.slane %v6007_v62, 5  ;;  %v7948_v15 = vshrl.u32 %v5947_v43, 16 }
  0x3d   : > { %v749_v18 = vrot.slane %v748_v31, 4  ;;  %5335 = vmatprep.mubr.msk.bf16.mxu0 %vm370_vm1, %v4820_v58  ;;  %5548 = vmatprep.subr.msk.bf16.mxu0 %vm413_vm0, %v5722_v9  ;;  %v7949_v11 = vshll.u32 %v5947_v43, 16  ;;  %v775_v5 = vshll.u32 %v5951_v39, 16  ;;  %v7950_v57 = vshrl.u32 %v5951_v39, 16 }
  0x3e   : > { %v768_v22 = vrot.slane %v7948_v15, 4  ;;  %v785_v3 = vshll.u32 %v6081_v32, 16  ;;  %v759_v62 = vrot.slane %v758_v14, 4  ;;  %v1319_v56 = vsel %vm5936_vm7, %v1317_v19, %v1318_v51  ;;  %v6130_v51 = vld [vmem:[%s5727_s7 + $0x68] sm:$0x1] }
  0x3f   : > { %v754_v20 = vsel %vm5921_vm6, %v749_v18, %v753_v8  ;;  %5306 = vmatmul.mubr.msk.bf16.gmra.mxu1 %vm370_vm1, %v4778_v55  ;;  %v771_v47 = vrot.slane %v7949_v11, 5  ;;  %v781_v28 = vrot.slane %v7950_v57, 4  ;;  %v4807_v9 = vrot.slane %v5862_v36, 9 }
  0x40   : > { %5309 = vmatprep.mubr.msk.bf16.mxu1 %vm370_vm1, %v4779_v45  ;;  %v1322_v37 = vrot.slane %v5872_v46, 5  ;;  %v4821_v4 = vcombine.low %v1316_v13, %v1319_v56  ;;  %v777_v55 = vrot.slane %v775_v5, 5  ;;  %v787_v40 = vrot.slane %v785_v3, 5 }
  0x41   : > { %v772_v17 = vor.u32 %v771_v47, %v768_v22  ;;  %v764_v33 = vsel %vm5921_vm6, %v759_v62, %v763_v23  ;;  %v1325_v31 = vrot.slane %v6031_v50, 5  ;;  %v7951_v46 = vshrl.u32 %v5968_v0, 16 }
  0x42   : > { %v1323_v10 = vsel %vm5936_vm7, %v4807_v9, %v1322_v37  ;;  %v1324_v38 = vrot.slane %v1322_v37, 4  ;;  %v4780_v12 = vcombine.low %v754_v20, %v764_v33  ;;  %v782_v36 = vor.u32 %v781_v28, %v777_v55  ;;  %v6159_v33 = vld [vmem:[%s5727_s7 + $0x74] sm:$0x1] }
  0x43   : > { %v773_v26 = vrot.slane %v772_v17, 4  ;;  %v792_v35 = vrot.slane %v7951_v46, 4  ;;  %5336 = vmatmul.mubr.msk.bf16.gmra.mxu0 %vm370_vm1, %v4821_v4  ;;  %v7952_v63 = vshll.u32 %v5968_v0, 16  ;;  %v799_v6 = vshll.u32 %v5971_v41, 16 }
  0x44   : > { %v1326_v30 = vsel %vm5936_vm7, %v1324_v38, %v1325_v31  ;;  %v7953_v50 = vshrl.u32 %v5971_v41, 16  ;;  %v783_v8 = vrot.slane %v782_v36, 4  ;;  %v809_v23 = vshll.u32 %v6112_v24, 16 }
  0x45   : > { %v795_v59 = vrot.slane %v7952_v63, 5  ;;  %v778_v18 = vsel %vm5921_vm6, %v773_v26, %v777_v55  ;;  %v4822_v45 = vcombine.low %v1323_v10, %v1326_v30  ;;  %v801_v19 = vrot.slane %v799_v6, 5 }
  0x46   : > { %v805_v58 = vrot.slane %v7953_v50, 4  ;;  %v4808_v20 = vrot.slane %v5900_v29, 9  ;;  %v1329_v14 = vrot.slane %v5909_v7, 5  ;;  %v788_v15 = vsel %vm5921_vm6, %v783_v8, %v787_v40 }
  0x47   : > { %v796_v13 = vor.u32 %v795_v59, %v792_v35  ;;  %5310 = vmatmul.mubr.msk.bf16.gmra.mxu1 %vm370_vm1, %v4780_v12  ;;  %5339 = vmatprep.mubr.msk.bf16.mxu0 %vm370_vm1, %v4822_v45  ;;  %v811_v22 = vrot.slane %v809_v23, 5  ;;  %v1332_v11 = vrot.slane %v6059_v54, 5  ;;  %v826_v47 = vsel %vm5921_vm6, %v5821_v61, %v5787_v42  ;;  %v6180_v45 = vld [vmem:[%s5727_s7 + $0x80] sm:$0x1] }
  0x48   : > { %v4781_v29 = vcombine.low %v778_v18, %v788_v15  ;;  %v806_v7 = vor.u32 %v805_v58, %v801_v19  ;;  %v1330_v57 = vsel %vm5936_vm7, %v4808_v20, %v1329_v14  ;;  %v1331_v28 = vrot.slane %v1329_v14, 4 }
  0x49   : > { %v797_v5 = vrot.slane %v796_v13, 4  ;;  %v833_v3 = vshll.u32 %v6130_v51, 16  ;;  %v4809_v62 = vrot.slane %v5947_v43, 9  ;;  %v1336_v56 = vrot.slane %v5951_v39, 5 }
  0x4a   : > { %5313 = vmatprep.mubr.msk.bf16.mxu1 %vm370_vm1, %v4781_v29  ;;  %v807_v42 = vrot.slane %v806_v7, 4  ;;  %v1339_v61 = vrot.slane %v6081_v32, 5  ;;  %v7954_v9 = vshrl.u32 %v5791_v44, 16  ;;  %v1333_v4 = vsel %vm5936_vm7, %v1331_v28, %v1332_v11 }
  0x4b   : > { %v802_v54 = vsel %vm5921_vm6, %v797_v5, %v801_v19  ;;  %v835_v17 = vrot.slane %v833_v3, 5  ;;  %v1337_v43 = vsel %vm5936_vm7, %v4809_v62, %v1336_v56  ;;  %v1338_v55 = vrot.slane %v1336_v56, 4 }
  0x4c   : > { %v840_v37 = vrot.slane %v7954_v9, 4  ;;  %v812_v39 = vsel %vm5921_vm6, %v807_v42, %v811_v22  ;;  %v4823_v40 = vcombine.low %v1330_v57, %v1333_v4  ;;  %v7955_v10 = vshll.u32 %v5791_v44, 16  ;;  %v6206_v9 = vld [vmem:[%s5727_s7 + $0x8c] sm:$0x1] }
  0x4d   : > { %v847_v38 = vshll.u32 %v5799_v49, 16  ;;  %v4782_v31 = vcombine.low %v802_v54, %v812_v39  ;;  %v836_v12 = vsel %vm5921_vm6, %v5829_v2, %v835_v17  ;;  %v1340_v26 = vsel %vm5936_vm7, %v1338_v55, %v1339_v61 }
  0x4e   : > { %v843_v32 = vrot.slane %v7955_v10, 5  ;;  %v7956_v36 = vshrl.u32 %v5799_v49, 16  ;;  %5340 = vmatmul.mubr.msk.bf16.gmra.mxu0 %vm370_vm1, %v4823_v40  ;;  %v4783_v35 = vcombine.low %v826_v47, %v836_v12  ;;  %v4824_v30 = vcombine.low %v1337_v43, %v1340_v26 }
  0x4f   : > { %v849_v59 = vrot.slane %v847_v38, 5  ;;  %5314 = vmatmul.mubr.msk.bf16.gmra.mxu1 %vm370_vm1, %v4782_v31  ;;  %v857_v6 = vshll.u32 %v6159_v33, 16  ;;  %v4810_v50 = vrot.slane %v5968_v0, 9  ;;  %v1343_v2 = vrot.slane %v5971_v41, 5 }
  0x50   : > { %v853_v46 = vrot.slane %v7956_v36, 4  ;;  %v844_v63 = vor.u32 %v843_v32, %v840_v37  ;;  %v1346_v58 = vrot.slane %v6112_v24, 5  ;;  %5317 = vmatprep.mubr.msk.bf16.mxu1 %vm370_vm1, %v4783_v35  ;;  %5343 = vmatprep.mubr.msk.bf16.mxu0 %vm370_vm1, %v4824_v30  ;;  %v7957_v23 = vshrl.u32 %v5819_v60, 16 }
  0x51   : > { %v7958_v19 = vshll.u32 %v5819_v60, 16  ;;  %v859_v14 = vrot.slane %v857_v6, 5  ;;  %v1344_v0 = vsel %vm5936_vm7, %v4810_v50, %v1343_v2  ;;  %v1345_v41 = vrot.slane %v1343_v2, 4 }
  0x52   : > { %v845_v18 = vrot.slane %v844_v63, 4  ;;  %v854_v8 = vor.u32 %v853_v46, %v849_v59  ;;  %v864_v13 = vrot.slane %v7957_v23, 4  ;;  %v871_v24 = vshll.u32 %v5827_v1, 16 }
  0x53   : > { %v867_v20 = vrot.slane %v7958_v19, 5  ;;  %v7959_v47 = vshrl.u32 %v5827_v1, 16  ;;  %v1347_v5 = vsel %vm5936_vm7, %v1345_v41, %v1346_v58  ;;  %v881_v57 = vshll.u32 %v6180_v45, 16 }
  0x54   : > { %v850_v15 = vsel %vm5921_vm6, %v845_v18, %v849_v59  ;;  %v855_v22 = vrot.slane %v854_v8, 4  ;;  %v873_v7 = vrot.slane %v871_v24, 5  ;;  %v7960_v28 = vrot.slane %v5760_v21, 5  ;;  %v6230_v59 = vld [vmem:[%s5727_s7 + $0x98] sm:$0x1] }
  0x55   : > { %v868_v11 = vor.u32 %v867_v20, %v864_v13  ;;  %v877_v29 = vrot.slane %v7959_v47, 4  ;;  %v7961_v3 = vrot.slane %v5752_v16, 9  ;;  %v4825_v54 = vcombine.low %v1344_v0, %v1347_v5  ;;  %v7967_v13 = vld [vmem:[#allocation4_spill] sm:$0xff] }
  0x56   : > { %v860_v56 = vsel %vm5921_vm6, %v855_v22, %v859_v14  ;;  %v1353_v61 = vrot.slane %v6130_v51, 5  ;;  %v883_v17 = vrot.slane %v881_v57, 5  ;;  %v7962_v43 = vshrl.u32 %v5850_v27, 16 }
  0x57   : > { %v1351_v62 = vsel %vm5936_vm7, %v7961_v3, %v7960_v28  ;;  %v869_v42 = vrot.slane %v868_v11, 4  ;;  %v4784_v37 = vcombine.low %v850_v15, %v860_v56  ;;  %v878_v4 = vor.u32 %v877_v29, %v873_v7  ;;  %5344 = vmatmul.mubr.msk.bf16.gmra.mxu0 %vm370_vm1, %v4825_v54  ;;  %v6253_v28 = vld [vmem:[%s5727_s7 + $0xa4] sm:$0x1] }
  0x58   : > { %v888_v21 = vrot.slane %v7962_v43, 4  ;;  %v1354_v55 = vsel %vm5936_vm7, %v5805_v52, %v1353_v61  ;;  %v7963_v39 = vshll.u32 %v5850_v27, 16  ;;  %v895_v40 = vshll.u32 %v5859_v34, 16 }
  0x59   : > { %v874_v16 = vsel %vm5921_vm6, %v869_v42, %v873_v7  ;;  %5318 = vmatmul.mubr.msk.bf16.gmra.mxu1 %vm370_vm1, %v4784_v37  ;;  %v879_v10 = vrot.slane %v878_v4, 4  ;;  %v4826_v32 = vcombine.low %v1351_v62, %v1354_v55  ;;  %v7964_v38 = vshrl.u32 %v5859_v34, 16  ;;  %v7969_v42 = vld [vmem:[#allocation5_spill] sm:$0xff] }
  0x5a   : > { %v891_v51 = vrot.slane %v7963_v39, 5  ;;  %v905_v12 = vshll.u32 %v6206_v9, 16  ;;  %v897_v36 = vrot.slane %v895_v40, 5  ;;  %v4812_v46 = vrot.slane %v5791_v44, 9 }
  0x5b   : > { %v901_v31 = vrot.slane %v7964_v38, 4  ;;  %v1357_v52 = vrot.slane %v5799_v49, 5  ;;  %v884_v35 = vsel %vm5921_vm6, %v879_v10, %v883_v17  ;;  %5347 = vmatprep.mubr.msk.bf16.mxu0 %vm370_vm1, %v4826_v32  ;;  %v1360_v63 = vrot.slane %v6159_v33, 5  ;;  %v7972_v17 = vld [vmem:[#allocation6_spill] sm:$0xff] }
  0x5c   : > { %v892_v26 = vor.u32 %v891_v51, %v888_v21  ;;  %v907_v30 = vrot.slane %v905_v12, 5  ;;  %v7965_v6 = vshrl.u32 %v5881_v53, 16  ;;  %v4785_v2 = vcombine.low %v874_v16, %v884_v35 }
  0x5d   : > { %v902_v18 = vor.u32 %v901_v31, %v897_v36  ;;  %v1358_v44 = vsel %vm5936_vm7, %v4812_v46, %v1357_v52  ;;  %v1359_v49 = vrot.slane %v1357_v52, 4  ;;  %v7966_v8 = vshll.u32 %v5881_v53, 16  ;;  %v6279_v46 = vld [vmem:[%s5727_s7 + $0x10] sm:$0xf] }
  0x5e   : > { %v912_v50 = vrot.slane %v7965_v6, 4  ;;  %v893_v58 = vrot.slane %v892_v26, 4  ;;  %v919_v19 = vshll.u32 %v7967_v13, 16  ;;  %v7968_v33 = vshrl.u32 %v7967_v13, 16  ;;  %5321 = vmatprep.mubr.msk.bf16.mxu1 %vm370_vm1, %v4785_v2 }
  0x5f   : > { %v915_v23 = vrot.slane %v7966_v8, 5  ;;  %v903_v0 = vrot.slane %v902_v18, 4  ;;  %v929_v41 = vshll.u32 %v6230_v59, 16  ;;  %v4813_v24 = vrot.slane %v5819_v60, 9 }
  0x60   : > { %v925_v20 = vrot.slane %v7968_v33, 4  ;;  %v898_v14 = vsel %vm5921_vm6, %v893_v58, %v897_v36  ;;  %v1361_v15 = vsel %vm5936_vm7, %v1359_v49, %v1360_v63  ;;  %v921_v11 = vrot.slane %v919_v19, 5  ;;  %v6276_v36 = vld [vmem:[%s5727_s7 + $0xc] sm:$0xf] }
  0x61   : > { %v916_v22 = vor.u32 %v915_v23, %v912_v50  ;;  %v1364_v47 = vrot.slane %v5827_v1, 5  ;;  %v908_v29 = vsel %vm5921_vm6, %v903_v0, %v907_v30  ;;  %v4827_v5 = vcombine.low %v1358_v44, %v1361_v15  ;;  %v6299_v23 = vld [vmem:[%s5727_s7 + $0x18] sm:$0xf]  ;;  %v6313_v15 = vld [vmem:[%s5727_s7 + $0x24] sm:$0xf] }
  0x62   : > { %v931_v7 = vrot.slane %v929_v41, 5  ;;  %v1367_v57 = vrot.slane %v6180_v45, 5  ;;  %v4786_v3 = vcombine.low %v898_v14, %v908_v29  ;;  %v926_v56 = vor.u32 %v925_v20, %v921_v11 }
  0x63   : > { %v917_v62 = vrot.slane %v916_v22, 4  ;;  %v1365_v60 = vsel %vm5936_vm7, %v4813_v24, %v1364_v47  ;;  %5348 = vmatmul.mubr.msk.bf16.gmra.mxu0 %vm370_vm1, %v4827_v5  ;;  %v1366_v54 = vrot.slane %v1364_v47, 4  ;;  %v7970_v1 = vshrl.u32 %v7969_v42, 16  ;;  %v6316_v22 = vld [vmem:[%s5727_s7 + $0x28] sm:$0xf] }
  0x64   : > { %v7971_v37 = vshll.u32 %v7969_v42, 16  ;;  %v943_v45 = vshll.u32 %v7972_v17, 16  ;;  %5322 = vmatmul.mubr.msk.bf16.gmra.mxu1 %vm370_vm1, %v4786_v3  ;;  %v927_v21 = vrot.slane %v926_v56, 4  ;;  %v7973_v16 = vshrl.u32 %v7972_v17, 16 }
  0x65   : > { %v936_v61 = vrot.slane %v7970_v1, 4  ;;  %v922_v43 = vsel %vm5921_vm6, %v917_v62, %v921_v11  ;;  %v953_v39 = vshll.u32 %v6253_v28, 16  ;;  %v1368_v51 = vsel %vm5936_vm7, %v1366_v54, %v1367_v57  ;;  %v6327_v57 = vld [vmem:[%s5727_s7 + $0x30] sm:$0xf] }
  0x66   : > { %v939_v4 = vrot.slane %v7971_v37, 5  ;;  %v949_v55 = vrot.slane %v7973_v16, 4  ;;  %v945_v10 = vrot.slane %v943_v45, 5  ;;  %v4814_v32 = vrot.slane %v5850_v27, 9 }
  0x67   : > { %v932_v38 = vsel %vm5921_vm6, %v927_v21, %v931_v7  ;;  %v4828_v31 = vcombine.low %v1365_v60, %v1368_v51  ;;  %v955_v12 = vrot.slane %v953_v39, 5  ;;  %v1371_v26 = vrot.slane %v5859_v34, 5  ;;  %v6324_v7 = vld [vmem:[%s5727_s7 + $0x14] sm:$0x1]  ;;  %v6351_v39 = vld [vmem:[%s5727_s7 + $0x20] sm:$0x1] }
  0x68   : > { %v940_v40 = vor.u32 %v939_v4, %v936_v61  ;;  %v4787_v52 = vcombine.low %v922_v43, %v932_v38  ;;  %v950_v30 = vor.u32 %v949_v55, %v945_v10  ;;  %v1374_v63 = vrot.slane %v6206_v9, 5  ;;  %v6354_v51 = vld [vmem:[%s5727_s7 + $0x3c] sm:$0xf] }
  0x69   : > { %5351 = vmatprep.mubr.msk.bf16.mxu0 %vm370_vm1, %v4828_v31  ;;  %v1372_v27 = vsel %vm5936_vm7, %v4814_v32, %v1371_v26  ;;  %v1373_v6 = vrot.slane %v1371_v26, 4  ;;  %v4815_v50 = vrot.slane %v5881_v53, 9  ;;  %v1378_v34 = vrot.slane %v7967_v13, 5  ;;  %v6302_v13 = vld [vmem:[%s5727_s7 + $0x1c] sm:$0xf] }
  0x6a   : > { %v941_v35 = vrot.slane %v940_v40, 4  ;;  %5325 = vmatprep.mubr.msk.bf16.mxu1 %vm370_vm1, %v4787_v52  ;;  %v951_v58 = vrot.slane %v950_v30, 4  ;;  %v1381_v18 = vrot.slane %v6230_v59, 5  ;;  %v4889_v9 = vcombine.low %v6276_v36, %v6279_v46  ;;  %v6359_v31 = vld [vmem:[%s5727_s7 + $0x40] sm:$0xf] }
  0x6b   : > { %v1375_v44 = vsel %vm5936_vm7, %v1373_v6, %v1374_v63  ;;  %v1379_v53 = vsel %vm5936_vm7, %v4815_v50, %v1378_v34  ;;  %v1380_v49 = vrot.slane %v1378_v34, 4  ;;  %v2101_v8 = vshrl.u32 %v6276_v36, 16 }
  0x6c   : > { %v946_v2 = vsel %vm5921_vm6, %v941_v35, %v945_v10  ;;  %v956_v59 = vsel %vm5921_vm6, %v951_v58, %v955_v12  ;;  %v4829_v19 = vcombine.low %v1372_v27, %v1375_v44  ;;  %v2104_v33 = vshll.u32 %v6276_v36, 16 }
  0x6d   : > { %v2114_v20 = vshrl.u32 %v6279_v46, 16  ;;  %v4788_v14 = vcombine.low %v946_v2, %v956_v59  ;;  %v1382_v0 = vsel %vm5936_vm7, %v1380_v49, %v1381_v18  ;;  %v4816_v41 = vrot.slane %v7969_v42, 9  ;;  %v6369_v18 = vld [vmem:[%s5727_s7 + $0x2c] sm:$0x1]  ;;  %v6381_v59 = vld [vmem:[%s5727_s7 + $0x48] sm:$0xf] }
  0x6e   : > { %v1385_v24 = vrot.slane %v7972_v17, 5  ;;  %5352 = vmatmul.mubr.msk.bf16.gmra.mxu0 %vm370_vm1, %v4829_v19  ;;  %v4830_v11 = vcombine.low %v1379_v53, %v1382_v0  ;;  %v1388_v47 = vrot.slane %v6253_v28, 5  ;;  %v4890_v29 = vcombine.low %v6299_v23, %v6302_v13  ;;  %v6335_v28 = vld [vmem:[%s5727_s7 + $0x34] sm:$0xf]  ;;  %v7974_v19 = vld [vmem:[#allocation2_spill] sm:$0xff] }
  0x6f   : > { %v2125_v5 = vshrl.u32 %v6299_v23, 16  ;;  %5326 = vmatmul.mubr.msk.bf16.gmra.mxu1 %vm370_vm1, %v4788_v14  ;;  %v2128_v56 = vshll.u32 %v6299_v23, 16  ;;  %v2138_v60 = vshrl.u32 %v6302_v13, 16  ;;  %v4891_v54 = vcombine.low %v6313_v15, %v6316_v22 }
  0x70   : > { %v1386_v3 = vsel %vm5936_vm7, %v4816_v41, %v1385_v24  ;;  %v1387_v62 = vrot.slane %v1385_v24, 4  ;;  %5355 = vmatprep.mubr.msk.bf16.mxu0 %vm370_vm1, %v4830_v11  ;;  %5361 = vmatprep.mubr.msk.bf16.mxu1 %vm370_vm1, %v4889_v9  ;;  %v2149_v42 = vshrl.u32 %v6313_v15, 16  ;;  %v2152_v1 = vshll.u32 %v6313_v15, 16  ;;  %v6374_v9 = vld [vmem:[%s7895_s1 + $0x1c] sm:$0xf] }
  0x71   : > { %v2162_v61 = vshrl.u32 %v6316_v22, 16  ;;  %v2103_v4 = vrot.slane %v2101_v8, 4  ;;  %v2106_v17 = vrot.slane %v2104_v33, 5  ;;  %v2110_v45 = vshll.u32 %v6279_v46, 16  ;;  %v6387_v41 = vld [vmem:[%s5727_s7 + $0x4c] sm:$0xf] }
  0x72   : > { %v1389_v37 = vsel %vm5936_vm7, %v1387_v62, %v1388_v47  ;;  %v2116_v21 = vrot.slane %v2114_v20, 4  ;;  %v2120_v16 = vshll.u32 %v6324_v7, 16  ;;  %v4892_v55 = vcombine.low %v6327_v57, %v6335_v28 }
  0x73   : > { %v4831_v43 = vcombine.low %v1386_v3, %v1389_v37  ;;  %v2107_v40 = vor.u32 %v2106_v17, %v2103_v4  ;;  %v2112_v10 = vrot.slane %v2110_v45, 5  ;;  %v2173_v32 = vshrl.u32 %v6327_v57, 16  ;;  %v6403_v4 = vld [vmem:[%s5727_s7 + $0x54] sm:$0xf] }
  0x74   : > { %v2176_v38 = vshll.u32 %v6327_v57, 16  ;;  %v2122_v12 = vrot.slane %v2120_v16, 5  ;;  %v2186_v26 = vshrl.u32 %v6335_v28, 16  ;;  %v2127_v52 = vrot.slane %v2125_v5, 4 }
  0x75   : > { %v2130_v35 = vrot.slane %v2128_v56, 5  ;;  %v2108_v30 = vrot.slane %v2107_v40, 4  ;;  %v2117_v63 = vor.u32 %v2116_v21, %v2112_v10  ;;  %v2134_v27 = vshll.u32 %v6302_v13, 16  ;;  %v6410_v21 = vld [vmem:[%s5727_s7 + $0x58] sm:$0xf] }
  0x76   : > { %v2140_v6 = vrot.slane %v2138_v60, 4  ;;  %5356 = vmatmul.mubr.msk.bf16.gmra.mxu0 %vm370_vm1, %v4831_v43  ;;  %v2144_v34 = vshll.u32 %v6351_v39, 16  ;;  %v4893_v2 = vcombine.low %v6354_v51, %v6359_v31  ;;  %v2197_v58 = vshrl.u32 %v6354_v51, 16 }
  0x77   : > { %v2131_v50 = vor.u32 %v2130_v35, %v2127_v52  ;;  %5362 = vmatmul.mubr.msk.bf16.vlgmr.msra.gmra.mxu1 %vm370_vm1, %v4890_v29  ;;  %v2113_v44 = vsel %vm5921_vm6, %v2108_v30, %v2112_v10  ;;  %v2118_v53 = vrot.slane %v2117_v63, 4  ;;  %v2136_v49 = vrot.slane %v2134_v27, 5  ;;  %v6416_v27 = vld [vmem:[%s5727_s7 + $0x44] sm:$0x1] }
  0x78   : > { %v2200_v8 = vshll.u32 %v6354_v51, 16  ;;  %5420 = vmatpush3.bf16.msra.mxu1 %v7974_v19  ;;  %5365 = vmatprep.mubr.msk.bf16.mxu1 %vm370_vm1, %v4891_v54  ;;  %v2146_v20 = vrot.slane %v2144_v34, 5  ;;  %v2210_v14 = vshrl.u32 %v6359_v31, 16  ;;  %v2151_v0 = vrot.slane %v2149_v42, 4  ;;  %v6440_v19 = vld [vmem:[%s5727_s7 + $0x64] sm:$0xf] }
  0x79   : > { %v2132_v33 = vrot.slane %v2131_v50, 4  ;;  %v2123_v24 = vsel %vm5921_vm6, %v2118_v53, %v2122_v12  ;;  %v2141_v11 = vor.u32 %v2140_v6, %v2136_v49  ;;  %v2154_v47 = vrot.slane %v2152_v1, 5  ;;  %5549 = vmatprep.subr.msk.bf16.mxu1 %vm413_vm0, %v6374_v9  ;;  %v6400_v1 = vld [vmem:[%s5727_s7 + $0x38] sm:$0x1] }
  0x7a   : > { %v2158_v29 = vshll.u32 %v6316_v22, 16  ;;  %v4918_v5 = vcombine.low %v2113_v44, %v2123_v24  ;;  %v2164_v62 = vrot.slane %v2162_v61, 4  ;;  %v2168_v56 = vshll.u32 %v6369_v18, 16 }
  0x7b   : > { %v2137_v3 = vsel %vm5921_vm6, %v2132_v33, %v2136_v49  ;;  %v2142_v60 = vrot.slane %v2141_v11, 4  ;;  %v2155_v54 = vor.u32 %v2154_v47, %v2151_v0  ;;  %v4894_v37 = vcombine.low %v6381_v59, %v6387_v41  ;;  %v7975_v33 = vld [vmem:[#allocation3_spill] sm:$0xff] }
  0x7c   : > { %v2160_v42 = vrot.slane %v2158_v29, 5  ;;  %5391 = vmatprep.mubr.msk.bf16.mxu0 %vm370_vm1, %v4918_v5  ;;  %v2170_v17 = vrot.slane %v2168_v56, 5  ;;  %v2221_v45 = vshrl.u32 %v6381_v59, 16  ;;  %v2224_v61 = vshll.u32 %v6381_v59, 16 }
  0x7d   : > { %v2234_v43 = vshrl.u32 %v6387_v41, 16  ;;  %v2147_v16 = vsel %vm5921_vm6, %v2142_v60, %v2146_v20  ;;  %v2156_v40 = vrot.slane %v2155_v54, 4  ;;  %v2175_v12 = vrot.slane %v2173_v32, 4 }
  0x7e   : > { %v2165_v10 = vor.u32 %v2164_v62, %v2160_v42  ;;  %v4919_v52 = vcombine.low %v2137_v3, %v2147_v16  ;;  %v2178_v35 = vrot.slane %v2176_v38, 5  ;;  %v2182_v30 = vshll.u32 %v6335_v28, 16  ;;  %v6428_v38 = vld [vmem:[%s5727_s7 + $0x60] sm:$0xf]  ;;  %v6462_v16 = vld [vmem:[%s5727_s7 + $0x6c] sm:$0xf] }
  0x7f   : > { %v2188_v63 = vrot.slane %v2186_v26, 4  ;;  %5366 = vmatmul.mubr.msk.bf16.gmra.mxu1 %vm370_vm1, %v4892_v55  ;;  %v2161_v6 = vsel %vm5921_vm6, %v2156_v40, %v2160_v42  ;;  %v2192_v34 = vshll.u32 %v6400_v1, 16  ;;  %v4895_v32 = vcombine.low %v6403_v4, %v6410_v21  ;;  %v6433_v26 = vld [vmem:[%s7895_s1 + $0x20] sm:$0xf] }
  0x80   : > { %v2166_v50 = vrot.slane %v2165_v10, 4  ;;  %5392 = vmatmul.mubr.msk.bf16.vlgmr.msra.gmra.mxu0 %vm370_vm1, %v4919_v52  ;;  %5369 = vmatprep.mubr.msk.bf16.mxu1 %vm370_vm1, %v4893_v2  ;;  %v2179_v55 = vor.u32 %v2178_v35, %v2175_v12  ;;  %v2184_v44 = vrot.slane %v2182_v30, 5  ;;  %v2245_v53 = vshrl.u32 %v6403_v4, 16  ;;  %v6467_v52 = vld [vmem:[%s5727_s7 + $0x70] sm:$0xf] }
  0x81   : > { %v2248_v49 = vshll.u32 %v6403_v4, 16  ;;  %5450 = vmatpush3.bf16.msra.mxu0 %v7975_v33  ;;  %v2194_v0 = vrot.slane %v2192_v34, 5  ;;  %v2258_v24 = vshrl.u32 %v6410_v21, 16  ;;  %v2199_v2 = vrot.slane %v2197_v58, 4  ;;  %7976 = vst [vmem:[#allocation4_spill] sm:$0xff] %v6467_v52 }
  0x82   : > { %v2171_v20 = vsel %vm5921_vm6, %v2166_v50, %v2170_v17  ;;  %v2180_v47 = vrot.slane %v2179_v55, 4  ;;  %v2189_v29 = vor.u32 %v2188_v63, %v2184_v44  ;;  %v2202_v5 = vrot.slane %v2200_v8, 5  ;;  %5550 = vmatprep.subr.msk.bf16.mxu0 %vm413_vm0, %v6433_v26  ;;  %v6459_v17 = vld [vmem:[%s5727_s7 + $0x50] sm:$0x1] }
  0x83   : > { %v4920_v11 = vcombine.low %v2161_v6, %v2171_v20  ;;  %v2206_v3 = vshll.u32 %v6359_v31, 16  ;;  %v2212_v62 = vrot.slane %v2210_v14, 4  ;;  %v2216_v56 = vshll.u32 %v6416_v27, 16 }
  0x84   : > { %v4896_v60 = vcombine.low %v6428_v38, %v6440_v19  ;;  %v2185_v58 = vsel %vm5921_vm6, %v2180_v47, %v2184_v44  ;;  %v2190_v54 = vrot.slane %v2189_v29, 4  ;;  %v2203_v42 = vor.u32 %v2202_v5, %v2199_v2 }
  0x85   : > { %5395 = vmatprep.mubr.msk.bf16.mxu0 %vm370_vm1, %v4920_v11  ;;  %v2269_v8 = vshrl.u32 %v6428_v38, 16  ;;  %v2208_v40 = vrot.slane %v2206_v3, 5  ;;  %v2218_v14 = vrot.slane %v2216_v56, 5  ;;  %v2272_v10 = vshll.u32 %v6428_v38, 16  ;;  %v6486_v11 = vld [vmem:[%s5727_s7 + $0x78] sm:$0xf] }
  0x86   : > { %v2282_v12 = vshrl.u32 %v6440_v19, 16  ;;  %v2195_v35 = vsel %vm5921_vm6, %v2190_v54, %v2194_v0  ;;  %v2204_v30 = vrot.slane %v2203_v42, 4  ;;  %v2223_v63 = vrot.slane %v2221_v45, 4  ;;  %7977 = vst [vmem:[#allocation5_spill] sm:$0xff] %v6486_v11 }
  0x87   : > { %v2226_v6 = vrot.slane %v2224_v61, 5  ;;  %5370 = vmatmul.mubr.msk.bf16.gmra.mxu1 %vm370_vm1, %v4894_v37  ;;  %v4921_v50 = vcombine.low %v2185_v58, %v2195_v35  ;;  %v2213_v34 = vor.u32 %v2212_v62, %v2208_v40  ;;  %v2230_v55 = vshll.u32 %v6387_v41, 16  ;;  %v6480_v61 = vld [vmem:[%s5727_s7 + $0x5c] sm:$0x1] }
  0x88   : > { %v2236_v44 = vrot.slane %v2234_v43, 4  ;;  %5373 = vmatprep.mubr.msk.bf16.mxu1 %vm370_vm1, %v4895_v32  ;;  %v2209_v33 = vsel %vm5921_vm6, %v2204_v30, %v2208_v40  ;;  %v2240_v0 = vshll.u32 %v6459_v17, 16  ;;  %v4897_v45 = vcombine.low %v6462_v16, %v6467_v52  ;;  %v6490_v62 = vld [vmem:[%s5727_s7 + $0x7c] sm:$0xf] }
  0x89   : > { %v2227_v20 = vor.u32 %v2226_v6, %v2223_v63  ;;  %5396 = vmatmul.mubr.msk.bf16.gmra.mxu0 %vm370_vm1, %v4921_v50  ;;  %v2214_v37 = vrot.slane %v2213_v34, 4  ;;  %v2232_v2 = vrot.slane %v2230_v55, 5  ;;  %v2293_v43 = vshrl.u32 %v6462_v16, 16  ;;  %7978 = vst [vmem:[#allocation6_spill] sm:$0xff] %v6490_v62  ;;  %v6501_v55 = vld [vmem:[%s5727_s7 + $0x68] sm:$0x1] }
  0x8a   : > { %v2296_v32 = vshll.u32 %v6462_v16, 16  ;;  %v2242_v29 = vrot.slane %v2240_v0, 5  ;;  %v2306_v5 = vshrl.u32 %v6467_v52, 16  ;;  %v2247_v3 = vrot.slane %v2245_v53, 4 }
  0x8b   : > { %v2228_v47 = vrot.slane %v2227_v20, 4  ;;  %v2219_v56 = vsel %vm5921_vm6, %v2214_v37, %v2218_v14  ;;  %v2237_v58 = vor.u32 %v2236_v44, %v2232_v2  ;;  %v2250_v54 = vrot.slane %v2248_v49, 5  ;;  %v6504_v14 = vld [vmem:[%s5727_s7 + $0x84] sm:$0xf]  ;;  %v6511_v20 = vld [vmem:[%s5727_s7 + $0x88] sm:$0xf] }
  0x8c   : > { %v2254_v42 = vshll.u32 %v6410_v21, 16  ;;  %v4922_v40 = vcombine.low %v2209_v33, %v2219_v56  ;;  %v2260_v30 = vrot.slane %v2258_v24, 4  ;;  %v2264_v63 = vshll.u32 %v6480_v61, 16  ;;  %7979 = vst [vmem:[#allocation2_spill] sm:$0xff] %v6504_v14 }
  0x8d   : > { %v2233_v35 = vsel %vm5921_vm6, %v2228_v47, %v2232_v2  ;;  %v2238_v6 = vrot.slane %v2237_v58, 4  ;;  %v2251_v50 = vor.u32 %v2250_v54, %v2247_v3  ;;  %v4898_v34 = vcombine.low %v6486_v11, %v6490_v62 }
  0x8e   : > { %v2256_v53 = vrot.slane %v2254_v42, 5  ;;  %5399 = vmatprep.mubr.msk.bf16.mxu0 %vm370_vm1, %v4922_v40  ;;  %v2266_v49 = vrot.slane %v2264_v63, 5  ;;  %v2317_v44 = vshrl.u32 %v6486_v11, 16  ;;  %v2320_v33 = vshll.u32 %v6486_v11, 16  ;;  %v6524_v63 = vld [vmem:[%s5727_s7 + $0x74] sm:$0x1] }
  0x8f   : > { %v2330_v24 = vshrl.u32 %v6490_v62, 16  ;;  %5374 = vmatmul.mubr.msk.bf16.gmra.mxu1 %vm370_vm1, %v4896_v60  ;;  %v2243_v0 = vsel %vm5921_vm6, %v2238_v6, %v2242_v29  ;;  %v2252_v37 = vrot.slane %v2251_v50, 4  ;;  %v2271_v47 = vrot.slane %v2269_v8, 4  ;;  %7980 = vst [vmem:[#allocation3_spill] sm:$0xff] %v6524_v63  ;;  %v6527_v8 = vld [vmem:[%s5727_s7 + $0x90] sm:$0xf] }
  0x90   : > { %v2261_v2 = vor.u32 %v2260_v30, %v2256_v53  ;;  %v4923_v3 = vcombine.low %v2233_v35, %v2243_v0  ;;  %5377 = vmatprep.mubr.msk.bf16.mxu1 %vm370_vm1, %v4897_v45  ;;  %v2274_v56 = vrot.slane %v2272_v10, 5  ;;  %v2278_v58 = vshll.u32 %v6440_v19, 16  ;;  %7981 = vst [vmem:[#allocation7_spill] sm:$0xff] %v6527_v8  ;;  %v6533_v30 = vld [vmem:[%s5727_s7 + $0x94] sm:$0xf] }
  0x91   : > { %v2284_v54 = vrot.slane %v2282_v12, 4  ;;  %v2257_v42 = vsel %vm5921_vm6, %v2252_v37, %v2256_v53  ;;  %v2288_v60 = vshll.u32 %v6501_v55, 16  ;;  %v4899_v29 = vcombine.low %v6504_v14, %v6511_v20 }
  0x92   : > { %v2262_v40 = vrot.slane %v2261_v2, 4  ;;  %5400 = vmatmul.mubr.msk.bf16.gmra.mxu0 %vm370_vm1, %v4923_v3  ;;  %v2275_v45 = vor.u32 %v2274_v56, %v2271_v47  ;;  %v2280_v10 = vrot.slane %v2278_v58, 5  ;;  %v2341_v35 = vshrl.u32 %v6504_v14, 16 }
  0x93   : > { %v2344_v12 = vshll.u32 %v6504_v14, 16  ;;  %v2290_v50 = vrot.slane %v2288_v60, 5  ;;  %v2354_v53 = vshrl.u32 %v6511_v20, 16  ;;  %v2295_v0 = vrot.slane %v2293_v43, 4 }
  0x94   : > { %v2267_v6 = vsel %vm5921_vm6, %v2262_v40, %v2266_v49  ;;  %v2276_v2 = vrot.slane %v2275_v45, 4  ;;  %v2285_v3 = vor.u32 %v2284_v54, %v2280_v10  ;;  %v2298_v47 = vrot.slane %v2296_v32, 5  ;;  %v6547_v54 = vld [vmem:[%s5727_s7 + $0x80] sm:$0x1]  ;;  %v6550_v32 = vld [vmem:[%s5727_s7 + $0x9c] sm:$0xf] }
  0x95   : > { %v4924_v37 = vcombine.low %v2257_v42, %v2267_v6  ;;  %v2302_v56 = vshll.u32 %v6467_v52, 16  ;;  %v2308_v58 = vrot.slane %v2306_v5, 4  ;;  %v2312_v14 = vshll.u32 %v6524_v63, 16  ;;  %7982 = vst [vmem:[#allocation8_spill] sm:$0xff] %v6547_v54  ;;  %7983 = vst [vmem:[#allocation9_spill] sm:$0xff] %v6550_v32 }
  0x96   : > { %v4900_v11 = vcombine.low %v6527_v8, %v6533_v30  ;;  %v2281_v49 = vsel %vm5921_vm6, %v2276_v2, %v2280_v10  ;;  %v2286_v40 = vrot.slane %v2285_v3, 4  ;;  %v2299_v43 = vor.u32 %v2298_v47, %v2295_v0 }
  0x97   : > { %5403 = vmatprep.mubr.msk.bf16.mxu0 %vm370_vm1, %v4924_v37  ;;  %v2365_v42 = vshrl.u32 %v6527_v8, 16  ;;  %5378 = vmatmul.mubr.msk.bf16.gmra.mxu1 %vm370_vm1, %v4898_v34  ;;  %v2304_v5 = vrot.slane %v2302_v56, 5  ;;  %v2314_v60 = vrot.slane %v2312_v14, 5  ;;  %v2368_v45 = vshll.u32 %v6527_v8, 16  ;;  %v6556_v37 = vld [vmem:[%s5727_s7 + $0xa0] sm:$0xf] }
  0x98   : > { %v2378_v6 = vshrl.u32 %v6533_v30, 16  ;;  %v2291_v10 = vsel %vm5921_vm6, %v2286_v40, %v2290_v50  ;;  %5381 = vmatprep.mubr.msk.bf16.mxu1 %vm370_vm1, %v4899_v29  ;;  %v2300_v0 = vrot.slane %v2299_v43, 4  ;;  %v2319_v2 = vrot.slane %v2317_v44, 4  ;;  %v6568_v29 = vld [vmem:[%s5727_s7 + $0x8c] sm:$0x1] }
  0x99   : > { %v2322_v3 = vrot.slane %v2320_v33, 5  ;;  %v4925_v47 = vcombine.low %v2281_v49, %v2291_v10  ;;  %v2309_v34 = vor.u32 %v2308_v58, %v2304_v5  ;;  %v2326_v14 = vshll.u32 %v6490_v62, 16  ;;  %7984 = vst [vmem:[#allocation10_spill] sm:$0xff] %v6568_v29  ;;  %v6574_v49 = vld [vmem:[%s5727_s7 + $0xa8] sm:$0xf] }
  0x9a   : > { %v2332_v56 = vrot.slane %v2330_v24, 4  ;;  %v2305_v8 = vsel %vm5921_vm6, %v2300_v0, %v2304_v5  ;;  %v2336_v52 = vshll.u32 %v6547_v54, 16  ;;  %v4901_v50 = vcombine.low %v6550_v32, %v6556_v37  ;;  %7985 = vst [vmem:[#allocation11_spill] sm:$0xff] %v6574_v49  ;;  %v6578_v0 = vld [vmem:[%s5727_s7 + $0xac] sm:$0xf] }
  0x9b   : > { %v2323_v63 = vor.u32 %v2322_v3, %v2319_v2  ;;  %5404 = vmatmul.mubr.msk.bf16.gmra.mxu0 %vm370_vm1, %v4925_v47  ;;  %v2310_v44 = vrot.slane %v2309_v34, 4  ;;  %v2328_v33 = vrot.slane %v2326_v14, 5  ;;  %v2389_v58 = vshrl.u32 %v6550_v32, 16 }
  0x9c   : > { %v2392_v24 = vshll.u32 %v6550_v32, 16  ;;  %v2338_v43 = vrot.slane %v2336_v52, 5  ;;  %v2402_v5 = vshrl.u32 %v6556_v37, 16  ;;  %v2343_v10 = vrot.slane %v2341_v35, 4 }
  0x9d   : > { %v2324_v40 = vrot.slane %v2323_v63, 4  ;;  %v2315_v2 = vsel %vm5921_vm6, %v2310_v44, %v2314_v60  ;;  %v2333_v3 = vor.u32 %v2332_v56, %v2328_v33  ;;  %v2346_v47 = vrot.slane %v2344_v12, 5  ;;  %v6595_v44 = vld [vmem:[%s5727_s7 + $0x98] sm:$0x1] }
  0x9e   : > { %v2350_v34 = vshll.u32 %v6511_v20, 16  ;;  %v4926_v14 = vcombine.low %v2305_v8, %v2315_v2  ;;  %v2356_v54 = vrot.slane %v2354_v53, 4  ;;  %v2360_v52 = vshll.u32 %v6568_v29, 16 }
  0x9f   : > { %v2329_v32 = vsel %vm5921_vm6, %v2324_v40, %v2328_v33  ;;  %5382 = vmatmul.mubr.msk.bf16.gmra.mxu1 %vm370_vm1, %v4900_v11  ;;  %v2334_v63 = vrot.slane %v2333_v3, 4  ;;  %v2347_v35 = vor.u32 %v2346_v47, %v2343_v10  ;;  %v4902_v60 = vcombine.low %v6574_v49, %v6578_v0 }
  0xa0   : > { %v2352_v62 = vrot.slane %v2350_v34, 5  ;;  %5407 = vmatprep.mubr.msk.bf16.mxu0 %vm370_vm1, %v4926_v14  ;;  %5385 = vmatprep.mubr.msk.bf16.mxu1 %vm370_vm1, %v4901_v50  ;;  %v2362_v8 = vrot.slane %v2360_v52, 5  ;;  %v2413_v12 = vshrl.u32 %v6574_v49, 16  ;;  %v2416_v53 = vshll.u32 %v6574_v49, 16  ;;  %v6601_v34 = vld [vmem:[%s5727_s7 + $0xa4] sm:$0x1] }
  0xa1   : > { %v2426_v56 = vshrl.u32 %v6578_v0, 16  ;;  %v2339_v11 = vsel %vm5921_vm6, %v2334_v63, %v2338_v43  ;;  %v2348_v33 = vrot.slane %v2347_v35, 4  ;;  %v2367_v10 = vrot.slane %v2365_v42, 4 }
  0xa2   : > { %v2357_v40 = vor.u32 %v2356_v54, %v2352_v62  ;;  %v4927_v2 = vcombine.low %v2329_v32, %v2339_v11  ;;  %v2370_v3 = vrot.slane %v2368_v45, 5  ;;  %v2374_v47 = vshll.u32 %v6533_v30, 16 }
  0xa3   : > { %v2380_v50 = vrot.slane %v2378_v6, 4  ;;  %v2353_v14 = vsel %vm5921_vm6, %v2348_v33, %v2352_v62  ;;  %v2384_v49 = vshll.u32 %v6595_v44, 16  ;;  %v2391_v29 = vrot.slane %v2389_v58, 4 }
  0xa4   : > { %v2358_v52 = vrot.slane %v2357_v40, 4  ;;  %5408 = vmatmul.mubr.msk.bf16.gmra.mxu0 %vm370_vm1, %v4927_v2  ;;  %v2371_v43 = vor.u32 %v2370_v3, %v2367_v10  ;;  %v2376_v63 = vrot.slane %v2374_v47, 5  ;;  %v2394_v54 = vrot.slane %v2392_v24, 5 }
  0xa5   : > { %v2398_v42 = vshll.u32 %v6556_v37, 16  ;;  %v2386_v45 = vrot.slane %v2384_v49, 5  ;;  %v2404_v6 = vrot.slane %v2402_v5, 4  ;;  %v2408_v35 = vshll.u32 %v6601_v34, 16 }
  0xa6   : > { %v2363_v32 = vsel %vm5921_vm6, %v2358_v52, %v2362_v8  ;;  %v2372_v62 = vrot.slane %v2371_v43, 4  ;;  %v2381_v33 = vor.u32 %v2380_v50, %v2376_v63  ;;  %v2395_v40 = vor.u32 %v2394_v54, %v2391_v29  ;;  %v6621_v50 = vld [vmem:[%s5727_s7 + $0xb0] sm:$0x1] }
  0xa7   : > { %v4928_v11 = vcombine.low %v2353_v14, %v2363_v32  ;;  %5386 = vmatmul.mubr.msk.bf16.gmra.mxu1 %vm370_vm1, %v4902_v60  ;;  %v2400_v58 = vrot.slane %v2398_v42, 5  ;;  %v2410_v10 = vrot.slane %v2408_v35, 5  ;;  %v4946_v24 = vrot.slane %v6276_v36, 9 }
  0xa8   : > { %v2770_v2 = vrot.slane %v6279_v46, 5  ;;  %v2377_v49 = vsel %vm5921_vm6, %v2372_v62, %v2376_v63  ;;  %v2382_v5 = vrot.slane %v2381_v33, 4  ;;  %v2396_v8 = vrot.slane %v2395_v40, 4 }
  0xa9   : > { %5411 = vmatprep.mubr.msk.bf16.mxu0 %vm370_vm1, %v4928_v11  ;;  %v2773_v3 = vrot.slane %v6324_v7, 5  ;;  %v2405_v47 = vor.u32 %v2404_v6, %v2400_v58  ;;  %v2415_v14 = vrot.slane %v2413_v12, 4  ;;  %v2418_v52 = vrot.slane %v2416_v53, 5 }
  0xaa   : > { %v2771_v29 = vsel %vm5936_vm7, %v4946_v24, %v2770_v2  ;;  %v2772_v60 = vrot.slane %v2770_v2, 4  ;;  %v2387_v36 = vsel %vm5921_vm6, %v2382_v5, %v2386_v45  ;;  %v2401_v46 = vsel %vm5921_vm6, %v2396_v8, %v2400_v58  ;;  %v6639_v24 = vld [vmem:[%s5727_s7 + $0x18] sm:$0xf]  ;;  %v6642_v2 = vld [vmem:[%s5727_s7 + $0x1c] sm:$0xf] }
  0xab   : > { %v2422_v43 = vshll.u32 %v6578_v0, 16  ;;  %v4929_v63 = vcombine.low %v2377_v49, %v2387_v36  ;;  %v2406_v54 = vrot.slane %v2405_v47, 4  ;;  %v2428_v42 = vrot.slane %v2426_v56, 4 }
  0xac   : > { %v2774_v7 = vsel %vm5936_vm7, %v2772_v60, %v2773_v3  ;;  %v2419_v6 = vor.u32 %v2418_v52, %v2415_v14  ;;  %v2432_v35 = vshll.u32 %v6621_v50, 16  ;;  %v4947_v45 = vrot.slane %v6299_v23, 9  ;;  %v6661_v60 = vld [vmem:[%s5727_s7 + $0x24] sm:$0xf]  ;;  %v6664_v14 = vld [vmem:[%s5727_s7 + $0x28] sm:$0xf] }
  0xad   : > { %v4961_v32 = vcombine.low %v2771_v29, %v2774_v7  ;;  %v2424_v12 = vrot.slane %v2422_v43, 5  ;;  %5412 = vmatmul.mubr.msk.bf16.gmra.mxu0 %vm370_vm1, %v4929_v63  ;;  %v2411_v53 = vsel %vm5921_vm6, %v2406_v54, %v2410_v10  ;;  %v2777_v11 = vrot.slane %v6302_v13, 5 }
  0xae   : > { %v2780_v62 = vrot.slane %v6351_v39, 5  ;;  %v4930_v33 = vcombine.low %v2401_v46, %v2411_v53  ;;  %v2420_v56 = vrot.slane %v2419_v6, 4  ;;  %v2434_v58 = vrot.slane %v2432_v35, 5  ;;  %v6684_v35 = vld [vmem:[%s5727_s7 + $0x34] sm:$0xf] }
  0xaf   : > { %5421 = vmatprep.mubr.msk.bf16.mxu1 %vm370_vm1, %v4961_v32  ;;  %v2429_v40 = vor.u32 %v2428_v42, %v2424_v12  ;;  %v2778_v10 = vsel %vm5936_vm7, %v4947_v45, %v2777_v11  ;;  %v2779_v23 = vrot.slane %v2777_v11, 4  ;;  %v4027_v13 = vsel %vm413_vm0, %v6374_v9, 0 }
  0xb0   : > { %v4948_v39 = vrot.slane %v6313_v15, 9  ;;  %5415 = vmatprep.mubr.msk.bf16.mxu0 %vm370_vm1, %v4930_v33  ;;  %v2425_v49 = vsel %vm5921_vm6, %v2420_v56, %v2424_v12  ;;  %v2784_v8 = vrot.slane %v6316_v22, 5  ;;  %v2787_v3 = vrot.slane %v6369_v18, 5  ;;  %v6681_v12 = vld [vmem:[%s5727_s7 + $0x30] sm:$0xf] }
  0xb1   : > { %v2430_v5 = vrot.slane %v2429_v40, 4  ;;  %v2781_v47 = vsel %vm5936_vm7, %v2779_v23, %v2780_v62  ;;  %v5032_v29 = vcombine.low %v6639_v24, %v6642_v2  ;;  %v3577_v9 = vshrl.u32 %v6639_v24, 16  ;;  %v6704_v23 = vld [vmem:[%s5727_s7 + $0x3c] sm:$0xf] }
  0xb2   : > { %v3580_v15 = vshll.u32 %v6639_v24, 16  ;;  %v4962_v18 = vcombine.low %v2778_v10, %v2781_v47  ;;  %v2785_v36 = vsel %vm5936_vm7, %v4948_v39, %v2784_v8  ;;  %v2786_v46 = vrot.slane %v2784_v8, 4  ;;  %v6720_v47 = vld [vmem:[%s5727_s7 + $0x4c] sm:$0xf] }
  0xb3   : > { %v2435_v22 = vsel %vm5921_vm6, %v2430_v5, %v2434_v58  ;;  %v3590_v43 = vshrl.u32 %v6642_v2, 16  ;;  %v4949_v63 = vrot.slane %v6327_v57, 9  ;;  %v2791_v54 = vrot.slane %v6335_v28, 5 }
  0xb4   : > { %v4931_v52 = vcombine.low %v2425_v49, %v2435_v22  ;;  %5422 = vmatmul.mubr.msk.bf16.vlgmr.msra.gmra.mxu1 %vm370_vm1, %v4962_v18  ;;  %v2788_v7 = vsel %vm5936_vm7, %v2786_v46, %v2787_v3  ;;  %v2794_v42 = vrot.slane %v6400_v1, 5  ;;  %v5033_v32 = vcombine.low %v6661_v60, %v6664_v14  ;;  %v6713_v49 = vld [vmem:[%s5727_s7 + $0x48] sm:$0xf]  ;;  %v6920_v18 = vld [vmem:[%s5727_s7 + $0x20] sm:$0x1] }
  0xb5   : > { %v3601_v6 = vshrl.u32 %v6661_v60, 16  ;;  %5480 = vmatpush3.bf16.msra.mxu1 %v4027_v13  ;;  %v4963_v57 = vcombine.low %v2785_v36, %v2788_v7  ;;  %v2792_v28 = vsel %vm5936_vm7, %v4949_v63, %v2791_v54  ;;  %v2793_v53 = vrot.slane %v2791_v54, 4  ;;  %v6917_v36 = vld [vmem:[%s5727_s7 + $0xac] sm:$0xf] }
  0xb6   : > { %5416 = vmatmul.mubr.msk.bf16.gmra.mxu0 %vm370_vm1, %v4931_v52  ;;  %v4457_v11 = vsel %vm413_vm0, %v6433_v26, 0  ;;  %v4950_v62 = vrot.slane %v6354_v51, 9  ;;  %v2798_v33 = vrot.slane %v6359_v31, 5  ;;  %v2801_v40 = vrot.slane %v6416_v27, 5  ;;  %v6707_v26 = vld [vmem:[%s5727_s7 + $0x40] sm:$0xf] }
  0xb7   : > { %5451 = vmatprep.mubr.msk.bf16.mxu0 %vm370_vm1, %v5032_v29  ;;  %5425 = vmatprep.mubr.msk.bf16.mxu1 %vm370_vm1, %v4963_v57  ;;  %v2795_v56 = vsel %vm5936_vm7, %v2793_v53, %v2794_v42  ;;  %v5034_v58 = vcombine.low %v6681_v12, %v6684_v35  ;;  %v4951_v5 = vrot.slane %v6381_v59, 9  ;;  %v2805_v8 = vrot.slane %v6387_v41, 5  ;;  %v6732_v52 = vld [vmem:[%s5727_s7 + $0x54] sm:$0xf]  ;;  %v6741_v57 = vld [vmem:[%s5727_s7 + $0x58] sm:$0xf] }
  0xb8   : > { %v4964_v51 = vcombine.low %v2792_v28, %v2795_v56  ;;  %v2799_v31 = vsel %vm5936_vm7, %v4950_v62, %v2798_v33  ;;  %v2800_v13 = vrot.slane %v2798_v33, 4  ;;  %v2808_v3 = vrot.slane %v6459_v17, 5  ;;  %v6755_v56 = vld [vmem:[%s5727_s7 + $0x60] sm:$0xf] }
  0xb9   : > { %v5035_v22 = vcombine.low %v6704_v23, %v6707_v26  ;;  %v2806_v59 = vsel %vm5936_vm7, %v4951_v5, %v2805_v8  ;;  %v2807_v41 = vrot.slane %v2805_v8, 4  ;;  %v4952_v63 = vrot.slane %v6403_v4, 9 }
  0xba   : > { %v2802_v29 = vsel %vm5936_vm7, %v2800_v13, %v2801_v40  ;;  %v2812_v54 = vrot.slane %v6410_v21, 5  ;;  %v2815_v7 = vrot.slane %v6480_v61, 5  ;;  %v5036_v42 = vcombine.low %v6713_v49, %v6720_v47  ;;  %v6888_v21 = vld [vmem:[%s5727_s7 + $0xa0] sm:$0xf] }
  0xbb   : > { %v4965_v46 = vcombine.low %v2799_v31, %v2802_v29  ;;  %v2809_v28 = vsel %vm5936_vm7, %v2807_v41, %v2808_v3  ;;  %v4953_v33 = vrot.slane %v6428_v38, 9  ;;  %v2819_v40 = vrot.slane %v6440_v19, 5  ;;  %v7986_v29 = vld [vmem:[#allocation4_spill] sm:$0xff]  ;;  %v7987_v41 = vld [vmem:[#allocation3_spill] sm:$0xff] }
  0xbc   : > { %5426 = vmatmul.mubr.msk.bf16.gmra.mxu1 %vm370_vm1, %v4964_v51  ;;  %v4966_v61 = vcombine.low %v2806_v59, %v2809_v28  ;;  %v2813_v62 = vsel %vm5936_vm7, %v4952_v63, %v2812_v54  ;;  %v2822_v51 = vrot.slane %v6501_v55, 5  ;;  %v5037_v31 = vcombine.low %v6732_v52, %v6741_v57  ;;  %v6774_v59 = vld [vmem:[%s5727_s7 + $0x6c] sm:$0xf]  ;;  %v7990_v38 = vld [vmem:[#allocation8_spill] sm:$0xff] }
  0xbd   : > { %5429 = vmatprep.mubr.msk.bf16.mxu1 %vm370_vm1, %v4965_v46  ;;  %v4954_v8 = vrot.slane %v6462_v16, 9  ;;  %v2820_v55 = vsel %vm5936_vm7, %v4953_v33, %v2819_v40  ;;  %v2821_v3 = vrot.slane %v2819_v40, 4  ;;  %v2826_v46 = vrot.slane %v7986_v29, 5  ;;  %v7988_v29 = vld [vmem:[#allocation5_spill] sm:$0xff] }
  0xbe   : > { %5452 = vmatmul.mubr.msk.bf16.vlgmr.msra.gmra.mxu0 %vm370_vm1, %v5033_v32  ;;  %v2814_v32 = vrot.slane %v2812_v54, 4  ;;  %v2829_v63 = vrot.slane %v7987_v41, 5  ;;  %v4955_v41 = vrot.slane %v7988_v29, 9  ;;  %v2836_v5 = vrot.slane %v7990_v38, 5 }
  0xbf   : > { %5510 = vmatpush3.bf16.msra.mxu0 %v4457_v11  ;;  %5455 = vmatprep.mubr.msk.bf16.mxu0 %vm370_vm1, %v5034_v58  ;;  %v6763_v58 = vld [vmem:[%s5727_s7 + $0x64] sm:$0xf]  ;;  %v2823_v16 = vsel %vm5936_vm7, %v2821_v3, %v2822_v51  ;;  %v2828_v33 = vrot.slane %v2826_v46, 4  ;;  %v2850_v40 = vrot.slane %v6595_v44, 5  ;;  %v2854_v53 = vrot.slane %v6556_v37, 5 }
  0xc0   : > { %v2816_v13 = vsel %vm5936_vm7, %v2814_v32, %v2815_v7  ;;  %v5038_v54 = vcombine.low %v6755_v56, %v6763_v58  ;;  %v6782_v32 = vld [vmem:[%s5727_s7 + $0x70] sm:$0xf]  ;;  %v7989_v7 = vld [vmem:[#allocation6_spill] sm:$0xff]  ;;  %v2861_v4 = vrot.slane %v6578_v0, 5  ;;  %v2864_v17 = vrot.slane %v6621_v50, 5 }
  0xc1   : > { %v4967_v19 = vcombine.low %v2813_v62, %v2816_v13  ;;  %v2827_v62 = vsel %vm5936_vm7, %v4954_v8, %v2826_v46  ;;  %v4968_v13 = vcombine.low %v2820_v55, %v2823_v16  ;;  %v2833_v28 = vrot.slane %v7989_v7, 5  ;;  %v6802_v55 = vld [vmem:[%s5727_s7 + $0x78] sm:$0xf]  ;;  %v6805_v46 = vld [vmem:[%s5727_s7 + $0x7c] sm:$0xf]  ;;  %7998 = vst [vmem:[#allocation6_spill] sm:$0xff] %v6888_v21 }
  0xc2   : > { %v2830_v51 = vsel %vm5936_vm7, %v2828_v33, %v2829_v63  ;;  %v5039_v8 = vcombine.low %v6774_v59, %v6782_v32  ;;  %v7991_v33 = vld [vmem:[#allocation2_spill] sm:$0xff]  ;;  %v6827_v63 = vld [vmem:[%s5727_s7 + $0x88] sm:$0xf]  ;;  %v2856_v37 = vrot.slane %v2854_v53, 4  ;;  %v3850_v0 = vshll.u32 %v6888_v21, 16 }
  0xc3   : > { %v6810_v38 = vsel %vm5936_vm7, %v4955_v41, %v2833_v28  ;;  %v4956_v29 = vrot.slane %v7991_v33, 9  ;;  %v5040_v41 = vcombine.low %v6802_v55, %v6805_v46  ;;  %7994 = vst [vmem:[#allocation3_spill] sm:$0xff] %v6827_v63  ;;  %v6914_v50 = vld [vmem:[%s5727_s7 + $0xa8] sm:$0xf] }
  0xc4   : > { %5430 = vmatmul.mubr.msk.bf16.gmra.mxu1 %vm370_vm1, %v4966_v61  ;;  %v2840_v61 = vrot.slane %v6511_v20, 5 }
  0xc5   : > { %5433 = vmatprep.mubr.msk.bf16.mxu1 %vm370_vm1, %v4967_v19  ;;  %v2835_v19 = vrot.slane %v2833_v28, 4  ;;  %v2847_v28 = vrot.slane %v6533_v30, 5 }
  0xc6   : > { %5456 = vmatmul.mubr.msk.bf16.gmra.mxu0 %vm370_vm1, %v5035_v22  ;;  %v4969_v22 = vcombine.low %v2827_v62, %v2830_v51  ;;  %v6824_v51 = vld [vmem:[%s5727_s7 + $0x84] sm:$0xf]  ;;  %v6832_v33 = vsel %vm5936_vm7, %v4956_v29, %v2840_v61  ;;  %v2842_v20 = vrot.slane %v2840_v61, 4 }
  0xc7   : > { %5459 = vmatprep.mubr.msk.bf16.mxu0 %vm370_vm1, %v5036_v42  ;;  %v2837_v3 = vsel %vm5936_vm7, %v2835_v19, %v2836_v5  ;;  %v7992_v42 = vld [vmem:[#allocation10_spill] sm:$0xff]  ;;  %7993 = vst [vmem:[#allocation4_spill] sm:$0xff] %v6824_v51  ;;  %v3796_v61 = vshll.u32 %v6824_v51, 16  ;;  %v2849_v44 = vrot.slane %v2847_v28, 4 }
  0xc8   : > { %v2843_v62 = vrot.slane %v7992_v42, 5  ;;  %v4970_v7 = vcombine.low %v6810_v38, %v2837_v3  ;;  %v7995_v42 = vld [vmem:[#allocation7_spill] sm:$0xff]  ;;  %v5041_v3 = vcombine.low %v6824_v51, %v6827_v63  ;;  %v3793_v38 = vshrl.u32 %v6824_v51, 16 }
  0xc9   : > { %v4957_v16 = vrot.slane %v7995_v42, 9  ;;  %v6872_v42 = vsel %vm5936_vm7, %v2849_v44, %v2850_v40 }
  0xca   : > { %v2844_v11 = vsel %vm5936_vm7, %v2842_v20, %v2843_v62  ;;  %v3802_v62 = vshll.u32 %v6827_v63, 16  ;;  %v6853_v20 = vld [vmem:[%s5727_s7 + $0x90] sm:$0xf] }
  0xcb   : > { %v4971_v29 = vcombine.low %v6832_v33, %v2844_v11  ;;  %v6849_v30 = vsel %vm5936_vm7, %v4957_v16, %v2847_v28  ;;  %v6862_v11 = vrot.slane %v3796_v61, 5  ;;  %v3806_v16 = vshrl.u32 %v6827_v63, 16  ;;  %v6867_v33 = vld [vmem:[%s5727_s7 + $0x94] sm:$0xf]  ;;  %v6879_v61 = vld [vmem:[%s5727_s7 + $0x9c] sm:$0xf] }
  0xcc   : > { %5434 = vmatmul.mubr.msk.bf16.gmra.mxu1 %vm370_vm1, %v4968_v13  ;;  %v6860_v13 = vrot.slane %v3793_v38, 4  ;;  %v7996_v38 = vld [vmem:[#allocation9_spill] sm:$0xff]  ;;  %7997 = vst [vmem:[#allocation5_spill] sm:$0xff] %v6879_v61  ;;  %v4972_v5 = vcombine.low %v6849_v30, %v6872_v42  ;;  %v8010_v30 = vshll.u32 %v6661_v60, 16  ;;  %v3610_v42 = vshll.u32 %v6664_v14, 16 }
  0xcd   : > { %5437 = vmatprep.mubr.msk.bf16.mxu1 %vm370_vm1, %v4969_v22  ;;  %v4958_v19 = vrot.slane %v7996_v38, 9  ;;  %v6883_v28 = vrot.slane %v3806_v16, 4  ;;  %v3844_v38 = vshll.u32 %v6879_v61, 16 }
  0xce   : > { %5460 = vmatmul.mubr.msk.bf16.gmra.mxu0 %vm370_vm1, %v5037_v31  ;;  %v6874_v31 = vrot.slane %v3802_v62, 5  ;;  %v3841_v62 = vshrl.u32 %v6879_v61, 16 }
  0xcf   : > { %5463 = vmatprep.mubr.msk.bf16.mxu0 %vm370_vm1, %v5038_v54  ;;  %v2857_v54 = vrot.slane %v6601_v34, 5  ;;  %v6897_v16 = vsel %vm5936_vm7, %v4958_v19, %v2854_v53  ;;  %v7999_v34 = vld [vmem:[#allocation11_spill] sm:$0xff] }
  0xd0   : > { %v4959_v22 = vrot.slane %v7999_v34, 9  ;;  %v2863_v34 = vrot.slane %v2861_v4, 4  ;;  %v6924_v27 = vrot.slane %v3841_v62, 4  ;;  %v6942_v62 = vrot.slane %v3850_v0, 5 }
  0xd1   : > { %v2858_v19 = vsel %vm5936_vm7, %v2856_v37, %v2857_v54  ;;  %v6926_v54 = vrot.slane %v3844_v38, 5  ;;  %v6947_v37 = vld [vmem:[%s5727_s7 + $0xb8] sm:$0xf]  ;;  %v3579_v38 = vrot.slane %v3577_v9, 4 }
  0xd2   : > { %v6910_v53 = vsel %vm5936_vm7, %v4959_v22, %v2861_v4  ;;  %v4973_v44 = vcombine.low %v6897_v16, %v2858_v19  ;;  %v3854_v22 = vshrl.u32 %v6888_v21, 16  ;;  %v6931_v4 = vld [vmem:[%s5727_s7 + $0xb4] sm:$0xf]  ;;  %8002 = vst [vmem:[#allocation10_spill] sm:$0xff] %v6942_v62  ;;  %8003 = vst [vmem:[#allocation7_spill] sm:$0xff] %v6947_v37  ;;  %v3586_v16 = vshll.u32 %v6642_v2, 16 }
  0xd3   : > { %8000 = vst [vmem:[#allocation8_spill] sm:$0xff] %v6926_v54  ;;  %8001 = vst [vmem:[#allocation2_spill] sm:$0xff] %v6931_v4  ;;  %v3902_v39 = vshrl.u32 %v6947_v37, 16  ;;  %v5089_v54 = vrot.slane %v6639_v24, 9 }
  0xd4   : > { %5438 = vmatmul.mubr.msk.bf16.gmra.mxu1 %vm370_vm1, %v4970_v7  ;;  %v6940_v7 = vsel %vm5936_vm7, %v2863_v34, %v2864_v17  ;;  %v3596_v17 = vshll.u32 %v6920_v18, 16  ;;  %v3892_v34 = vshll.u32 %v6931_v4, 16  ;;  %v3588_v19 = vrot.slane %v3586_v16, 5 }
  0xd5   : > { %5441 = vmatprep.mubr.msk.bf16.mxu1 %vm370_vm1, %v4971_v29  ;;  %v6955_v29 = vrot.slane %v3854_v22, 4  ;;  %v3592_v22 = vrot.slane %v3590_v43, 4  ;;  %v3898_v43 = vshll.u32 %v6947_v37, 16 }
  0xd6   : > { %5464 = vmatmul.mubr.msk.bf16.gmra.mxu0 %vm370_vm1, %v5039_v8  ;;  %v3598_v8 = vrot.slane %v3596_v17, 5  ;;  %v6985_v1 = vrot.slane %v3892_v34, 5  ;;  %v7002_v17 = vrot.slane %v3902_v39, 4  ;;  %v3603_v34 = vrot.slane %v3601_v6, 4  ;;  %v7017_v39 = vld [vmem:[%s7896_s2] ss:$0 sm:$0xff] }
  0xd7   : > { %5467 = vmatprep.mubr.msk.bf16.mxu0 %vm370_vm1, %v5040_v41  ;;  %8004 = vst [vmem:[#allocation9_spill] sm:$0xff] %v6955_v29  ;;  %v3582_v41 = vrot.slane %v3580_v15, 5  ;;  %v3889_v15 = vshrl.u32 %v6931_v4, 16  ;;  %v6987_v0 = vrot.slane %v3898_v43, 5  ;;  %v3593_v16 = vor.u32 %v3592_v22, %v3588_v19 }
  0xd8   : > { %8007 = vst [vmem:[#allocation12_spill] sm:$0xff] %v6985_v1  ;;  %8009 = vst [vmem:[#allocation14_spill] sm:$0xff] %v7002_v17  ;;  %v3606_v6 = vrot.slane %v8010_v30, 5  ;;  %v8011_v22 = vshrl.u32 %v6664_v14, 16  ;;  %v8014_v43 = vshll.u32 %v6681_v12, 16  ;;  %v3612_v17 = vrot.slane %v3610_v42, 5 }
  0xd9   : > { %v3583_v9 = vor.u32 %v3582_v41, %v3579_v38  ;;  %v6983_v45 = vrot.slane %v3889_v15, 4  ;;  %8008 = vst [vmem:[#allocation13_spill] sm:$0xff] %v6987_v0  ;;  %v6990_v38 = vld [vmem:[%s5727_s7 + $0x2c] sm:$0x1]  ;;  %v7034_v0 = vld [vmem:[%s5727_s7 + $0x38] sm:$0x1] }
  0xda   : > { %v3630_v10 = vrot.slane %v8014_v43, 5  ;;  %v3607_v41 = vor.u32 %v3606_v6, %v3603_v34  ;;  %v8015_v1 = vshrl.u32 %v6684_v35, 16 }
  0xdb   : > { %v3584_v40 = vrot.slane %v3583_v9, 4  ;;  %8006 = vst [vmem:[#allocation11_spill] sm:$0xff] %v6983_v45  ;;  %v3616_v9 = vrot.slane %v8011_v22, 4  ;;  %v5273_v30 = vpop.f32.mrf.mxu0  ;;  %v3634_v22 = vshll.u32 %v6684_v35, 16 }
  0xdc   : > { %5442 = vmatmul.mubr.msk.bf16.gmra.mxu1 %vm370_vm1, %v4972_v5  ;;  %v3640_v45 = vrot.slane %v8015_v1, 4  ;;  %v3608_v63 = vrot.slane %v3607_v41, 4  ;;  %v3644_v1 = vshll.u32 %v7034_v0, 16 }
  0xdd   : > { %5445 = vmatprep.mubr.msk.bf16.mxu1 %vm370_vm1, %v4973_v44  ;;  %v3589_v5 = vsel %vm5921_vm6, %v3584_v40, %v3588_v19  ;;  %v3594_v40 = vrot.slane %v3593_v16, 4  ;;  %v3620_v44 = vshll.u32 %v6990_v38, 16  ;;  %v8013_v19 = vshrl.u32 %v6681_v12, 16  ;;  %v451_v6 = vpop.f32.mrf.mxu0 }
  0xde   : > { %5468 = vmatmul.mubr.msk.bf16.gmra.mxu0 %vm370_vm1, %v5041_v3  ;;  %v8012_v3 = vcombine.low %v6853_v20, %v6867_v33  ;;  %v3617_v34 = vor.u32 %v3616_v9, %v3612_v17  ;;  %v3636_v42 = vrot.slane %v3634_v22, 5  ;;  %v7046_v29 = vadd.f32 %v7017_v39, %v451_v6 }
  0xdf   : > { %v3627_v15 = vrot.slane %v8013_v19, 4  ;;  %v3599_v16 = vsel %vm5921_vm6, %v3594_v40, %v3598_v8  ;;  %v3622_v19 = vrot.slane %v3620_v44, 5  ;;  %v5289_v8 = vpop.f32.mrf.mxu1  ;;  %v4246_v40 = vrot.slane %v6642_v2, 5 }
  0xe0   : > { %5471 = vmatprep.mubr.msk.bf16.mxu0 %vm370_vm1, %v8012_v3  ;;  %v7043_v3 = vadd.f32 %v5273_v30, %v7017_v39  ;;  %v5061_v43 = vcombine.low %v3589_v5, %v3599_v16  ;;  %v3618_v41 = vrot.slane %v3617_v34, 4  ;;  %v5274_v5 = vpop.f32.mrf.mxu0  ;;  %v3641_v9 = vor.u32 %v3640_v45, %v3636_v42 }
  0xe1   : > { %v3631_v51 = vor.u32 %v3630_v10, %v3627_v15  ;;  %v3613_v10 = vsel %vm5921_vm6, %v3608_v63, %v3612_v17  ;;  %v580_v24 = vadd.f32 %v5289_v8, %v7017_v39  ;;  %v7064_v44 = vadd.f32 %v5274_v5, %v7017_v39 }
  0xe2   : > { %v3646_v63 = vrot.slane %v3644_v1, 5  ;;  %v8017_v45 = vcombine.low %v6879_v61, %v6888_v21  ;;  %v3623_v2 = vsel %vm5921_vm6, %v3618_v41, %v3622_v19  ;;  %v3642_v17 = vrot.slane %v3641_v9, 4 }
  0xe3   : > { %v3632_v62 = vrot.slane %v3631_v51, 4  ;;  %v8016_v51 = vcombine.low %v6910_v53, %v6940_v7  ;;  %v515_v53 = vpop.f32.mrf.mxu1  ;;  %v454_v7 = vpop.f32.mrf.mxu0  ;;  %v4247_v30 = vsel %vm5936_vm7, %v5089_v54, %v4246_v40  ;;  %v4248_v22 = vrot.slane %v4246_v40, 4  ;;  %608 = vst [vmem:[%s7053_s22 + $0x90] sm:$0xff] %v580_v24 }
  0xe4   : > { %v5062_v16 = vcombine.low %v3613_v10, %v3623_v2  ;;  %v7083_v34 = vadd.f32 %v7017_v39, %v515_v53  ;;  %v4249_v19 = vrot.slane %v6920_v18, 5  ;;  %v3647_v54 = vsel %vm5921_vm6, %v3642_v17, %v3646_v63 }
  0xe5   : > { %5446 = vmatmul.mubr.msk.bf16.gmra.mxu1 %vm370_vm1, %v8016_v51  ;;  %v3637_v15 = vsel %vm5921_vm6, %v3632_v62, %v3636_v42  ;;  %v8018_v62 = vcombine.low %v6914_v50, %v6917_v36  ;;  %v5290_v6 = vpop.f32.mrf.mxu1  ;;  %v7092_v42 = vld [vmem:[%s5727_s7 + $0x44] sm:$0x1]  ;;  %v8020_v1 = vshrl.u32 %v6704_v23, 16  ;;  %v8021_v41 = vshll.u32 %v6704_v23, 16  ;;  %v5277_v51 = vpop.f32.mrf.mxu0 }
  0xe6   : > { %5472 = vmatmul.mubr.msk.bf16.gmra.mxu0 %vm370_vm1, %v8017_v45  ;;  %5481 = vmatprep.mubr.msk.bf16.mxu1 %vm370_vm1, %v5061_v43  ;;  %8019 = vst [vmem:[#allocation15_spill] sm:$0xff] %v7083_v34  ;;  %v7086_v43 = vadd.f32 %v7017_v39, %v454_v7  ;;  %v3658_v5 = vshll.u32 %v6707_v26, 16  ;;  %v7100_v9 = vadd.f32 %v5290_v6, %v7017_v39  ;;  %v8023_v24 = vshrl.u32 %v6707_v26, 16 }
  0xe7   : > { %5475 = vmatprep.mubr.msk.bf16.mxu0 %vm370_vm1, %v8018_v62  ;;  %v3651_v8 = vrot.slane %v8020_v1, 4  ;;  %v3654_v10 = vrot.slane %v8021_v41, 5  ;;  %v5063_v40 = vcombine.low %v3637_v15, %v3647_v54  ;;  %v4250_v18 = vsel %vm5936_vm7, %v4248_v22, %v4249_v19  ;;  %v518_v45 = vpop.f32.mrf.mxu1  ;;  %v467_v19 = vpop.f32.mrf.mxu0 }
  0xe8   : > { %8022 = vst [vmem:[#allocation16_spill] sm:$0xff] %v7100_v9  ;;  %v3664_v63 = vrot.slane %v8023_v24, 4  ;;  %v5104_v2 = vcombine.low %v4247_v30, %v4250_v18  ;;  %v7107_v53 = vadd.f32 %v5277_v51, %v7017_v39  ;;  %v3660_v17 = vrot.slane %v3658_v5, 5 }
  0xe9   : > { %v3655_v7 = vor.u32 %v3654_v10, %v3651_v8  ;;  %v7110_v62 = vadd.f32 %v7017_v39, %v518_v45  ;;  %v3668_v6 = vshll.u32 %v7092_v42, 16  ;;  %v5090_v15 = vrot.slane %v6661_v60, 9  ;;  %v5293_v54 = vpop.f32.mrf.mxu1  ;;  %v5278_v5 = vpop.f32.mrf.mxu0 }
  0xea   : > { %v4253_v22 = vrot.slane %v6664_v14, 5  ;;  %v3665_v41 = vor.u32 %v3664_v63, %v3660_v17  ;;  %v4256_v30 = vrot.slane %v6990_v38, 5  ;;  %v7117_v18 = vadd.f32 %v7017_v39, %v467_v19 }
  0xeb   : > { %8024 = vst [vmem:[#allocation17_spill] sm:$0xff] %v7110_v62  ;;  %v3656_v1 = vrot.slane %v3655_v7, 4  ;;  %v7121_v8 = vadd.f32 %v5293_v54, %v7017_v39  ;;  %v3670_v10 = vrot.slane %v3668_v6, 5  ;;  %v8026_v51 = vcombine.low %v6931_v4, %v6947_v37  ;;  %v531_v24 = vpop.f32.mrf.mxu1 }
  0xec   : > { %v4254_v60 = vsel %vm5936_vm7, %v5090_v15, %v4253_v22  ;;  %v4255_v14 = vrot.slane %v4253_v22, 4  ;;  %v7133_v63 = vadd.f32 %v5278_v5, %v7017_v39  ;;  %v8027_v45 = vshrl.u32 %v6713_v49, 16  ;;  %v7144_v22 = vld [vmem:[%s5727_s7 + $0x50] sm:$0x1] }
  0xed   : > { %5482 = vmatmul.mubr.msk.bf16.vlgmr.msra.gmra.mxu1 %vm370_vm1, %v5062_v16  ;;  %8025 = vst [vmem:[#allocation18_spill] sm:$0xff] %v7121_v8  ;;  %v3661_v38 = vsel %vm5921_vm6, %v3656_v1, %v3660_v17  ;;  %v3666_v16 = vrot.slane %v3665_v41, 4  ;;  %v7141_v15 = vadd.f32 %v7017_v39, %v531_v24  ;;  %v8029_v17 = vshll.u32 %v6713_v49, 16  ;;  %v5294_v5 = vpop.f32.mrf.mxu1 }
  0xee   : > { %5476 = vmatmul.mubr.msk.bf16.gmra.mxu0 %vm370_vm1, %v8026_v51  ;;  %5485 = vmatprep.mubr.msk.bf16.mxu1 %vm370_vm1, %v5063_v40  ;;  %v3675_v7 = vrot.slane %v8027_v45, 4  ;;  %v4257_v6 = vsel %vm5936_vm7, %v4255_v14, %v4256_v30  ;;  %v470_v40 = vpop.f32.mrf.mxu0  ;;  %v3682_v54 = vshll.u32 %v6720_v47, 16  ;;  %v8030_v30 = vshrl.u32 %v6720_v47, 16 }
  0xef   : > { %5511 = vmatprep.mubr.msk.bf16.mxu0 %vm370_vm1, %v5104_v2  ;;  %8028 = vst [vmem:[#allocation19_spill] sm:$0xff] %v7141_v15  ;;  %v3678_v19 = vrot.slane %v8029_v17, 5  ;;  %v3671_v1 = vsel %vm5921_vm6, %v3666_v16, %v3670_v10  ;;  %v5105_v41 = vcombine.low %v4254_v60, %v4257_v6  ;;  %v7152_v2 = vadd.f32 %v7017_v39, %v470_v40  ;;  %v534_v8 = vpop.f32.mrf.mxu1 }
  0xf0   : > { %v3688_v14 = vrot.slane %v8030_v30, 4  ;;  %v5064_v51 = vcombine.low %v3661_v38, %v3671_v1  ;;  %v7157_v24 = vadd.f32 %v5294_v5, %v7017_v39  ;;  %v3684_v17 = vrot.slane %v3682_v54, 5  ;;  %v5281_v15 = vpop.f32.mrf.mxu0 }
  0xf1   : > { %v3679_v45 = vor.u32 %v3678_v19, %v3675_v7  ;;  %v3692_v62 = vshll.u32 %v7144_v22, 16  ;;  %v5091_v10 = vrot.slane %v6681_v12, 9  ;;  %v4260_v60 = vrot.slane %v6684_v35, 5  ;;  %v7170_v7 = vld [vmem:[%s5727_s7 + $0x5c] sm:$0x1]  ;;  %v5297_v30 = vpop.f32.mrf.mxu1 }
  0xf2   : > { %8031 = vst [vmem:[#allocation20_spill] sm:$0xff] %v7157_v24  ;;  %v4263_v16 = vrot.slane %v7034_v0, 5  ;;  %v7164_v6 = vadd.f32 %v7017_v39, %v534_v8  ;;  %v3689_v38 = vor.u32 %v3688_v14, %v3684_v17  ;;  %v7167_v1 = vadd.f32 %v5281_v15, %v7017_v39  ;;  %v483_v19 = vpop.f32.mrf.mxu0 }
  0xf3   : > { %v3680_v40 = vrot.slane %v3679_v45, 4  ;;  %v3694_v54 = vrot.slane %v3692_v62, 5  ;;  %v4261_v5 = vsel %vm5936_vm7, %v5091_v10, %v4260_v60  ;;  %v4262_v12 = vrot.slane %v4260_v60, 4 }
  0xf4   : > { %8032 = vst [vmem:[#allocation21_spill] sm:$0xff] %v7164_v6  ;;  %v8033_v35 = vshrl.u32 %v6732_v52, 16  ;;  %v3690_v14 = vrot.slane %v3689_v38, 4  ;;  %v7180_v15 = vadd.f32 %v5297_v30, %v7017_v39  ;;  %v8035_v45 = vshll.u32 %v6732_v52, 16  ;;  %v5282_v6 = vpop.f32.mrf.mxu0 }
  0xf5   : > { %5486 = vmatmul.mubr.msk.bf16.gmra.mxu1 %vm370_vm1, %v5064_v51  ;;  %v3685_v8 = vsel %vm5921_vm6, %v3680_v40, %v3684_v17  ;;  %v4264_v10 = vsel %vm5936_vm7, %v4262_v12, %v4263_v16  ;;  %v3706_v60 = vshll.u32 %v6741_v57, 16  ;;  %v8036_v51 = vshrl.u32 %v6741_v57, 16  ;;  %v547_v40 = vpop.f32.mrf.mxu1 }
  0xf6   : > { %v3699_v0 = vrot.slane %v8033_v35, 4  ;;  %8034 = vst [vmem:[#allocation22_spill] sm:$0xff] %v7180_v15  ;;  %v3702_v62 = vrot.slane %v8035_v45, 5  ;;  %5512 = vmatmul.mubr.msk.bf16.vlgmr.msra.gmra.mxu0 %vm370_vm1, %v5105_v41  ;;  %v3716_v17 = vshll.u32 %v7170_v7, 16  ;;  %v3695_v38 = vsel %vm5921_vm6, %v3690_v14, %v3694_v54  ;;  %v486_v24 = vpop.f32.mrf.mxu0 }
  0xf7   : > { %v3712_v35 = vrot.slane %v8036_v51, 4  ;;  %v5106_v30 = vcombine.low %v4261_v5, %v4264_v10  ;;  %v5092_v45 = vrot.slane %v6704_v23, 9  ;;  %v5065_v41 = vcombine.low %v3685_v8, %v3695_v38  ;;  %v5298_v34 = vpop.f32.mrf.mxu1 }
  0xf8   : > { %v3703_v15 = vor.u32 %v3702_v62, %v3699_v0  ;;  %v3708_v9 = vrot.slane %v3706_v60, 5  ;;  %v3718_v16 = vrot.slane %v3716_v17, 5  ;;  %v4267_v12 = vrot.slane %v6707_v26, 5  ;;  %v5285_v23 = vpop.f32.mrf.mxu0 }
  0xf9   : > { %5515 = vmatprep.mubr.msk.bf16.mxu0 %vm370_vm1, %v5106_v30  ;;  %v4270_v4 = vrot.slane %v7092_v42, 5  ;;  %v7198_v37 = vadd.f32 %v7017_v39, %v483_v19  ;;  %v7201_v54 = vadd.f32 %v7017_v39, %v547_v40  ;;  %5489 = vmatprep.mubr.msk.bf16.mxu1 %vm370_vm1, %v5065_v41  ;;  %v7207_v8 = vadd.f32 %v5282_v6, %v7017_v39  ;;  %v550_v14 = vpop.f32.mrf.mxu1 }
  0xfa   : > { %v3704_v51 = vrot.slane %v3703_v15, 4  ;;  %v3713_v5 = vor.u32 %v3712_v35, %v3708_v9  ;;  %v4268_v0 = vsel %vm5936_vm7, %v5092_v45, %v4267_v12  ;;  %v4269_v26 = vrot.slane %v4267_v12, 4  ;;  %v7210_v15 = vld [vmem:[%s5727_s7 + $0x68] sm:$0x1]  ;;  %v499_v60 = vpop.f32.mrf.mxu0 }
  0xfb   : > { %8037 = vst [vmem:[#allocation23_spill] sm:$0xff] %v7201_v54  ;;  %v7215_v19 = vadd.f32 %v5298_v34, %v7017_v39  ;;  %v7218_v62 = vadd.f32 %v7017_v39, %v486_v24  ;;  %v7221_v10 = vadd.f32 %v7017_v39, %v550_v14  ;;  %v8040_v17 = vshrl.u32 %v6755_v56, 16  ;;  %v5303_v30 = vpop.f32.mrf.mxu1  ;;  %v8087_v25 = vld [vmem:[#allocation21_spill] sm:$0xff] }
  0xfc   : > { %v3709_v42 = vsel %vm5921_vm6, %v3704_v51, %v3708_v9  ;;  %v3714_v35 = vrot.slane %v3713_v5, 4  ;;  %v4271_v6 = vsel %vm5936_vm7, %v4269_v26, %v4270_v4  ;;  %v8041_v38 = vshll.u32 %v6755_v56, 16  ;;  %v5286_v51 = vpop.f32.mrf.mxu0 }
  0xfd   : > { %8038 = vst [vmem:[#allocation24_spill] sm:$0xff] %v7215_v19  ;;  %8039 = vst [vmem:[#allocation25_spill] sm:$0xff] %v7221_v10  ;;  %v3723_v40 = vrot.slane %v8040_v17, 4  ;;  %v5107_v34 = vcombine.low %v4268_v0, %v4271_v6  ;;  %v3730_v45 = vshll.u32 %v6763_v58, 16  ;;  %v8042_v24 = vshrl.u32 %v6763_v58, 16  ;;  %v1108_v17 = vpop.f32.mrf.mxu1 }
  0xfe   : > { %v3726_v9 = vrot.slane %v8041_v38, 5  ;;  %v3740_v12 = vshll.u32 %v7210_v15, 16  ;;  %v3719_v4 = vsel %vm5921_vm6, %v3714_v35, %v3718_v16  ;;  %v5093_v26 = vrot.slane %v6713_v49, 9  ;;  %v502_v10 = vpop.f32.mrf.mxu0  ;;  %v7245_v49 = vld [vmem:[%s5727_s7 + $0x74] sm:$0x1] }
  0xff   : > { %v3736_v41 = vrot.slane %v8042_v24, 4  ;;  %v4274_v14 = vrot.slane %v6720_v47, 5  ;;  %v5066_v38 = vcombine.low %v3709_v42, %v3719_v4  ;;  %5516 = vmatmul.mubr.msk.bf16.gmra.mxu0 %vm370_vm1, %v5107_v34  ;;  %v3732_v0 = vrot.slane %v3730_v45, 5  ;;  %v5304_v47 = vpop.f32.mrf.mxu1 }
 0x100   : > { %v3727_v5 = vor.u32 %v3726_v9, %v3723_v40  ;;  %v3742_v6 = vrot.slane %v3740_v12, 5  ;;  %v4277_v24 = vrot.slane %v7144_v22, 5  ;;  %v7242_v16 = vadd.f32 %v5285_v23, %v7017_v39  ;;  %v7255_v45 = vpop.f32.mrf.mxu0 }
 0x101   : > { %v4275_v54 = vsel %vm5936_vm7, %v5093_v26, %v4274_v14  ;;  %v4276_v61 = vrot.slane %v4274_v14, 4  ;;  %5490 = vmatmul.mubr.msk.bf16.gmra.mxu1 %vm370_vm1, %v5066_v38  ;;  %v3737_v42 = vor.u32 %v3736_v41, %v3732_v0  ;;  %v7249_v35 = vadd.f32 %v5303_v30, %v7043_v3  ;;  %v1111_v30 = vpop.f32.mrf.mxu1 }
 0x102   : > { %v3728_v19 = vrot.slane %v3727_v5, 4  ;;  %v8043_v22 = vshrl.u32 %v6774_v59, 16  ;;  %v8044_v9 = vshll.u32 %v6774_v59, 16  ;;  %v3754_v4 = vshll.u32 %v6782_v32, 16 }
 0x103   : > { %v4278_v12 = vsel %vm5936_vm7, %v4276_v61, %v4277_v24  ;;  %v8045_v41 = vshrl.u32 %v6782_v32, 16  ;;  %v3738_v5 = vrot.slane %v3737_v42, 4  ;;  %v3764_v38 = vshll.u32 %v7245_v49, 16 }
 0x104   : > { %v3747_v40 = vrot.slane %v8043_v22, 4  ;;  %v3750_v34 = vrot.slane %v8044_v9, 5  ;;  %v3733_v23 = vsel %vm5921_vm6, %v3728_v19, %v3732_v0  ;;  %v5108_v26 = vcombine.low %v4275_v54, %v4278_v12  ;;  %v7265_v22 = vpop.f32.mrf.mxu0  ;;  %v5307_v0 = vpop.f32.mrf.mxu1 }
 0x105   : > { %v3760_v3 = vrot.slane %v8045_v41, 4  ;;  %v3756_v9 = vrot.slane %v3754_v4, 5  ;;  %v5094_v19 = vrot.slane %v6732_v52, 9  ;;  %v4281_v61 = vrot.slane %v6741_v57, 5 }
 0x106   : > { %v3751_v14 = vor.u32 %v3750_v34, %v3747_v40  ;;  %v3743_v24 = vsel %vm5921_vm6, %v3738_v5, %v3742_v6  ;;  %5519 = vmatprep.mubr.msk.bf16.mxu0 %vm370_vm1, %v5108_v26  ;;  %v3766_v42 = vrot.slane %v3764_v38, 5  ;;  %v4284_v40 = vrot.slane %v7170_v7, 5  ;;  %v7274_v34 = vpop.f32.mrf.mxu0  ;;  %v1124_v57 = vpop.f32.mrf.mxu1  ;;  %v7288_v7 = vld [vmem:[%s5727_s7 + $0x80] sm:$0x1] }
 0x107   : > { %v5067_v12 = vcombine.low %v3733_v23, %v3743_v24  ;;  %v3761_v4 = vor.u32 %v3760_v3, %v3756_v9  ;;  %v4282_v52 = vsel %vm5936_vm7, %v5094_v19, %v4281_v61  ;;  %v4283_v41 = vrot.slane %v4281_v61, 4 }
 0x108   : > { %v3752_v54 = vrot.slane %v3751_v14, 4  ;;  %v7281_v6 = vadd.f32 %v7017_v39, %v499_v60  ;;  %v1219_v5 = vadd.f32 %v1108_v17, %v7046_v29  ;;  %v7285_v26 = vadd.f32 %v5286_v51, %v7017_v39  ;;  %v7290_v23 = vpop.f32.mrf.mxu0 }
 0x109   : > { %5493 = vmatprep.mubr.msk.bf16.mxu1 %vm370_vm1, %v5067_v12  ;;  %v3762_v3 = vrot.slane %v3761_v4, 4  ;;  %v4285_v14 = vsel %vm5936_vm7, %v4283_v41, %v4284_v40  ;;  %v1222_v38 = vadd.f32 %v5304_v47, %v7064_v44  ;;  %v7297_v60 = vadd.f32 %v7017_v39, %v502_v10  ;;  %v7316_v41 = vld [vmem:[%s5727_s7 + $0x8c] sm:$0x1] }
 0x10a   : > { %v3757_v21 = vsel %vm5921_vm6, %v3752_v54, %v3756_v9  ;;  %v5308_v9 = vpop.f32.mrf.mxu1  ;;  %v5109_v29 = vcombine.low %v4282_v52, %v4285_v14  ;;  %v1220_v51 = vadd.f32 %v1111_v30, %v7086_v43  ;;  %v8046_v17 = vshrl.u32 %v6802_v55, 16  ;;  %v7304_v54 = vpop.f32.mrf.mxu0 }
 0x10b   : > { %v8047_v61 = vshll.u32 %v6802_v55, 16  ;;  %v3767_v40 = vsel %vm5921_vm6, %v3762_v3, %v3766_v42  ;;  %v3778_v44 = vshll.u32 %v6805_v46, 16  ;;  %v8048_v39 = vshrl.u32 %v6805_v46, 16 }
 0x10c   : > { %v3771_v19 = vrot.slane %v8046_v17, 4  ;;  %v3788_v47 = vshll.u32 %v7288_v7, 16  ;;  %v1127_v12 = vpop.f32.mrf.mxu1  ;;  %v5068_v43 = vcombine.low %v3757_v21, %v3767_v40  ;;  %5520 = vmatmul.mubr.msk.bf16.gmra.mxu0 %vm370_vm1, %v5109_v29  ;;  %v5095_v4 = vrot.slane %v6755_v56, 9  ;;  %v7318_v14 = vpop.f32.mrf.mxu0 }
 0x10d   : > { %v3774_v24 = vrot.slane %v8047_v61, 5  ;;  %v3784_v10 = vrot.slane %v8048_v39, 4  ;;  %v4288_v52 = vrot.slane %v6763_v58, 5  ;;  %v3780_v42 = vrot.slane %v3778_v44, 5 }
 0x10e   : > { %v3790_v3 = vrot.slane %v3788_v47, 5  ;;  %v4291_v17 = vrot.slane %v7210_v15, 5  ;;  %v1225_v61 = vadd.f32 %v5307_v0, %v7107_v53  ;;  %v5311_v39 = vpop.f32.mrf.mxu1  ;;  %5494 = vmatmul.mubr.msk.bf16.gmra.mxu1 %vm370_vm1, %v5068_v43  ;;  %v7327_v58 = vadd.f32 %v7255_v45, %v7249_v35 }
 0x10f   : > { %v3775_v30 = vor.u32 %v3774_v24, %v3771_v19  ;;  %v4289_v29 = vsel %vm5936_vm7, %v5095_v4, %v4288_v52  ;;  %v4290_v56 = vrot.slane %v4288_v52, 4  ;;  %v7329_v19 = vpop.f32.mrf.mxu0  ;;  %v3785_v24 = vor.u32 %v3784_v10, %v3780_v42 }
 0x110   : > { %v3799_v15 = vor.u32 %v6862_v11, %v6860_v13  ;;  %v3809_v53 = vor.u32 %v6883_v28, %v6874_v31  ;;  %v3812_v0 = vshll.u32 %v7316_v41, 16  ;;  %v7336_v40 = vpop.f32.mrf.mxu1  ;;  %v8049_v45 = vrot.slane %v6782_v32, 5 }
 0x111   : > { %v3776_v21 = vrot.slane %v3775_v30, 4  ;;  %v4292_v35 = vsel %vm5936_vm7, %v4290_v56, %v4291_v17  ;;  %v8050_v10 = vrot.slane %v6774_v59, 9  ;;  %v7350_v47 = vpop.f32.mrf.mxu0  ;;  %v3786_v43 = vrot.slane %v3785_v24, 4 }
 0x112   : > { %v8051_v11 = vmov %v8049_v45  ;;  %v5110_v30 = vcombine.low %v4289_v29, %v4292_v35  ;;  %v3800_v4 = vrot.slane %v3799_v15, 4  ;;  %v3810_v52 = vrot.slane %v3809_v53, 4  ;;  %v7370_v15 = vld [vmem:[%s5727_s7 + $0x98] sm:$0x1] }
 0x113   : > { %v3781_v44 = vsel %vm5921_vm6, %v3776_v21, %v3780_v42  ;;  %v4296_v13 = vsel %vm5936_vm7, %v8050_v10, %v8049_v45  ;;  %v4297_v28 = vrot.slane %v8051_v11, 4  ;;  %v7352_v42 = vpop.f32.mrf.mxu1  ;;  %v3814_v17 = vrot.slane %v3812_v0, 5 }
 0x114   : > { %v8052_v21 = vrot.slane %v7245_v49, 5  ;;  %v1223_v56 = vadd.f32 %v1124_v57, %v7117_v18  ;;  %v7360_v32 = vadd.f32 %v7265_v22, %v1219_v5  ;;  %v3791_v45 = vsel %vm5921_vm6, %v3786_v43, %v3790_v3  ;;  %5523 = vmatprep.mubr.msk.bf16.mxu0 %vm370_vm1, %v5110_v30  ;;  %v7378_v5 = vpop.f32.mrf.mxu0  ;;  %v7405_v30 = vld [vmem:[%s5727_s7 + $0xa4] sm:$0x1] }
 0x115   : > { %v3805_v29 = vsel %vm5921_vm6, %v3800_v4, %v6874_v31  ;;  %v1226_v49 = vadd.f32 %v5308_v9, %v7133_v63  ;;  %v1143_v53 = vpop.f32.mrf.mxu1  ;;  %v5069_v0 = vcombine.low %v3781_v44, %v3791_v45  ;;  %v3815_v18 = vsel %vm5921_vm6, %v3810_v52, %v3814_v17 }
 0x116   : > { %v4299_v59 = vsel %vm5936_vm7, %v4297_v28, %v8052_v21  ;;  %v7375_v22 = vadd.f32 %v7274_v34, %v1222_v38  ;;  %v1224_v57 = vadd.f32 %v1127_v12, %v7152_v2  ;;  %v5070_v3 = vcombine.low %v3805_v29, %v3815_v18  ;;  %v8056_v21 = vld [vmem:[#allocation8_spill] sm:$0xff]  ;;  %v8058_v29 = vld [vmem:[#allocation9_spill] sm:$0xff] }
 0x117   : > { %v5111_v24 = vcombine.low %v4296_v13, %v4299_v59  ;;  %v7382_v31 = vadd.f32 %v7290_v23, %v1220_v51  ;;  %v8053_v63 = vshrl.u32 %v6853_v20, 16  ;;  %v8054_v44 = vshll.u32 %v6853_v20, 16  ;;  %v7388_v10 = vpop.f32.mrf.mxu1  ;;  %5497 = vmatprep.mubr.msk.bf16.mxu1 %vm370_vm1, %v5069_v0  ;;  %v7396_v51 = vpop.f32.mrf.mxu0 }
 0x118   : > { %v3826_v2 = vshll.u32 %v6867_v33, 16  ;;  %v8055_v34 = vshrl.u32 %v6867_v33, 16  ;;  %v3836_v12 = vshll.u32 %v7370_v15, 16  ;;  %v5097_v23 = vrot.slane %v6802_v55, 9  ;;  %5498 = vmatmul.mubr.msk.bf16.gmra.mxu1 %vm370_vm1, %v5070_v3 }
 0x119   : > { %5524 = vmatmul.mubr.msk.bf16.gmra.mxu0 %vm370_vm1, %v5111_v24  ;;  %v3819_v9 = vrot.slane %v8053_v63, 4  ;;  %v3822_v35 = vrot.slane %v8054_v44, 5  ;;  %v4302_v11 = vrot.slane %v6805_v46, 5  ;;  %v4305_v28 = vrot.slane %v7288_v7, 5  ;;  %v7407_v4 = vpop.f32.mrf.mxu1  ;;  %v7414_v45 = vpop.f32.mrf.mxu0 }
 0x11a   : > { %v3832_v38 = vrot.slane %v8055_v34, 4  ;;  %v7402_v43 = vadd.f32 %v5311_v39, %v7167_v1  ;;  %v3828_v52 = vrot.slane %v3826_v2, 5  ;;  %v3838_v17 = vrot.slane %v3836_v12, 5  ;;  %v8057_v39 = vld [vmem:[#allocation10_spill] sm:$0xff] }
 0x11b   : > { %v3823_v13 = vor.u32 %v3822_v35, %v3819_v9  ;;  %v7410_v55 = vadd.f32 %v7304_v54, %v1225_v61  ;;  %v3847_v59 = vor.u32 %v8056_v21, %v6924_v27  ;;  %v4303_v7 = vsel %vm5936_vm7, %v5097_v23, %v4302_v11  ;;  %v7420_v0 = vpop.f32.mrf.mxu1  ;;  %v8059_v61 = vld [vmem:[#allocation3_spill] sm:$0xff]  ;;  %v8061_v9 = vld [vmem:[#allocation4_spill] sm:$0xff]  ;;  %v7429_v35 = vpop.f32.mrf.mxu0 }
 0x11c   : > { %v4304_v1 = vrot.slane %v4302_v11, 4  ;;  %v3857_v24 = vor.u32 %v8058_v29, %v8057_v39  ;;  %v3833_v18 = vor.u32 %v3832_v38, %v3828_v52  ;;  %v3860_v54 = vshll.u32 %v7405_v30, 16 }
 0x11d   : > { %v3824_v46 = vrot.slane %v3823_v13, 4  ;;  %v3848_v3 = vrot.slane %v3847_v59, 4  ;;  %v8060_v63 = vrot.slane %v8059_v61, 5  ;;  %v8062_v27 = vrot.slane %v8061_v9, 9  ;;  %v7437_v13 = vpop.f32.mrf.mxu1 }
 0x11e   : > { %v4306_v34 = vsel %vm5936_vm7, %v4304_v1, %v4305_v28  ;;  %v3858_v12 = vrot.slane %v3857_v24, 4  ;;  %v3834_v11 = vrot.slane %v3833_v18, 4  ;;  %v3862_v29 = vrot.slane %v3860_v54, 5 }
 0x11f   : > { %v4310_v44 = vsel %vm5936_vm7, %v8062_v27, %v8060_v63  ;;  %v3829_v2 = vsel %vm5921_vm6, %v3824_v46, %v3828_v52  ;;  %v8063_v38 = vmov %v8060_v63  ;;  %v5112_v21 = vcombine.low %v4303_v7, %v4306_v34  ;;  %v7442_v63 = vpop.f32.mrf.mxu0  ;;  %v7454_v7 = vpop.f32.mrf.mxu1 }
 0x120   : > { %v4311_v23 = vrot.slane %v8063_v38, 4  ;;  %v3853_v59 = vsel %vm5921_vm6, %v3848_v3, %v8057_v39  ;;  %v4312_v52 = vrot.slane %v7316_v41, 5  ;;  %v1227_v28 = vadd.f32 %v7336_v40, %v7198_v37 }
 0x121   : > { %v7448_v46 = vadd.f32 %v7318_v14, %v1223_v56  ;;  %v7452_v1 = vadd.f32 %v7352_v42, %v7207_v8  ;;  %v3839_v39 = vsel %vm5921_vm6, %v3834_v11, %v3838_v17  ;;  %5527 = vmatprep.mubr.msk.bf16.mxu0 %vm370_vm1, %v5112_v21  ;;  %v3863_v41 = vsel %vm5921_vm6, %v3858_v12, %v3862_v29  ;;  %v7468_v14 = vld [vmem:[%s5727_s7 + $0xb0] sm:$0x1]  ;;  %v7470_v8 = vpop.f32.mrf.mxu0  ;;  %v7477_v18 = vpop.f32.mrf.mxu1  ;;  %v5030_v11 = vld [vmem:[%s5727_s7 + $0xbc] sm:$0x1] }
 0x122   : > { %v7462_v24 = vadd.f32 %v7329_v19, %v1226_v49  ;;  %v7465_v37 = vadd.f32 %v1143_v53, %v7218_v62  ;;  %v5071_v40 = vcombine.low %v3829_v2, %v3839_v39  ;;  %v5072_v42 = vcombine.low %v3853_v59, %v3863_v41 }
 0x123   : > { %v4313_v56 = vsel %vm5936_vm7, %v4311_v23, %v4312_v52  ;;  %v7475_v17 = vadd.f32 %v7350_v47, %v1224_v57  ;;  %v8064_v19 = vshrl.u32 %v6914_v50, 16  ;;  %v8065_v62 = vshll.u32 %v6914_v50, 16  ;;  %v7484_v61 = vpop.f32.mrf.mxu0  ;;  %v7492_v2 = vpop.f32.mrf.mxu1 }
 0x124   : > { %v5113_v3 = vcombine.low %v4310_v44, %v4313_v56  ;;  %v3874_v54 = vshll.u32 %v6917_v36, 16  ;;  %5501 = vmatprep.mubr.msk.bf16.mxu1 %vm370_vm1, %v5071_v40  ;;  %v8066_v9 = vshrl.u32 %v6917_v36, 16  ;;  %v3884_v57 = vshll.u32 %v7468_v14, 16  ;;  %v8067_v40 = vld [vmem:[#allocation11_spill] sm:$0xff]  ;;  %v8069_v56 = vld [vmem:[#allocation13_spill] sm:$0xff] }
 0x125   : > { %v3867_v49 = vrot.slane %v8064_v19, 4  ;;  %v3870_v53 = vrot.slane %v8065_v62, 5  ;;  %v5099_v27 = vrot.slane %v6853_v20, 9  ;;  %v4316_v44 = vrot.slane %v6867_v33, 5  ;;  %5502 = vmatmul.mubr.msk.bf16.gmra.mxu1 %vm370_vm1, %v5072_v42  ;;  %v7500_v21 = vpop.f32.mrf.mxu0  ;;  %v1175_v52 = vpop.f32.mrf.mxu1 }
 0x126   : > { %v3880_v47 = vrot.slane %v8066_v9, 4  ;;  %5528 = vmatmul.mubr.msk.bf16.gmra.mxu0 %vm370_vm1, %v5113_v3  ;;  %v3876_v12 = vrot.slane %v3874_v54, 5  ;;  %v4319_v38 = vrot.slane %v7370_v15, 5  ;;  %v1233_v23 = vadd.f32 %v7388_v10, %v7242_v16  ;;  %v8068_v15 = vld [vmem:[#allocation12_spill] sm:$0xff]  ;;  %v8070_v16 = vld [vmem:[#allocation14_spill] sm:$0xff] }
 0x127   : > { %v3871_v34 = vor.u32 %v3870_v53, %v3867_v49  ;;  %v3886_v59 = vrot.slane %v3884_v57, 5  ;;  %v4317_v20 = vsel %vm5936_vm7, %v5099_v27, %v4316_v44  ;;  %v4318_v33 = vrot.slane %v4316_v44, 4  ;;  %v8071_v49 = vld [vmem:[#allocation6_spill] sm:$0xff]  ;;  %v8073_v53 = vld [vmem:[#allocation5_spill] sm:$0xff] }
 0x128   : > { %v7506_v29 = vadd.f32 %v7378_v5, %v7402_v43  ;;  %v3881_v41 = vor.u32 %v3880_v47, %v3876_v12  ;;  %v3895_v42 = vor.u32 %v8068_v15, %v8067_v40  ;;  %v3905_v10 = vor.u32 %v8070_v16, %v8069_v56  ;;  %v5323_v16 = vpop.f32.mrf.mxu1 }
 0x129   : > { %v3872_v39 = vrot.slane %v3871_v34, 4  ;;  %v4320_v3 = vsel %vm5936_vm7, %v4318_v33, %v4319_v38  ;;  %v3908_v19 = vshll.u32 %v5030_v11, 16  ;;  %v8072_v62 = vrot.slane %v8071_v49, 5  ;;  %v5349_v34 = vpop.f32.mrf.mxu0 }
 0x12a   : > { %v8074_v54 = vrot.slane %v8073_v53, 9  ;;  %v3882_v57 = vrot.slane %v3881_v41, 4  ;;  %v5114_v27 = vcombine.low %v4317_v20, %v4320_v3  ;;  %v3896_v44 = vrot.slane %v3895_v42, 4  ;;  %v1188_v42 = vpop.f32.mrf.mxu1 }
 0x12b   : > { %v8075_v43 = vmov %v8072_v62  ;;  %v3877_v47 = vsel %vm5921_vm6, %v3872_v39, %v3876_v12  ;;  %v3906_v40 = vrot.slane %v3905_v10, 4  ;;  %v3910_v38 = vrot.slane %v3908_v19, 5  ;;  %v1605_v39 = vpop.f32.mrf.mxu0 }
 0x12c   : > { %v4324_v5 = vsel %vm5936_vm7, %v8074_v54, %v8072_v62  ;;  %v4325_v9 = vrot.slane %v8075_v43, 4  ;;  %v4326_v33 = vrot.slane %v7405_v30, 5  ;;  %v1231_v15 = vadd.f32 %v7407_v4, %v7281_v6  ;;  %5531 = vmatprep.mubr.msk.bf16.mxu0 %vm370_vm1, %v5114_v27  ;;  %v5324_v19 = vpop.f32.mrf.mxu1  ;;  %v8081_v43 = vld [vmem:[#allocation15_spill] sm:$0xff] }
 0x12d   : > { %v3887_v49 = vsel %vm5921_vm6, %v3882_v57, %v3886_v59  ;;  %v3901_v12 = vsel %vm5921_vm6, %v3896_v44, %v8069_v56  ;;  %v7534_v20 = vadd.f32 %v7396_v51, %v1227_v28  ;;  %v1234_v30 = vadd.f32 %v7420_v0, %v7285_v26  ;;  %v975_v0 = vld [vmem:[%s7053_s22 + $0x90] sm:$0xff]  ;;  %v5350_v48 = vpop.f32.mrf.mxu0  ;;  %v8083_v44 = vld [vmem:[#allocation17_spill] sm:$0xff] }
 0x12e   : > { %v5073_v41 = vcombine.low %v3877_v47, %v3887_v49  ;;  %v3911_v6 = vsel %vm5921_vm6, %v3906_v40, %v3910_v38  ;;  %v4327_v4 = vsel %vm5936_vm7, %v4325_v9, %v4326_v33  ;;  %v7544_v59 = vadd.f32 %v7414_v45, %v7452_v1  ;;  %v1191_v9 = vpop.f32.mrf.mxu1  ;;  %v8082_v57 = vld [vmem:[#allocation16_spill] sm:$0xff] }
 0x12f   : > { %v5074_v56 = vcombine.low %v3901_v12, %v3911_v6  ;;  %v5115_v10 = vcombine.low %v4324_v5, %v4327_v4  ;;  %v1232_v51 = vadd.f32 %v7437_v13, %v7297_v60  ;;  %v7550_v26 = vadd.f32 %v7429_v35, %v7465_v37  ;;  %v8076_v35 = vld [vmem:[#allocation7_spill] sm:$0xff]  ;;  %v8078_v37 = vld [vmem:[#allocation2_spill] sm:$0xff] }
 0x130   : > { %5505 = vmatprep.mubr.msk.bf16.mxu1 %vm370_vm1, %v5073_v41  ;;  %v5101_v28 = vrot.slane %v6914_v50, 9  ;;  %v4330_v3 = vrot.slane %v6917_v36, 5  ;;  %v4333_v45 = vrot.slane %v7468_v14, 5  ;;  %v1237_v1 = vadd.f32 %v7454_v7, %v975_v0  ;;  %v1608_v7 = vpop.f32.mrf.mxu0  ;;  %v8085_v41 = vld [vmem:[#allocation19_spill] sm:$0xff] }
 0x131   : > { %5506 = vmatmul.mubr.msk.bf16.gmra.mxu1 %vm370_vm1, %v5074_v56  ;;  %5532 = vmatmul.mubr.msk.bf16.gmra.mxu0 %vm370_vm1, %v5115_v10  ;;  %v7561_v60 = vadd.f32 %v7442_v63, %v1233_v23  ;;  %v8077_v13 = vrot.slane %v8076_v35, 5  ;;  %v8079_v62 = vrot.slane %v8078_v37, 9  ;;  %v4340_v53 = vrot.slane %v5030_v11, 5 }
 0x132   : > { %v4331_v54 = vsel %vm5936_vm7, %v5101_v28, %v4330_v3  ;;  %v4332_v5 = vrot.slane %v4330_v3, 4  ;;  %v1235_v63 = vadd.f32 %v7477_v18, %v8081_v43  ;;  %v7576_v23 = vadd.f32 %v7470_v8, %v1231_v15  ;;  %v8084_v8 = vld [vmem:[#allocation18_spill] sm:$0xff]  ;;  %v8089_v28 = vld [vmem:[#allocation23_spill] sm:$0xff] }
 0x133   : > { %v4338_v50 = vsel %vm5936_vm7, %v8079_v62, %v8077_v13  ;;  %v8080_v36 = vmov %v8077_v13  ;;  %v1238_v27 = vadd.f32 %v7492_v2, %v8082_v57  ;;  %v7583_v11 = vadd.f32 %v7484_v61, %v1234_v30  ;;  %v5353_v61 = vpop.f32.mrf.mxu0  ;;  %v8086_v30 = vld [vmem:[#allocation20_spill] sm:$0xff] }
 0x134   : > { %v4339_v14 = vrot.slane %v8080_v36, 4  ;;  %v1236_v40 = vadd.f32 %v1175_v52, %v8083_v44  ;;  %v4334_v38 = vsel %vm5936_vm7, %v4332_v5, %v4333_v45  ;;  %v7589_v18 = vadd.f32 %v7500_v21, %v1232_v51  ;;  %v5327_v21 = vpop.f32.mrf.mxu1 }
 0x135   : > { %v1241_v15 = vadd.f32 %v5323_v16, %v8084_v8  ;;  %v5116_v49 = vcombine.low %v4331_v54, %v4334_v38  ;;  %v7592_v12 = vadd.f32 %v5349_v34, %v1237_v1  ;;  %v1239_v6 = vadd.f32 %v1188_v42, %v8085_v41  ;;  %v8088_v16 = vld [vmem:[#allocation22_spill] sm:$0xff]  ;;  %v1621_v0 = vpop.f32.mrf.mxu0 }
 0x136   : > { %v4341_v47 = vsel %vm5936_vm7, %v4339_v14, %v4340_v53  ;;  %v7595_v2 = vadd.f32 %v1605_v39, %v1235_v63  ;;  %v1242_v4 = vadd.f32 %v5324_v19, %v8086_v30  ;;  %v7598_v52 = vadd.f32 %v5350_v48, %v1238_v27  ;;  %v1204_v42 = vpop.f32.mrf.mxu1  ;;  %v8090_v19 = vld [vmem:[#allocation24_spill] sm:$0xff] }
 0x137   : > { %v5117_v33 = vcombine.low %v4338_v50, %v4341_v47  ;;  %v1240_v56 = vadd.f32 %v1191_v9, %v8087_v25  ;;  %v7601_v10 = vadd.f32 %v1608_v7, %v1236_v40  ;;  %5535 = vmatprep.mubr.msk.bf16.mxu0 %vm370_vm1, %v5116_v49  ;;  %v1245_v51 = vadd.f32 %v5327_v21, %v8088_v16  ;;  %v5354_v3 = vpop.f32.mrf.mxu0  ;;  %v8091_v50 = vld [vmem:[#allocation25_spill] sm:$0xff] }
 0x138   : > { %v7605_v34 = vadd.f32 %v5353_v61, %v1241_v15  ;;  %v7607_v39 = vadd.f32 %v1621_v0, %v1239_v6  ;;  %v1243_v48 = vadd.f32 %v1204_v42, %v8089_v28  ;;  %v5328_v45 = vpop.f32.mrf.mxu1  ;;  %v7611_v1 = vadd.f32 %v5354_v3, %v1242_v4 }
 0x139   : > { %5536 = vmatmul.mubr.msk.bf16.gmra.mxu0 %vm370_vm1, %v5117_v33  ;;  %v1246_v35 = vadd.f32 %v5328_v45, %v8090_v19  ;;  %v1624_v13 = vpop.f32.mrf.mxu0 }
 0x13a   : > { %v1207_v37 = vpop.f32.mrf.mxu1  ;;  %v7614_v62 = vadd.f32 %v1624_v13, %v1240_v56 }
 0x13b   : > { %v1244_v36 = vadd.f32 %v1207_v37, %v8091_v50  ;;  %v5357_v14 = vpop.f32.mrf.mxu0 }
 0x13c   : > { %v7617_v53 = vadd.f32 %v5357_v14, %v1245_v51  ;;  %v5363_v7 = vpop.f32.mrf.mxu1 }
 0x13d   : > { %v2046_v54 = vadd.f32 %v5363_v7, %v7327_v58  ;;  %v1637_v5 = vpop.f32.mrf.mxu0 }
 0x13e   : > { %v7620_v43 = vadd.f32 %v1637_v5, %v1243_v48  ;;  %v1933_v63 = vpop.f32.mrf.mxu1 }
 0x13f   : > { %v2044_v9 = vadd.f32 %v1933_v63, %v7360_v32  ;;  %v5358_v47 = vpop.f32.mrf.mxu0 }
 0x140   : > { %v7623_v57 = vadd.f32 %v5358_v47, %v1246_v35  ;;  %v5364_v27 = vpop.f32.mrf.mxu1 }
 0x141   : > { %v2047_v44 = vadd.f32 %v5364_v27, %v7375_v22  ;;  %v1640_v40 = vpop.f32.mrf.mxu0 }
 0x142   : > { %v7626_v38 = vadd.f32 %v1640_v40, %v1244_v36  ;;  %v1936_v33 = vpop.f32.mrf.mxu1 }
 0x143   : > { %v2045_v8 = vadd.f32 %v1936_v33, %v7382_v31  ;;  %v5393_v49 = vpop.f32.mrf.mxu0 }
 0x144   : > { %v5367_v15 = vpop.f32.mrf.mxu1  ;;  %v7630_v41 = vadd.f32 %v5393_v49, %v2046_v54 }
 0x145   : > { %v2050_v58 = vadd.f32 %v5367_v15, %v7410_v55  ;;  %v2587_v61 = vpop.f32.mrf.mxu0 }
 0x146   : > { %v1949_v6 = vpop.f32.mrf.mxu1  ;;  %v7633_v30 = vadd.f32 %v2587_v61, %v2044_v9 }
 0x147   : > { %v2048_v32 = vadd.f32 %v1949_v6, %v7448_v46  ;;  %v5394_v25 = vpop.f32.mrf.mxu0 }
 0x148   : > { %v5368_v4 = vpop.f32.mrf.mxu1  ;;  %v7636_v56 = vadd.f32 %v5394_v25, %v2047_v44 }
 0x149   : > { %v2051_v22 = vadd.f32 %v5368_v4, %v7462_v24  ;;  %v2590_v16 = vpop.f32.mrf.mxu0 }
 0x14a   : > { %v1952_v21 = vpop.f32.mrf.mxu1  ;;  %v7639_v55 = vadd.f32 %v2590_v16, %v2045_v8 }
 0x14b   : > { %v2049_v31 = vadd.f32 %v1952_v21, %v7475_v17  ;;  %v5397_v42 = vpop.f32.mrf.mxu0 }
 0x14c   : > { %v5371_v51 = vpop.f32.mrf.mxu1  ;;  %v7642_v28 = vadd.f32 %v5397_v42, %v2050_v58 }
 0x14d   : > { %v2054_v0 = vadd.f32 %v5371_v51, %v7506_v29  ;;  %v2603_v3 = vpop.f32.mrf.mxu0 }
 0x14e   : > { %v1965_v46 = vpop.f32.mrf.mxu1  ;;  %v7645_v45 = vadd.f32 %v2603_v3, %v2048_v32 }
 0x14f   : > { %v2052_v48 = vadd.f32 %v1965_v46, %v7534_v20  ;;  %v5398_v35 = vpop.f32.mrf.mxu0 }
 0x150   : > { %v5372_v24 = vpop.f32.mrf.mxu1  ;;  %v7648_v13 = vadd.f32 %v5398_v35, %v2051_v22 }
 0x151   : > { %v2055_v19 = vadd.f32 %v5372_v24, %v7544_v59  ;;  %v2606_v50 = vpop.f32.mrf.mxu0 }
 0x152   : > { %v1968_v17 = vpop.f32.mrf.mxu1  ;;  %v7651_v36 = vadd.f32 %v2606_v50, %v2049_v31 }
 0x153   : > { %v2053_v37 = vadd.f32 %v1968_v17, %v7550_v26  ;;  %v5401_v20 = vpop.f32.mrf.mxu0 }
 0x154   : > { %v5375_v29 = vpop.f32.mrf.mxu1  ;;  %v7655_v5 = vadd.f32 %v5401_v20, %v2054_v0 }
 0x155   : > { %v2058_v14 = vadd.f32 %v5375_v29, %v7561_v60  ;;  %v2619_v59 = vpop.f32.mrf.mxu0 }
 0x156   : > { %v1981_v7 = vpop.f32.mrf.mxu1  ;;  %v7658_v47 = vadd.f32 %v2619_v59, %v2052_v48 }
 0x157   : > { %v2056_v54 = vadd.f32 %v1981_v7, %v7576_v23  ;;  %v5402_v26 = vpop.f32.mrf.mxu0 }
 0x158   : > { %v5376_v63 = vpop.f32.mrf.mxu1  ;;  %v7661_v40 = vadd.f32 %v5402_v26, %v2055_v19 }
 0x159   : > { %v2059_v9 = vadd.f32 %v5376_v63, %v7583_v11  ;;  %v2622_v60 = vpop.f32.mrf.mxu0 }
 0x15a   : > { %v1984_v27 = vpop.f32.mrf.mxu1  ;;  %v7664_v15 = vadd.f32 %v2622_v60, %v2053_v37 }
 0x15b   : > { %v2057_v44 = vadd.f32 %v1984_v27, %v7589_v18  ;;  %v5405_v49 = vpop.f32.mrf.mxu0 }
 0x15c   : > { %v5379_v33 = vpop.f32.mrf.mxu1  ;;  %v7667_v11 = vadd.f32 %v5405_v49, %v2058_v14 }
 0x15d   : > { %v2062_v8 = vadd.f32 %v5379_v33, %v7592_v12  ;;  %v2635_v61 = vpop.f32.mrf.mxu0 }
 0x15e   : > { %v1997_v23 = vpop.f32.mrf.mxu1  ;;  %v7670_v18 = vadd.f32 %v2635_v61, %v2056_v54 }
 0x15f   : > { %v2060_v58 = vadd.f32 %v1997_v23, %v7595_v2  ;;  %v5406_v25 = vpop.f32.mrf.mxu0 }
 0x160   : > { %v5380_v6 = vpop.f32.mrf.mxu1  ;;  %v7673_v12 = vadd.f32 %v5406_v25, %v2059_v9 }
 0x161   : > { %v2063_v32 = vadd.f32 %v5380_v6, %v7598_v52  ;;  %v2638_v16 = vpop.f32.mrf.mxu0 }
 0x162   : > { %v2000_v4 = vpop.f32.mrf.mxu1  ;;  %8092 = vst [vmem:[#allocation8_spill] sm:$0xff] %v7673_v12  ;;  %v7676_v51 = vadd.f32 %v2638_v16, %v2057_v44 }
 0x163   : > { %v2061_v22 = vadd.f32 %v2000_v4, %v7601_v10 }
 0x164   : > { %v5383_v21 = vpop.f32.mrf.mxu1  ;;  %8093 = vst [vmem:[#allocation10_spill] sm:$0xff] %v7676_v51  ;;  %v5409_v52 = vpop.f32.mrf.mxu0 }
 0x165   : > { %v2066_v31 = vadd.f32 %v5383_v21, %v7605_v34  ;;  %v7680_v48 = vadd.f32 %v5409_v52, %v2062_v8 }
 0x166   : > { %v2013_v2 = vpop.f32.mrf.mxu1  ;;  %v2651_v10 = vpop.f32.mrf.mxu0 }
 0x167   : > { %v2064_v0 = vadd.f32 %v2013_v2, %v7607_v39  ;;  %8094 = vst [vmem:[#allocation9_spill] sm:$0xff] %v7680_v48  ;;  %v7683_v19 = vadd.f32 %v2651_v10, %v2060_v58 }
 0x168   : > { %v5384_v42 = vpop.f32.mrf.mxu1  ;;  %v5410_v34 = vpop.f32.mrf.mxu0 }
 0x169   : > { %v2067_v46 = vadd.f32 %v5384_v42, %v7611_v1  ;;  %8095 = vst [vmem:[#allocation3_spill] sm:$0xff] %v7683_v19  ;;  %v7686_v37 = vadd.f32 %v5410_v34, %v2063_v32 }
 0x16a   : > { %v2016_v3 = vpop.f32.mrf.mxu1  ;;  %v2654_v39 = vpop.f32.mrf.mxu0 }
 0x16b   : > { %v2065_v24 = vadd.f32 %v2016_v3, %v7614_v62  ;;  %8096 = vst [vmem:[#allocation4_spill] sm:$0xff] %v7686_v37  ;;  %v7689_v14 = vadd.f32 %v2654_v39, %v2061_v22 }
 0x16c   : > { %v5387_v35 = vpop.f32.mrf.mxu1 }
 0x16d   : > { %v2070_v17 = vadd.f32 %v5387_v35, %v7617_v53  ;;  %8097 = vst [vmem:[#allocation11_spill] sm:$0xff] %v7689_v14  ;;  %v5413_v20 = vpop.f32.mrf.mxu0 }
 0x16e   : > { %v2029_v50 = vpop.f32.mrf.mxu1  ;;  %v2720_v62 = vadd.f32 %v5413_v20, %v2066_v31 }
 0x16f   : > { %v2068_v29 = vadd.f32 %v2029_v50, %v7620_v43  ;;  %v2667_v59 = vpop.f32.mrf.mxu0 }
 0x170   : > { %v5388_v1 = vpop.f32.mrf.mxu1  ;;  %v2718_v9 = vadd.f32 %v2667_v59, %v2064_v0 }
 0x171   : > { %v2071_v7 = vadd.f32 %v5388_v1, %v7623_v57  ;;  %v5414_v27 = vpop.f32.mrf.mxu0 }
 0x172   : > { %v2032_v54 = vpop.f32.mrf.mxu1  ;;  %v2721_v53 = vadd.f32 %v5414_v27, %v2067_v46 }
 0x173   : > { %v2069_v63 = vadd.f32 %v2032_v54, %v7626_v38  ;;  %v2670_v26 = vpop.f32.mrf.mxu0 }
 0x174   : > { %v2719_v44 = vadd.f32 %v2670_v26, %v2065_v24  ;;  %v7693_v33 = vpop.f32.mrf.mxu1 }
 0x176   : > { %v5417_v60 = vpop.f32.mrf.mxu0  ;;  %v7695_v8 = vpop.f32.mrf.mxu1 }
 0x177   : > { %v2724_v43 = vadd.f32 %v5417_v60, %v2070_v17 }
 0x178   : > { %v2683_v23 = vpop.f32.mrf.mxu0  ;;  %v7697_v57 = vpop.f32.mrf.mxu1 }
 0x179   : > { %v2722_v58 = vadd.f32 %v2683_v23, %v2068_v29 }
 0x17a   : > { %v5418_v49 = vpop.f32.mrf.mxu0  ;;  %v7699_v32 = vpop.f32.mrf.mxu1 }
 0x17b   : > { %v2725_v6 = vadd.f32 %v5418_v49, %v2071_v7 }
 0x17c   : > { %v2686_v38 = vpop.f32.mrf.mxu0  ;;  %v7701_v4 = vpop.f32.mrf.mxu1 }
 0x17d   : > { %v2723_v61 = vadd.f32 %v2686_v38, %v2069_v63 }
 0x17e   : > { %v7703_v22 = vpop.f32.mrf.mxu0  ;;  %v7705_v25 = vpop.f32.mrf.mxu1 }
 0x180   : > { %v7707_v21 = vpop.f32.mrf.mxu0  ;;  %v7709_v31 = vpop.f32.mrf.mxu1 }
 0x182   : > { %v7711_v16 = vpop.f32.mrf.mxu0  ;;  %v7713_v2 = vpop.f32.mrf.mxu1 }
 0x184   : > { %v7715_v0 = vpop.f32.mrf.mxu0  ;;  %v7717_v42 = vpop.f32.mrf.mxu1 }
 0x186   : > { %v7719_v52 = vpop.f32.mrf.mxu0  ;;  %v7721_v46 = vpop.f32.mrf.mxu1 }
 0x188   : > { %v7723_v3 = vpop.f32.mrf.mxu0  ;;  %v7725_v10 = vpop.f32.mrf.mxu1 }
 0x18a   : > { %v7727_v24 = vpop.f32.mrf.mxu0  ;;  %v7729_v35 = vpop.f32.mrf.mxu1 }
 0x18c   : > { %v7731_v34 = vpop.f32.mrf.mxu0  ;;  %v7733_v17 = vpop.f32.mrf.mxu1 }
 0x18e   : > { %v7735_v50 = vpop.f32.mrf.mxu0  ;;  %v7737_v39 = vpop.f32.mrf.mxu1 }
 0x18f   : > { %8098 = vst [vmem:[#allocation12_spill] sm:$0xff] %v7737_v39 }
 0x190   : > { %v7739_v29 = vpop.f32.mrf.mxu0  ;;  %v7741_v1 = vpop.f32.mrf.mxu1 }
 0x191   : > { %8099 = vst [vmem:[#allocation13_spill] sm:$0xff] %v7741_v1 }
 0x192   : > { %v7743_v7 = vpop.f32.mrf.mxu0  ;;  %v7745_v20 = vpop.f32.mrf.mxu1 }
 0x193   : > { %8100 = vst [vmem:[#allocation14_spill] sm:$0xff] %v7745_v20 }
 0x194   : > { %v7747_v54 = vpop.f32.mrf.mxu0  ;;  %v7749_v63 = vpop.f32.mrf.mxu1 }
 0x195   : > { %8101 = vst [vmem:[#allocation6_spill] sm:$0xff] %v7749_v63 }
 0x196   : > { %v7751_v59 = vpop.f32.mrf.mxu0  ;;  %v7753_v27 = vpop.f32.mrf.mxu1 }
 0x197   : > { %8102 = vst [vmem:[#allocation5_spill] sm:$0xff] %v7751_v59  ;;  %8103 = vst [vmem:[#allocation7_spill] sm:$0xff] %v7753_v27 }
 0x198   : > { %v7755_v26 = vpop.f32.mrf.mxu0  ;;  %v7757_v60 = vpop.f32.mrf.mxu1 }
 0x199   : > { %8104 = vst [vmem:[#allocation2_spill] sm:$0xff] %v7755_v26  ;;  %8105 = vst [vmem:[#allocation15_spill] sm:$0xff] %v7757_v60 }
 0x19a   : > { %v7759_v23 = vpop.f32.mrf.mxu0  ;;  %v7761_v49 = vpop.f32.mrf.mxu1 }
 0x19b   : > { %8106 = vst [vmem:[#allocation16_spill] sm:$0xff] %v7759_v23  ;;  %8107 = vst [vmem:[#allocation17_spill] sm:$0xff] %v7761_v49 }
 0x19c   : > { %v7763_v38 = vpop.f32.mrf.mxu0  ;;  %v5443_v14 = vpop.f32.mrf.mxu1 }
 0x19d   : > { %8108 = vst [vmem:[#allocation18_spill] sm:$0xff] %v7763_v38  ;;  %v3150_v37 = vadd.f32 %v5443_v14, %v2720_v62 }
 0x19e   : > { %v7765_v19 = vpop.f32.mrf.mxu0  ;;  %v3097_v48 = vpop.f32.mrf.mxu1 }
 0x19f   : > { %8109 = vst [vmem:[#allocation19_spill] sm:$0xff] %v7765_v19  ;;  %v3148_v63 = vadd.f32 %v3097_v48, %v2718_v9 }
 0x1a0   : > { %v7767_v20 = vpop.f32.mrf.mxu0  ;;  %v5444_v51 = vpop.f32.mrf.mxu1 }
 0x1a1   : > { %8110 = vst [vmem:[#allocation20_spill] sm:$0xff] %v7767_v20  ;;  %v3151_v27 = vadd.f32 %v5444_v51, %v2721_v53 }
 0x1a2   : > { %v7769_v1 = vpop.f32.mrf.mxu0  ;;  %v3100_v26 = vpop.f32.mrf.mxu1 }
 0x1a3   : > { %8111 = vst [vmem:[#allocation21_spill] sm:$0xff] %v7769_v1  ;;  %v3149_v60 = vadd.f32 %v3100_v26, %v2719_v44 }
 0x1a4   : > { %v7771_v12 = vpop.f32.mrf.mxu0 }
 0x1a5   : > { %8112 = vst [vmem:[#allocation22_spill] sm:$0xff] %v7771_v12  ;;  %v5447_v23 = vpop.f32.mrf.mxu1 }
 0x1a6   : > { %v3154_v49 = vadd.f32 %v5447_v23, %v2724_v43  ;;  %v5473_v59 = vpop.f32.mrf.mxu0 }
 0x1a7   : > { %v7773_v38 = vadd.f32 %v5473_v59, %v3150_v37  ;;  %v3113_v14 = vpop.f32.mrf.mxu1 }
 0x1a8   : > { %v3152_v62 = vadd.f32 %v3113_v14, %v2722_v58  ;;  %v3489_v19 = vpop.f32.mrf.mxu0  ;;  %v3131_v14 = vadd.f32 %v7697_v57, %v7636_v56 }
 0x1a9   : > { %v7775_v39 = vadd.f32 %v3489_v19, %v3148_v63  ;;  %v5448_v48 = vpop.f32.mrf.mxu1  ;;  %v3130_v19 = vadd.f32 %v7693_v33, %v7630_v41 }
 0x1aa   : > { %v3155_v9 = vadd.f32 %v5448_v48, %v2725_v6  ;;  %v5474_v20 = vpop.f32.mrf.mxu0 }
 0x1ab   : > { %v7777_v51 = vadd.f32 %v5474_v20, %v3151_v27  ;;  %v3116_v53 = vpop.f32.mrf.mxu1  ;;  %v3128_v20 = vadd.f32 %v7695_v8, %v7633_v30  ;;  %v3129_v30 = vadd.f32 %v7699_v32, %v7639_v55  ;;  %v3523_v8 = vadd.f32 %v7711_v16, %v3131_v14 }
 0x1ac   : > { %v3153_v1 = vadd.f32 %v3116_v53, %v2723_v61  ;;  %v3492_v44 = vpop.f32.mrf.mxu0  ;;  %v3522_v61 = vadd.f32 %v7703_v22, %v3130_v19  ;;  %v3132_v32 = vadd.f32 %v7705_v25, %v7645_v45 }
 0x1ad   : > { %v7779_v26 = vadd.f32 %v3492_v44, %v3149_v60  ;;  %v5483_v12 = vpop.f32.mrf.mxu1  ;;  %v3520_v48 = vadd.f32 %v7707_v21, %v3128_v20  ;;  %v3521_v56 = vadd.f32 %v7715_v0, %v3129_v30  ;;  %v3136_v30 = vadd.f32 %v7721_v46, %v7658_v47 }
 0x1ae   : > { %v5477_v43 = vpop.f32.mrf.mxu0  ;;  %v4176_v41 = vadd.f32 %v5483_v12, %v3522_v61  ;;  %v3524_v20 = vadd.f32 %v7723_v3, %v3132_v32  ;;  %v3133_v61 = vadd.f32 %v7713_v2, %v7651_v36  ;;  %v3138_v2 = vadd.f32 %v7717_v42, %v7655_v5 }
 0x1af   : > { %v7781_v23 = vadd.f32 %v5477_v43, %v3154_v49  ;;  %v4063_v37 = vpop.f32.mrf.mxu1  ;;  %v3137_v5 = vadd.f32 %v7729_v35, %v7664_v15  ;;  %v8113_v35 = vld [vmem:[#allocation12_spill] sm:$0xff] }
 0x1b0   : > { %v3505_v59 = vpop.f32.mrf.mxu0  ;;  %v4174_v22 = vadd.f32 %v4063_v37, %v3520_v48  ;;  %v3525_v14 = vadd.f32 %v7731_v34, %v3133_v61  ;;  %v3530_v34 = vadd.f32 %v7735_v50, %v3138_v2  ;;  %v8120_v61 = vld [vmem:[#allocation16_spill] sm:$0xff] }
 0x1b1   : > { %v7785_v58 = vadd.f32 %v3505_v59, %v3152_v62  ;;  %v5484_v6 = vpop.f32.mrf.mxu1 }
 0x1b2   : > { %v5478_v63 = vpop.f32.mrf.mxu0  ;;  %v4177_v57 = vadd.f32 %v5484_v6, %v3523_v8 }
 0x1b3   : > { %v7790_v27 = vadd.f32 %v5478_v63, %v3155_v9  ;;  %v4066_v60 = vpop.f32.mrf.mxu1  ;;  %v3135_v63 = vadd.f32 %v7709_v31, %v7648_v13 }
 0x1b4   : > { %v3508_v49 = vpop.f32.mrf.mxu0  ;;  %v4175_v19 = vadd.f32 %v4066_v60, %v3521_v56 }
 0x1b5   : > { %v7795_v33 = vadd.f32 %v3508_v49, %v3153_v1  ;;  %v5487_v62 = vpop.f32.mrf.mxu1  ;;  %v3134_v1 = vadd.f32 %v7701_v4, %v7642_v28  ;;  %v3527_v45 = vadd.f32 %v7727_v24, %v3135_v63 }
 0x1b6   : > { %v5513_v53 = vpop.f32.mrf.mxu0 }
 0x1b7   : > { %v4606_v9 = vadd.f32 %v5513_v53, %v4176_v41  ;;  %v4079_v44 = vpop.f32.mrf.mxu1  ;;  %v3526_v16 = vadd.f32 %v7719_v52, %v3134_v1 }
 0x1b8   : > { %v4493_v43 = vpop.f32.mrf.mxu0  ;;  %v4178_v25 = vadd.f32 %v4079_v44, %v3524_v20 }
 0x1b9   : > { %4634 = vst [vmem:[%s7053_s22 + $0x10] sm:$0xff] %v4606_v9  ;;  %v4604_v12 = vadd.f32 %v4493_v43, %v4174_v22  ;;  %v5488_v21 = vpop.f32.mrf.mxu1  ;;  %v4180_v28 = vadd.f32 %v5487_v62, %v3526_v16  ;;  %v3139_v22 = vadd.f32 %v7725_v10, %v7661_v40  ;;  %v3528_v9 = vadd.f32 %v7739_v29, %v3136_v30  ;;  %v8115_v16 = vld [vmem:[#allocation8_spill] sm:$0xff]  ;;  %v8122_v30 = vld [vmem:[#allocation9_spill] sm:$0xff] }
 0x1ba   : > { %v5514_v59 = vpop.f32.mrf.mxu0  ;;  %v4181_v13 = vadd.f32 %v5488_v21, %v3527_v45  ;;  %v3142_v10 = vadd.f32 %v7733_v17, %v7667_v11  ;;  %v8117_v11 = vld [vmem:[#allocation2_spill] sm:$0xff] }
 0x1bb   : > { %4632 = vst [vmem:[%s7053_s22] sm:$0xff] %v4604_v12  ;;  %v4607_v55 = vadd.f32 %v5514_v59, %v4177_v57  ;;  %v4082_v0 = vpop.f32.mrf.mxu1  ;;  %v3531_v42 = vadd.f32 %v7743_v7, %v3139_v22  ;;  %v3529_v57 = vadd.f32 %v7747_v54, %v3137_v5  ;;  %v3140_v7 = vadd.f32 %v8113_v35, %v7670_v18  ;;  %v8114_v59 = vld [vmem:[#allocation5_spill] sm:$0xff]  ;;  %v8126_v5 = vld [vmem:[#allocation19_spill] sm:$0xff] }
 0x1bc   : > { %v4496_v37 = vpop.f32.mrf.mxu0  ;;  %v4179_v41 = vadd.f32 %v4082_v0, %v3525_v14  ;;  %v8121_v14 = vld [vmem:[#allocation18_spill] sm:$0xff] }
 0x1bd   : > { %4635 = vst [vmem:[%s7053_s22 + $0x18] sm:$0xff] %v4607_v55  ;;  %v4605_v6 = vadd.f32 %v4496_v37, %v4175_v19  ;;  %v3534_v19 = vadd.f32 %v8114_v59, %v3142_v10  ;;  %v8116_v37 = vld [vmem:[#allocation13_spill] sm:$0xff]  ;;  %v3532_v17 = vadd.f32 %v8117_v11, %v3140_v7 }
 0x1be   : > { %v3143_v0 = vadd.f32 %v8116_v37, %v8115_v16 }
 0x1bf   : > { %4633 = vst [vmem:[%s7053_s22 + $0x8] sm:$0xff] %v4605_v6  ;;  %v5517_v4 = vpop.f32.mrf.mxu0 }
 0x1c0   : > { %v4610_v52 = vadd.f32 %v5517_v4, %v4180_v28  ;;  %v8118_v28 = vld [vmem:[#allocation10_spill] sm:$0xff]  ;;  %v3535_v45 = vadd.f32 %v8120_v61, %v3143_v0 }
 0x1c1   : > { %v5491_v60 = vpop.f32.mrf.mxu1  ;;  %v4509_v49 = vpop.f32.mrf.mxu0  ;;  %v8119_v4 = vld [vmem:[#allocation14_spill] sm:$0xff] }
 0x1c2   : > { %4638 = vst [vmem:[%s7053_s22 + $0x30] sm:$0xff] %v4610_v52  ;;  %v4608_v31 = vadd.f32 %v4509_v49, %v4178_v25  ;;  %v4184_v44 = vadd.f32 %v5491_v60, %v3530_v34  ;;  %v3141_v18 = vadd.f32 %v8119_v4, %v8118_v28  ;;  %v8123_v34 = vld [vmem:[#allocation6_spill] sm:$0xff] }
 0x1c3   : > { %v4095_v3 = vpop.f32.mrf.mxu1  ;;  %v5518_v48 = vpop.f32.mrf.mxu0 }
 0x1c4   : > { %4636 = vst [vmem:[%s7053_s22 + $0x20] sm:$0xff] %v4608_v31  ;;  %v4611_v62 = vadd.f32 %v5518_v48, %v4181_v13  ;;  %v4182_v56 = vadd.f32 %v4095_v3, %v3528_v9  ;;  %v3533_v13 = vadd.f32 %v8121_v14, %v3141_v18  ;;  %v8124_v9 = vld [vmem:[#allocation3_spill] sm:$0xff] }
 0x1c5   : > { %v5492_v53 = vpop.f32.mrf.mxu1  ;;  %v4512_v36 = vpop.f32.mrf.mxu0 }
 0x1c6   : > { %4639 = vst [vmem:[%s7053_s22 + $0x38] sm:$0xff] %v4611_v62  ;;  %v4609_v24 = vadd.f32 %v4512_v36, %v4179_v41  ;;  %v4185_v12 = vadd.f32 %v5492_v53, %v3531_v42 }
 0x1c7   : > { %v4098_v8 = vpop.f32.mrf.mxu1 }
 0x1c8   : > { %4637 = vst [vmem:[%s7053_s22 + $0x28] sm:$0xff] %v4609_v24  ;;  %v4183_v1 = vadd.f32 %v4098_v8, %v3529_v57  ;;  %v3146_v8 = vadd.f32 %v8123_v34, %v8122_v30 }
 0x1ca   : > { %v3538_v42 = vadd.f32 %v8126_v5, %v3146_v8 }
 0x1cc   : > { %v5521_v43 = vpop.f32.mrf.mxu0 }
 0x1cd   : > { %v4614_v47 = vadd.f32 %v5521_v43, %v4184_v44  ;;  %v8125_v44 = vld [vmem:[#allocation7_spill] sm:$0xff] }
 0x1ce   : > { %v5495_v46 = vpop.f32.mrf.mxu1  ;;  %v4525_v50 = vpop.f32.mrf.mxu0  ;;  %v3144_v43 = vadd.f32 %v8125_v44, %v8124_v9 }
 0x1cf   : > { %4642 = vst [vmem:[%s7053_s22 + $0x50] sm:$0xff] %v4614_v47  ;;  %v4612_v40 = vadd.f32 %v4525_v50, %v4182_v56  ;;  %v4188_v6 = vadd.f32 %v5495_v46, %v3534_v19  ;;  %v8127_v56 = vld [vmem:[#allocation4_spill] sm:$0xff]  ;;  %v8128_v47 = vld [vmem:[#allocation15_spill] sm:$0xff] }
 0x1d0   : > { %v4111_v29 = vpop.f32.mrf.mxu1  ;;  %v5522_v21 = vpop.f32.mrf.mxu0  ;;  %v3147_v46 = vadd.f32 %v8128_v47, %v8127_v56  ;;  %v8129_v50 = vld [vmem:[#allocation20_spill] sm:$0xff] }
 0x1d1   : > { %4640 = vst [vmem:[%s7053_s22 + $0x40] sm:$0xff] %v4612_v40  ;;  %v4615_v15 = vadd.f32 %v5522_v21, %v4185_v12  ;;  %v4186_v25 = vadd.f32 %v4111_v29, %v3532_v17  ;;  %v3536_v57 = vadd.f32 %v8129_v50, %v3144_v43  ;;  %v8130_v29 = vld [vmem:[#allocation11_spill] sm:$0xff]  ;;  %v8131_v21 = vld [vmem:[#allocation17_spill] sm:$0xff] }
 0x1d2   : > { %v5496_v55 = vpop.f32.mrf.mxu1  ;;  %v4528_v32 = vpop.f32.mrf.mxu0 }
 0x1d3   : > { %4643 = vst [vmem:[%s7053_s22 + $0x58] sm:$0xff] %v4615_v15  ;;  %v4613_v54 = vadd.f32 %v4528_v32, %v4183_v1  ;;  %v4189_v31 = vadd.f32 %v5496_v55, %v3535_v45  ;;  %v3145_v1 = vadd.f32 %v8131_v21, %v8130_v29  ;;  %v8132_v15 = vld [vmem:[#allocation21_spill] sm:$0xff]  ;;  %v8133_v32 = vld [vmem:[#allocation22_spill] sm:$0xff] }
 0x1d4   : > { %v4114_v63 = vpop.f32.mrf.mxu1  ;;  %v3539_v35 = vadd.f32 %v8132_v15, %v3147_v46 }
 0x1d5   : > { %4641 = vst [vmem:[%s7053_s22 + $0x48] sm:$0xff] %v4613_v54  ;;  %v4187_v62 = vadd.f32 %v4114_v63, %v3533_v13  ;;  %v3537_v54 = vadd.f32 %v8133_v32, %v3145_v1 }
 0x1d8   : > { %v5499_v60 = vpop.f32.mrf.mxu1 }
 0x1d9   : > { %v5525_v20 = vpop.f32.mrf.mxu0  ;;  %v4192_v12 = vadd.f32 %v5499_v60, %v3538_v42 }
 0x1da   : > { %v4618_v52 = vadd.f32 %v5525_v20, %v4188_v6  ;;  %v4127_v48 = vpop.f32.mrf.mxu1 }
 0x1db   : > { %v4541_v49 = vpop.f32.mrf.mxu0  ;;  %v4190_v7 = vadd.f32 %v4127_v48, %v3536_v57 }
 0x1dc   : > { %4646 = vst [vmem:[%s7053_s22 + $0x70] sm:$0xff] %v4618_v52  ;;  %v4616_v3 = vadd.f32 %v4541_v49, %v4186_v25  ;;  %v5500_v36 = vpop.f32.mrf.mxu1 }
 0x1dd   : > { %v5526_v41 = vpop.f32.mrf.mxu0  ;;  %v4193_v16 = vadd.f32 %v5500_v36, %v3539_v35 }
 0x1de   : > { %4644 = vst [vmem:[%s7053_s22 + $0x60] sm:$0xff] %v4616_v3  ;;  %v4619_v53 = vadd.f32 %v5526_v41, %v4189_v31  ;;  %v4130_v22 = vpop.f32.mrf.mxu1 }
 0x1df   : > { %v4544_v2 = vpop.f32.mrf.mxu0  ;;  %v4191_v17 = vadd.f32 %v4130_v22, %v3537_v54 }
 0x1e0   : > { %4647 = vst [vmem:[%s7053_s22 + $0x78] sm:$0xff] %v4619_v53  ;;  %v4617_v24 = vadd.f32 %v4544_v2, %v4187_v62 }
 0x1e2   : > { %4645 = vst [vmem:[%s7053_s22 + $0x68] sm:$0xff] %v4617_v24 }
 0x1e5   : > { %v5503_v40 = vpop.f32.mrf.mxu1 }
 0x1e6   : > { %v5529_v10 = vpop.f32.mrf.mxu0  ;;  %v4196_v4 = vadd.f32 %v5503_v40, %v7773_v38 }
 0x1e7   : > { %v4622_v59 = vadd.f32 %v5529_v10, %v4192_v12  ;;  %v4143_v19 = vpop.f32.mrf.mxu1 }
 0x1e8   : > { %v4557_v55 = vpop.f32.mrf.mxu0  ;;  %v4194_v45 = vadd.f32 %v4143_v19, %v7775_v39 }
 0x1e9   : > { %4650 = vst [vmem:[%s7053_s22 + $0x90] sm:$0xff] %v4622_v59  ;;  %v4620_v37 = vadd.f32 %v4557_v55, %v4190_v7  ;;  %v5504_v0 = vpop.f32.mrf.mxu1 }
 0x1ea   : > { %v5530_v11 = vpop.f32.mrf.mxu0  ;;  %v4197_v49 = vadd.f32 %v5504_v0, %v7777_v51 }
 0x1eb   : > { %4648 = vst [vmem:[%s7053_s22 + $0x80] sm:$0xff] %v4620_v37  ;;  %v4623_v6 = vadd.f32 %v5530_v11, %v4193_v16  ;;  %v4146_v63 = vpop.f32.mrf.mxu1 }
 0x1ec   : > { %v4560_v20 = vpop.f32.mrf.mxu0  ;;  %v4195_v31 = vadd.f32 %v4146_v63, %v7779_v26 }
 0x1ed   : > { %4651 = vst [vmem:[%s7053_s22 + $0x98] sm:$0xff] %v4623_v6  ;;  %v4621_v28 = vadd.f32 %v4560_v20, %v4191_v17 }
 0x1ef   : > { %4649 = vst [vmem:[%s7053_s22 + $0x88] sm:$0xff] %v4621_v28 }
 0x1f1   : > { %v5507_v18 = vpop.f32.mrf.mxu1  ;;  %v5533_v61 = vpop.f32.mrf.mxu0 }
 0x1f2   : > { %v4626_v25 = vadd.f32 %v5533_v61, %v4196_v4  ;;  %v4200_v41 = vadd.f32 %v5507_v18, %v7781_v23 }
 0x1f3   : > { %v4159_v52 = vpop.f32.mrf.mxu1  ;;  %v4573_v60 = vpop.f32.mrf.mxu0 }
 0x1f4   : > { %4654 = vst [vmem:[%s7053_s22 + $0xb0] sm:$0xff] %v4626_v25  ;;  %v4624_v14 = vadd.f32 %v4573_v60, %v4194_v45  ;;  %v4198_v51 = vadd.f32 %v4159_v52, %v7785_v58 }
 0x1f5   : > { %v5534_v13 = vpop.f32.mrf.mxu0  ;;  %v5508_v3 = vpop.f32.mrf.mxu1 }
 0x1f6   : > { %4652 = vst [vmem:[%s7053_s22 + $0xa0] sm:$0xff] %v4624_v14  ;;  %v4627_v38 = vadd.f32 %v5534_v13, %v4197_v49  ;;  %v4201_v26 = vadd.f32 %v5508_v3, %v7790_v27 }
 0x1f7   : > { %v4576_v48 = vpop.f32.mrf.mxu0  ;;  %v4162_v36 = vpop.f32.mrf.mxu1 }
 0x1f8   : > { %4655 = vst [vmem:[%s7053_s22 + $0xb8] sm:$0xff] %v4627_v38  ;;  %v4625_v39 = vadd.f32 %v4576_v48, %v4195_v31  ;;  %v4199_v34 = vadd.f32 %v4162_v36, %v7795_v33 }
 0x1f9   : > { %v5537_v62 = vpop.f32.mrf.mxu0 }
 0x1fa   : > { %4653 = vst [vmem:[%s7053_s22 + $0xa8] sm:$0xff] %v4625_v39  ;;  %v4630_v53 = vadd.f32 %v5537_v62, %v4200_v41 }
 0x1fb   : > { %v4589_v2 = vpop.f32.mrf.mxu0 }
 0x1fc   : > { %4658 = vst [vmem:[%s7053_s22 + $0xd0] sm:$0xff] %v4630_v53  ;;  %v4628_v24 = vadd.f32 %v4589_v2, %v4198_v51 }
 0x1fd   : > { %v5538_v30 = vpop.f32.mrf.mxu0 }
 0x1fe   : > { %4656 = vst [vmem:[%s7053_s22 + $0xc0] sm:$0xff] %v4628_v24  ;;  %v4631_v23 = vadd.f32 %v5538_v30, %v4201_v26 }
 0x1ff   : > { %v4592_v8 = vpop.f32.mrf.mxu0 }
 0x200   : > { %4659 = vst [vmem:[%s7053_s22 + $0xd8] sm:$0xff] %v4631_v23  ;;  %v4629_v22 = vadd.f32 %v4592_v8, %v4199_v34 }
 0x202   : > { %4657 = vst [vmem:[%s7053_s22 + $0xc8] sm:$0xff] %v4629_v22 }
 0x203 PF: > { %s13_s14 = sadd.s32 1, %s5640_s14   ;;  %s8134_s12 = smov %s5636_s13 }
 0x204   : > { %p10_p6 = scmp.ge.s32.totalorder %s13_s14, 4   ;;  %s8135_s13 = smov %s8137_s15 }
 0x206   :  { %12 = sbr.rel (!%p10_p6) target bundleno = 2 (0x2), region = 73 }

</bundles_post_ra>
